<compile_context>
chip_gen: v6e
topology: v6e:2x2x1
jax: 0.10.0
libtpu: 0.0.40
codegen_flags: <defaults>
</compile_context>

<pallas_src>
import jax
import jax.numpy as jnp
from jax.experimental import pallas as pl
from jax.experimental.pallas import tpu as pltpu


# ----------------------------------------------------------------------------
# Fused Pallas kernel: full multi-layer GRU for one stack per grid point
# ----------------------------------------------------------------------------
def fused_gru_stack_kernel(x_ref, wih0_ref, wihr_ref, whh_ref, bih_ref,
                           bhh_ref, h_ref):
    """PyTorch-semantics GRU stack (all layers) for one of read/unread/fav.

    Block shapes seen by the kernel (leading stack dim already selected):
      x_ref:    (1, T, B, D)        time-major embedded input
      wih0_ref: (1, 3, D, H)        layer-0 input weights, gates [r, z, n]
      wihr_ref: (1, L-1, 3, H, H)   input weights of layers 1..L-1
      whh_ref:  (1, L, 3, H, H)     hidden weights
      bih_ref:  (1, L, 3, 1, H)
      bhh_ref:  (1, L, 3, 1, H)
      h_ref:    (1, L, B, H)        final hidden state per layer (output)
    """
    T, B, D0 = x_ref.shape[1], x_ref.shape[2], x_ref.shape[3]
    L = whh_ref.shape[1]
    H = whh_ref.shape[-1]

    # Layer-0 input as a single 2D slab for one MXU matmul per gate.
    x2d = x_ref[0].reshape(T * B, D0)                      # (T*B, D)

    for l in range(L):
        # Per-gate weights / biases; all indices are static Python ints.
        if l == 0:
            w_ir, w_iz, w_in = (wih0_ref[0, g] for g in range(3))
        else:
            w_ir, w_iz, w_in = (wihr_ref[0, l - 1, g] for g in range(3))
        w_hr, w_hz, w_hn = (whh_ref[0, l, g] for g in range(3))
        b_ir, b_iz, b_in = (bih_ref[0, l, g] for g in range(3))
        b_hr, b_hz, b_hn = (bhh_ref[0, l, g] for g in range(3))

        # Input contribution for every timestep: one lane-aligned
        # (T*B, D) @ (D, H) matmul per gate (no intra-vreg lane slicing).
        # r/z hidden biases only ever add, so fold them in here; b_hn must
        # stay inside the r * (...) term.
        gx_r = (jnp.dot(x2d, w_ir, preferred_element_type=jnp.float32)
                + b_ir + b_hr).reshape(T, B, H)
        gx_z = (jnp.dot(x2d, w_iz, preferred_element_type=jnp.float32)
                + b_iz + b_hz).reshape(T, B, H)
        gx_n = (jnp.dot(x2d, w_in, preferred_element_type=jnp.float32)
                + b_in).reshape(T, B, H)

        # Fully-unrolled recurrence (T is small & static).  Everything stays
        # in vregs; no per-step masked stores to VMEM/HBM.
        h = jnp.zeros((B, H), dtype=jnp.float32)
        outs = []
        for t in range(T):
            gh_r = jnp.dot(h, w_hr, preferred_element_type=jnp.float32)
            gh_z = jnp.dot(h, w_hz, preferred_element_type=jnp.float32)
            gh_n = jnp.dot(h, w_hn, preferred_element_type=jnp.float32) + b_hn
            r = jax.nn.sigmoid(gx_r[t] + gh_r)
            z = jax.nn.sigmoid(gx_z[t] + gh_z)
            n = jnp.tanh(gx_n[t] + r * gh_n)
            h = (1.0 - z) * n + z * h
            outs.append(h)

        h_ref[0, l] = h                                    # final hidden, layer l
        if l + 1 < L:
            x2d = jnp.concatenate(outs, axis=0)            # (T*B, H) -> next layer


# ----------------------------------------------------------------------------
# Wrapper: one pallas_call for all three GRU stacks
# ----------------------------------------------------------------------------
def fused_gru_stacks(x_stacked, gru):
    """x_stacked: (3, T, B, D) f32. Returns final hidden states (3, L, B, H)."""
    S, T, B, D = x_stacked.shape
    L = gru['whh'].shape[1]
    H = gru['whh'].shape[-1]
    Lm1 = gru['wihr'].shape[1]
    return pl.pallas_call(
        fused_gru_stack_kernel,
        out_shape=jax.ShapeDtypeStruct((S, L, B, H), jnp.float32),
        grid_spec=pltpu.PrefetchScalarGridSpec(
            num_scalar_prefetch=0,
            grid=(S,),
            in_specs=[
                pl.BlockSpec((1, T, B, D), lambda s: (s, 0, 0, 0)),
                pl.BlockSpec((1, 3, D, H), lambda s: (s, 0, 0, 0)),
                pl.BlockSpec((1, Lm1, 3, H, H), lambda s: (s, 0, 0, 0, 0)),
                pl.BlockSpec((1, L, 3, H, H), lambda s: (s, 0, 0, 0, 0)),
                pl.BlockSpec((1, L, 3, 1, H), lambda s: (s, 0, 0, 0, 0)),
                pl.BlockSpec((1, L, 3, 1, H), lambda s: (s, 0, 0, 0, 0)),
            ],
            out_specs=pl.BlockSpec((1, L, B, H), lambda s: (s, 0, 0, 0)),
        ),
        compiler_params=pltpu.CompilerParams(
            dimension_semantics=("parallel",)),
    )(x_stacked, gru['wih0'], gru['wihr'], gru['whh'], gru['bih'], gru['bhh'])


# ----------------------------------------------------------------------------
# Parameter construction (deterministic, mirrors the PyTorch __init__ shapes)
# ----------------------------------------------------------------------------
def init_params(key, topic_vocab_size, doc_vocab_size, nclass,
                idim, hdim, nlayers):
    keys = iter(jax.random.split(key, 64))

    def uniform(shape, bound):
        return jax.random.uniform(next(keys), shape, jnp.float32, -bound, bound)

    # Embeddings: N(0,1) with padding_idx=1 row zeroed (PyTorch behaviour).
    doc_embeds = jax.random.normal(next(keys), (doc_vocab_size, idim), jnp.float32)
    doc_embeds = doc_embeds.at[1].set(0.0)
    fav_embeds = jax.random.normal(next(keys), (topic_vocab_size, idim), jnp.float32)
    fav_embeds = fav_embeds.at[1].set(0.0)

    bound = 1.0 / (hdim ** 0.5)

    def make_stack():
        return dict(
            wih0=uniform((3, idim, hdim), bound),                       # gates [r,z,n]
            wihr=uniform((max(nlayers - 1, 1), 3, hdim, hdim), bound),  # layers 1..L-1
            whh=uniform((nlayers, 3, hdim, hdim), bound),
            bih=uniform((nlayers, 3, 1, hdim), bound),
            bhh=uniform((nlayers, 3, 1, hdim), bound),
        )

    stacks = [make_stack() for _ in range(3)]          # order: read, unread, fav
    gru = {k: jnp.stack([s[k] for s in stacks], axis=0) for k in stacks[0]}

    fc_in = nlayers * 1 * hdim * 3
    fc_bound = 1.0 / (fc_in ** 0.5)
    fc_w = uniform((fc_in, nclass), fc_bound)          # stored as (in, out)
    fc_b = uniform((nclass,), fc_bound)

    return dict(doc_embeds=doc_embeds, fav_embeds=fav_embeds, gru=gru,
                fc_w=fc_w, fc_b=fc_b)


# ----------------------------------------------------------------------------
# Forward pass (matches Model.forward)
# ----------------------------------------------------------------------------
@jax.jit
def forward(params, fav, read, unread):
    B = fav.shape[0]
    # The fused kernel assumes the three id sequences share the same length T
    # (true for the test inputs; matches how the module is exercised here).
    xread = jnp.take(params['doc_embeds'], read, axis=0)      # (B, T, idim)
    xunread = jnp.take(params['doc_embeds'], unread, axis=0)  # (B, T, idim)
    xfav = jnp.take(params['fav_embeds'], fav, axis=0)        # (B, T, idim)

    # (3, T, B, idim); stack order (read, unread, fav) == torch.cat order.
    x_stacked = jnp.stack(
        [jnp.transpose(xread, (1, 0, 2)),
         jnp.transpose(xunread, (1, 0, 2)),
         jnp.transpose(xfav, (1, 0, 2))], axis=0).astype(jnp.float32)

    h = fused_gru_stacks(x_stacked, params['gru'])            # (3, L, B, H)

    # (S,L,B,H) -> (B,L,S,H) -> (B, L*3H): reproduces cat(dim=2)+transpose+view.
    h = jnp.transpose(h, (2, 1, 0, 3)).reshape(B, -1)

    # Final FC is a (B, L*3H) @ (L*3H, nclass) sliver: a Pallas call here is
    # pure launch overhead (and nclass<128 forces masked stores), so leave it
    # to XLA.
    return jnp.dot(h, params['fc_w']) + params['fc_b']


# ----------------------------------------------------------------------------
if __name__ == "__main__":
    topic_vocab_size = 30
    doc_vocab_size = 50
    nclass = 5
    idim = 16
    hdim = 32
    nlayers = 3
    B, T = 2, 8

    key = jax.random.PRNGKey(0)
    pkey, k1, k2, k3 = jax.random.split(key, 4)
    params = init_params(pkey, topic_vocab_size, doc_vocab_size, nclass,
                         idim, hdim, nlayers)

    fav = jax.random.randint(k1, (B, T), 0, topic_vocab_size, dtype=jnp.int32)
    read = jax.random.randint(k2, (B, T), 0, doc_vocab_size, dtype=jnp.int32)
    unread = jax.random.randint(k3, (B, T), 0, doc_vocab_size, dtype=jnp.int32)

    out = forward(params, fav, read, unread)
    jax.block_until_ready(out)
    assert out.shape == (B, nclass), out.shape
    print("KERNEL_OK")
</pallas_src>

<mosaic_0001>
module attributes {stable_mosaic.version = 11 : i64} {
  func.func @fused_gru_stack_kernel(%arg0: i32, %arg1: memref<1x8x2x16xf32, #tpu.memory_space<vmem>>, %arg2: memref<1x3x16x32xf32, #tpu.memory_space<vmem>>, %arg3: memref<1x2x3x32x32xf32, #tpu.memory_space<vmem>>, %arg4: memref<1x3x3x32x32xf32, #tpu.memory_space<vmem>>, %arg5: memref<1x3x3x1x32xf32, #tpu.memory_space<vmem>>, %arg6: memref<1x3x3x1x32xf32, #tpu.memory_space<vmem>>, %arg7: memref<1x3x2x32xf32, #tpu.memory_space<vmem>>) attributes {dimension_semantics = [#tpu.dimension_semantics<parallel>], iteration_bounds = array<i64: 3>, scalar_prefetch = 0 : i64, scratch_operands = 0 : i64, tpu.core_type = #tpu.core_type<tc>, window_params = [{transform_indices = @transform_0, window_bounds = array<i64: 1, 8, 2, 16>}, {transform_indices = @transform_1, window_bounds = array<i64: 1, 3, 16, 32>}, {transform_indices = @transform_2, window_bounds = array<i64: 1, 2, 3, 32, 32>}, {transform_indices = @transform_3, window_bounds = array<i64: 1, 3, 3, 32, 32>}, {transform_indices = @transform_4, window_bounds = array<i64: 1, 3, 3, 1, 32>}, {transform_indices = @transform_5, window_bounds = array<i64: 1, 3, 3, 1, 32>}, {transform_indices = @transform_6, window_bounds = array<i64: 1, 3, 2, 32>}]} {
    %c0 = arith.constant 0 : index
    %c0_0 = arith.constant 0 : index
    %c0_1 = arith.constant 0 : index
    %c0_2 = arith.constant 0 : index
    %0 = vector.load %arg1[%c0, %c0_0, %c0_1, %c0_2] : memref<1x8x2x16xf32, #tpu.memory_space<vmem>>, vector<1x8x2x16xf32>
    %1 = vector.shape_cast %0 : vector<1x8x2x16xf32> to vector<8x2x16xf32>
    %2 = vector.shape_cast %1 : vector<8x2x16xf32> to vector<16x16xf32>
    %c0_3 = arith.constant 0 : index
    %c0_4 = arith.constant 0 : index
    %c0_5 = arith.constant 0 : index
    %c0_6 = arith.constant 0 : index
    %3 = vector.load %arg2[%c0_3, %c0_4, %c0_5, %c0_6] : memref<1x3x16x32xf32, #tpu.memory_space<vmem>>, vector<1x1x16x32xf32>
    %4 = vector.shape_cast %3 : vector<1x1x16x32xf32> to vector<16x32xf32>
    %c0_7 = arith.constant 0 : index
    %c1 = arith.constant 1 : index
    %c0_8 = arith.constant 0 : index
    %c0_9 = arith.constant 0 : index
    %5 = vector.load %arg2[%c0_7, %c1, %c0_8, %c0_9] : memref<1x3x16x32xf32, #tpu.memory_space<vmem>>, vector<1x1x16x32xf32>
    %6 = vector.shape_cast %5 : vector<1x1x16x32xf32> to vector<16x32xf32>
    %c0_10 = arith.constant 0 : index
    %c2 = arith.constant 2 : index
    %c0_11 = arith.constant 0 : index
    %c0_12 = arith.constant 0 : index
    %7 = vector.load %arg2[%c0_10, %c2, %c0_11, %c0_12] : memref<1x3x16x32xf32, #tpu.memory_space<vmem>>, vector<1x1x16x32xf32>
    %8 = vector.shape_cast %7 : vector<1x1x16x32xf32> to vector<16x32xf32>
    %c0_13 = arith.constant 0 : index
    %c0_14 = arith.constant 0 : index
    %c0_15 = arith.constant 0 : index
    %c0_16 = arith.constant 0 : index
    %c0_17 = arith.constant 0 : index
    %9 = vector.load %arg4[%c0_13, %c0_14, %c0_15, %c0_16, %c0_17] : memref<1x3x3x32x32xf32, #tpu.memory_space<vmem>>, vector<1x1x1x32x32xf32>
    %10 = vector.shape_cast %9 : vector<1x1x1x32x32xf32> to vector<32x32xf32>
    %c0_18 = arith.constant 0 : index
    %c0_19 = arith.constant 0 : index
    %c1_20 = arith.constant 1 : index
    %c0_21 = arith.constant 0 : index
    %c0_22 = arith.constant 0 : index
    %11 = vector.load %arg4[%c0_18, %c0_19, %c1_20, %c0_21, %c0_22] : memref<1x3x3x32x32xf32, #tpu.memory_space<vmem>>, vector<1x1x1x32x32xf32>
    %12 = vector.shape_cast %11 : vector<1x1x1x32x32xf32> to vector<32x32xf32>
    %c0_23 = arith.constant 0 : index
    %c0_24 = arith.constant 0 : index
    %c2_25 = arith.constant 2 : index
    %c0_26 = arith.constant 0 : index
    %c0_27 = arith.constant 0 : index
    %13 = vector.load %arg4[%c0_23, %c0_24, %c2_25, %c0_26, %c0_27] : memref<1x3x3x32x32xf32, #tpu.memory_space<vmem>>, vector<1x1x1x32x32xf32>
    %14 = vector.shape_cast %13 : vector<1x1x1x32x32xf32> to vector<32x32xf32>
    %c0_28 = arith.constant 0 : index
    %c0_29 = arith.constant 0 : index
    %c0_30 = arith.constant 0 : index
    %c0_31 = arith.constant 0 : index
    %c0_32 = arith.constant 0 : index
    %15 = vector.load %arg5[%c0_28, %c0_29, %c0_30, %c0_31, %c0_32] : memref<1x3x3x1x32xf32, #tpu.memory_space<vmem>>, vector<1x1x1x1x32xf32>
    %16 = vector.shape_cast %15 : vector<1x1x1x1x32xf32> to vector<1x32xf32>
    %c0_33 = arith.constant 0 : index
    %c0_34 = arith.constant 0 : index
    %c1_35 = arith.constant 1 : index
    %c0_36 = arith.constant 0 : index
    %c0_37 = arith.constant 0 : index
    %17 = vector.load %arg5[%c0_33, %c0_34, %c1_35, %c0_36, %c0_37] : memref<1x3x3x1x32xf32, #tpu.memory_space<vmem>>, vector<1x1x1x1x32xf32>
    %18 = vector.shape_cast %17 : vector<1x1x1x1x32xf32> to vector<1x32xf32>
    %c0_38 = arith.constant 0 : index
    %c0_39 = arith.constant 0 : index
    %c2_40 = arith.constant 2 : index
    %c0_41 = arith.constant 0 : index
    %c0_42 = arith.constant 0 : index
    %19 = vector.load %arg5[%c0_38, %c0_39, %c2_40, %c0_41, %c0_42] : memref<1x3x3x1x32xf32, #tpu.memory_space<vmem>>, vector<1x1x1x1x32xf32>
    %20 = vector.shape_cast %19 : vector<1x1x1x1x32xf32> to vector<1x32xf32>
    %c0_43 = arith.constant 0 : index
    %c0_44 = arith.constant 0 : index
    %c0_45 = arith.constant 0 : index
    %c0_46 = arith.constant 0 : index
    %c0_47 = arith.constant 0 : index
    %21 = vector.load %arg6[%c0_43, %c0_44, %c0_45, %c0_46, %c0_47] : memref<1x3x3x1x32xf32, #tpu.memory_space<vmem>>, vector<1x1x1x1x32xf32>
    %22 = vector.shape_cast %21 : vector<1x1x1x1x32xf32> to vector<1x32xf32>
    %c0_48 = arith.constant 0 : index
    %c0_49 = arith.constant 0 : index
    %c1_50 = arith.constant 1 : index
    %c0_51 = arith.constant 0 : index
    %c0_52 = arith.constant 0 : index
    %23 = vector.load %arg6[%c0_48, %c0_49, %c1_50, %c0_51, %c0_52] : memref<1x3x3x1x32xf32, #tpu.memory_space<vmem>>, vector<1x1x1x1x32xf32>
    %24 = vector.shape_cast %23 : vector<1x1x1x1x32xf32> to vector<1x32xf32>
    %c0_53 = arith.constant 0 : index
    %c0_54 = arith.constant 0 : index
    %c2_55 = arith.constant 2 : index
    %c0_56 = arith.constant 0 : index
    %c0_57 = arith.constant 0 : index
    %25 = vector.load %arg6[%c0_53, %c0_54, %c2_55, %c0_56, %c0_57] : memref<1x3x3x1x32xf32, #tpu.memory_space<vmem>>, vector<1x1x1x1x32xf32>
    %26 = vector.shape_cast %25 : vector<1x1x1x1x32xf32> to vector<1x32xf32>
    %cst = arith.constant dense<0.000000e+00> : vector<16x32xf32>
    %27 = tpu.matmul %2, %4, %cst {dimension_numbers = #tpu.dot_dimension_numbers<[1], [0], [0], [1], [0, 0, 1, 1], [], []>} : vector<16x16xf32>, vector<16x32xf32>, vector<16x32xf32> -> vector<16x32xf32>
    %28 = vector.broadcast %16 : vector<1x32xf32> to vector<16x32xf32>
    %29 = arith.addf %27, %28 : vector<16x32xf32>
    %30 = vector.broadcast %22 : vector<1x32xf32> to vector<16x32xf32>
    %31 = arith.addf %29, %30 : vector<16x32xf32>
    %32 = vector.shape_cast %31 : vector<16x32xf32> to vector<8x2x32xf32>
    %cst_58 = arith.constant dense<0.000000e+00> : vector<16x32xf32>
    %33 = tpu.matmul %2, %6, %cst_58 {dimension_numbers = #tpu.dot_dimension_numbers<[1], [0], [0], [1], [0, 0, 1, 1], [], []>} : vector<16x16xf32>, vector<16x32xf32>, vector<16x32xf32> -> vector<16x32xf32>
    %34 = vector.broadcast %18 : vector<1x32xf32> to vector<16x32xf32>
    %35 = arith.addf %33, %34 : vector<16x32xf32>
    %36 = vector.broadcast %24 : vector<1x32xf32> to vector<16x32xf32>
    %37 = arith.addf %35, %36 : vector<16x32xf32>
    %38 = vector.shape_cast %37 : vector<16x32xf32> to vector<8x2x32xf32>
    %cst_59 = arith.constant dense<0.000000e+00> : vector<16x32xf32>
    %39 = tpu.matmul %2, %8, %cst_59 {dimension_numbers = #tpu.dot_dimension_numbers<[1], [0], [0], [1], [0, 0, 1, 1], [], []>} : vector<16x16xf32>, vector<16x32xf32>, vector<16x32xf32> -> vector<16x32xf32>
    %40 = vector.broadcast %20 : vector<1x32xf32> to vector<16x32xf32>
    %41 = arith.addf %39, %40 : vector<16x32xf32>
    %42 = vector.shape_cast %41 : vector<16x32xf32> to vector<8x2x32xf32>
    %cst_60 = arith.constant 0.000000e+00 : f32
    %43 = vector.broadcast %cst_60 : f32 to vector<2x32xf32>
    %cst_61 = arith.constant dense<0.000000e+00> : vector<2x32xf32>
    %44 = tpu.matmul %43, %10, %cst_61 {dimension_numbers = #tpu.dot_dimension_numbers<[1], [0], [0], [1], [0, 0, 1, 1], [], []>} : vector<2x32xf32>, vector<32x32xf32>, vector<2x32xf32> -> vector<2x32xf32>
    %cst_62 = arith.constant dense<0.000000e+00> : vector<2x32xf32>
    %45 = tpu.matmul %43, %12, %cst_62 {dimension_numbers = #tpu.dot_dimension_numbers<[1], [0], [0], [1], [0, 0, 1, 1], [], []>} : vector<2x32xf32>, vector<32x32xf32>, vector<2x32xf32> -> vector<2x32xf32>
    %cst_63 = arith.constant dense<0.000000e+00> : vector<2x32xf32>
    %46 = tpu.matmul %43, %14, %cst_63 {dimension_numbers = #tpu.dot_dimension_numbers<[1], [0], [0], [1], [0, 0, 1, 1], [], []>} : vector<2x32xf32>, vector<32x32xf32>, vector<2x32xf32> -> vector<2x32xf32>
    %47 = vector.broadcast %26 : vector<1x32xf32> to vector<2x32xf32>
    %48 = arith.addf %46, %47 : vector<2x32xf32>
    %49 = vector.extract_strided_slice %32 {offsets = [0, 0, 0], sizes = [1, 2, 32], strides = [1, 1, 1]} : vector<8x2x32xf32> to vector<1x2x32xf32>
    %50 = vector.shape_cast %49 : vector<1x2x32xf32> to vector<2x32xf32>
    %51 = arith.addf %50, %44 : vector<2x32xf32>
    %52 = arith.negf %51 : vector<2x32xf32>
    %53 = math.exp %52 : vector<2x32xf32>
    %cst_64 = arith.constant 1.000000e+00 : f32
    %54 = vector.broadcast %cst_64 : f32 to vector<2x32xf32>
    %55 = arith.addf %54, %53 : vector<2x32xf32>
    %56 = arith.divf %54, %55 : vector<2x32xf32>
    %57 = vector.extract_strided_slice %38 {offsets = [0, 0, 0], sizes = [1, 2, 32], strides = [1, 1, 1]} : vector<8x2x32xf32> to vector<1x2x32xf32>
    %58 = vector.shape_cast %57 : vector<1x2x32xf32> to vector<2x32xf32>
    %59 = arith.addf %58, %45 : vector<2x32xf32>
    %60 = arith.negf %59 : vector<2x32xf32>
    %61 = math.exp %60 : vector<2x32xf32>
    %cst_65 = arith.constant 1.000000e+00 : f32
    %62 = vector.broadcast %cst_65 : f32 to vector<2x32xf32>
    %63 = arith.addf %62, %61 : vector<2x32xf32>
    %64 = arith.divf %62, %63 : vector<2x32xf32>
    %65 = vector.extract_strided_slice %42 {offsets = [0, 0, 0], sizes = [1, 2, 32], strides = [1, 1, 1]} : vector<8x2x32xf32> to vector<1x2x32xf32>
    %66 = vector.shape_cast %65 : vector<1x2x32xf32> to vector<2x32xf32>
    %67 = arith.mulf %56, %48 : vector<2x32xf32>
    %68 = arith.addf %66, %67 : vector<2x32xf32>
    %69 = math.tanh %68 : vector<2x32xf32>
    %cst_66 = arith.constant 1.000000e+00 : f32
    %70 = vector.broadcast %cst_66 : f32 to vector<2x32xf32>
    %71 = arith.subf %70, %64 : vector<2x32xf32>
    %72 = arith.mulf %71, %69 : vector<2x32xf32>
    %73 = arith.mulf %64, %43 : vector<2x32xf32>
    %74 = arith.addf %72, %73 : vector<2x32xf32>
    %cst_67 = arith.constant dense<0.000000e+00> : vector<2x32xf32>
    %75 = tpu.matmul %74, %10, %cst_67 {dimension_numbers = #tpu.dot_dimension_numbers<[1], [0], [0], [1], [0, 0, 1, 1], [], []>} : vector<2x32xf32>, vector<32x32xf32>, vector<2x32xf32> -> vector<2x32xf32>
    %cst_68 = arith.constant dense<0.000000e+00> : vector<2x32xf32>
    %76 = tpu.matmul %74, %12, %cst_68 {dimension_numbers = #tpu.dot_dimension_numbers<[1], [0], [0], [1], [0, 0, 1, 1], [], []>} : vector<2x32xf32>, vector<32x32xf32>, vector<2x32xf32> -> vector<2x32xf32>
    %cst_69 = arith.constant dense<0.000000e+00> : vector<2x32xf32>
    %77 = tpu.matmul %74, %14, %cst_69 {dimension_numbers = #tpu.dot_dimension_numbers<[1], [0], [0], [1], [0, 0, 1, 1], [], []>} : vector<2x32xf32>, vector<32x32xf32>, vector<2x32xf32> -> vector<2x32xf32>
    %78 = vector.broadcast %26 : vector<1x32xf32> to vector<2x32xf32>
    %79 = arith.addf %77, %78 : vector<2x32xf32>
    %80 = vector.extract_strided_slice %32 {offsets = [1, 0, 0], sizes = [1, 2, 32], strides = [1, 1, 1]} : vector<8x2x32xf32> to vector<1x2x32xf32>
    %81 = vector.shape_cast %80 : vector<1x2x32xf32> to vector<2x32xf32>
    %82 = arith.addf %81, %75 : vector<2x32xf32>
    %83 = arith.negf %82 : vector<2x32xf32>
    %84 = math.exp %83 : vector<2x32xf32>
    %cst_70 = arith.constant 1.000000e+00 : f32
    %85 = vector.broadcast %cst_70 : f32 to vector<2x32xf32>
    %86 = arith.addf %85, %84 : vector<2x32xf32>
    %87 = arith.divf %85, %86 : vector<2x32xf32>
    %88 = vector.extract_strided_slice %38 {offsets = [1, 0, 0], sizes = [1, 2, 32], strides = [1, 1, 1]} : vector<8x2x32xf32> to vector<1x2x32xf32>
    %89 = vector.shape_cast %88 : vector<1x2x32xf32> to vector<2x32xf32>
    %90 = arith.addf %89, %76 : vector<2x32xf32>
    %91 = arith.negf %90 : vector<2x32xf32>
    %92 = math.exp %91 : vector<2x32xf32>
    %cst_71 = arith.constant 1.000000e+00 : f32
    %93 = vector.broadcast %cst_71 : f32 to vector<2x32xf32>
    %94 = arith.addf %93, %92 : vector<2x32xf32>
    %95 = arith.divf %93, %94 : vector<2x32xf32>
    %96 = vector.extract_strided_slice %42 {offsets = [1, 0, 0], sizes = [1, 2, 32], strides = [1, 1, 1]} : vector<8x2x32xf32> to vector<1x2x32xf32>
    %97 = vector.shape_cast %96 : vector<1x2x32xf32> to vector<2x32xf32>
    %98 = arith.mulf %87, %79 : vector<2x32xf32>
    %99 = arith.addf %97, %98 : vector<2x32xf32>
    %100 = math.tanh %99 : vector<2x32xf32>
    %cst_72 = arith.constant 1.000000e+00 : f32
    %101 = vector.broadcast %cst_72 : f32 to vector<2x32xf32>
    %102 = arith.subf %101, %95 : vector<2x32xf32>
    %103 = arith.mulf %102, %100 : vector<2x32xf32>
    %104 = arith.mulf %95, %74 : vector<2x32xf32>
    %105 = arith.addf %103, %104 : vector<2x32xf32>
    %cst_73 = arith.constant dense<0.000000e+00> : vector<2x32xf32>
    %106 = tpu.matmul %105, %10, %cst_73 {dimension_numbers = #tpu.dot_dimension_numbers<[1], [0], [0], [1], [0, 0, 1, 1], [], []>} : vector<2x32xf32>, vector<32x32xf32>, vector<2x32xf32> -> vector<2x32xf32>
    %cst_74 = arith.constant dense<0.000000e+00> : vector<2x32xf32>
    %107 = tpu.matmul %105, %12, %cst_74 {dimension_numbers = #tpu.dot_dimension_numbers<[1], [0], [0], [1], [0, 0, 1, 1], [], []>} : vector<2x32xf32>, vector<32x32xf32>, vector<2x32xf32> -> vector<2x32xf32>
    %cst_75 = arith.constant dense<0.000000e+00> : vector<2x32xf32>
    %108 = tpu.matmul %105, %14, %cst_75 {dimension_numbers = #tpu.dot_dimension_numbers<[1], [0], [0], [1], [0, 0, 1, 1], [], []>} : vector<2x32xf32>, vector<32x32xf32>, vector<2x32xf32> -> vector<2x32xf32>
    %109 = vector.broadcast %26 : vector<1x32xf32> to vector<2x32xf32>
    %110 = arith.addf %108, %109 : vector<2x32xf32>
    %111 = vector.extract_strided_slice %32 {offsets = [2, 0, 0], sizes = [1, 2, 32], strides = [1, 1, 1]} : vector<8x2x32xf32> to vector<1x2x32xf32>
    %112 = vector.shape_cast %111 : vector<1x2x32xf32> to vector<2x32xf32>
    %113 = arith.addf %112, %106 : vector<2x32xf32>
    %114 = arith.negf %113 : vector<2x32xf32>
    %115 = math.exp %114 : vector<2x32xf32>
    %cst_76 = arith.constant 1.000000e+00 : f32
    %116 = vector.broadcast %cst_76 : f32 to vector<2x32xf32>
    %117 = arith.addf %116, %115 : vector<2x32xf32>
    %118 = arith.divf %116, %117 : vector<2x32xf32>
    %119 = vector.extract_strided_slice %38 {offsets = [2, 0, 0], sizes = [1, 2, 32], strides = [1, 1, 1]} : vector<8x2x32xf32> to vector<1x2x32xf32>
    %120 = vector.shape_cast %119 : vector<1x2x32xf32> to vector<2x32xf32>
    %121 = arith.addf %120, %107 : vector<2x32xf32>
    %122 = arith.negf %121 : vector<2x32xf32>
    %123 = math.exp %122 : vector<2x32xf32>
    %cst_77 = arith.constant 1.000000e+00 : f32
    %124 = vector.broadcast %cst_77 : f32 to vector<2x32xf32>
    %125 = arith.addf %124, %123 : vector<2x32xf32>
    %126 = arith.divf %124, %125 : vector<2x32xf32>
    %127 = vector.extract_strided_slice %42 {offsets = [2, 0, 0], sizes = [1, 2, 32], strides = [1, 1, 1]} : vector<8x2x32xf32> to vector<1x2x32xf32>
    %128 = vector.shape_cast %127 : vector<1x2x32xf32> to vector<2x32xf32>
    %129 = arith.mulf %118, %110 : vector<2x32xf32>
    %130 = arith.addf %128, %129 : vector<2x32xf32>
    %131 = math.tanh %130 : vector<2x32xf32>
    %cst_78 = arith.constant 1.000000e+00 : f32
    %132 = vector.broadcast %cst_78 : f32 to vector<2x32xf32>
    %133 = arith.subf %132, %126 : vector<2x32xf32>
    %134 = arith.mulf %133, %131 : vector<2x32xf32>
    %135 = arith.mulf %126, %105 : vector<2x32xf32>
    %136 = arith.addf %134, %135 : vector<2x32xf32>
    %cst_79 = arith.constant dense<0.000000e+00> : vector<2x32xf32>
    %137 = tpu.matmul %136, %10, %cst_79 {dimension_numbers = #tpu.dot_dimension_numbers<[1], [0], [0], [1], [0, 0, 1, 1], [], []>} : vector<2x32xf32>, vector<32x32xf32>, vector<2x32xf32> -> vector<2x32xf32>
    %cst_80 = arith.constant dense<0.000000e+00> : vector<2x32xf32>
    %138 = tpu.matmul %136, %12, %cst_80 {dimension_numbers = #tpu.dot_dimension_numbers<[1], [0], [0], [1], [0, 0, 1, 1], [], []>} : vector<2x32xf32>, vector<32x32xf32>, vector<2x32xf32> -> vector<2x32xf32>
    %cst_81 = arith.constant dense<0.000000e+00> : vector<2x32xf32>
    %139 = tpu.matmul %136, %14, %cst_81 {dimension_numbers = #tpu.dot_dimension_numbers<[1], [0], [0], [1], [0, 0, 1, 1], [], []>} : vector<2x32xf32>, vector<32x32xf32>, vector<2x32xf32> -> vector<2x32xf32>
    %140 = vector.broadcast %26 : vector<1x32xf32> to vector<2x32xf32>
    %141 = arith.addf %139, %140 : vector<2x32xf32>
    %142 = vector.extract_strided_slice %32 {offsets = [3, 0, 0], sizes = [1, 2, 32], strides = [1, 1, 1]} : vector<8x2x32xf32> to vector<1x2x32xf32>
    %143 = vector.shape_cast %142 : vector<1x2x32xf32> to vector<2x32xf32>
    %144 = arith.addf %143, %137 : vector<2x32xf32>
    %145 = arith.negf %144 : vector<2x32xf32>
    %146 = math.exp %145 : vector<2x32xf32>
    %cst_82 = arith.constant 1.000000e+00 : f32
    %147 = vector.broadcast %cst_82 : f32 to vector<2x32xf32>
    %148 = arith.addf %147, %146 : vector<2x32xf32>
    %149 = arith.divf %147, %148 : vector<2x32xf32>
    %150 = vector.extract_strided_slice %38 {offsets = [3, 0, 0], sizes = [1, 2, 32], strides = [1, 1, 1]} : vector<8x2x32xf32> to vector<1x2x32xf32>
    %151 = vector.shape_cast %150 : vector<1x2x32xf32> to vector<2x32xf32>
    %152 = arith.addf %151, %138 : vector<2x32xf32>
    %153 = arith.negf %152 : vector<2x32xf32>
    %154 = math.exp %153 : vector<2x32xf32>
    %cst_83 = arith.constant 1.000000e+00 : f32
    %155 = vector.broadcast %cst_83 : f32 to vector<2x32xf32>
    %156 = arith.addf %155, %154 : vector<2x32xf32>
    %157 = arith.divf %155, %156 : vector<2x32xf32>
    %158 = vector.extract_strided_slice %42 {offsets = [3, 0, 0], sizes = [1, 2, 32], strides = [1, 1, 1]} : vector<8x2x32xf32> to vector<1x2x32xf32>
    %159 = vector.shape_cast %158 : vector<1x2x32xf32> to vector<2x32xf32>
    %160 = arith.mulf %149, %141 : vector<2x32xf32>
    %161 = arith.addf %159, %160 : vector<2x32xf32>
    %162 = math.tanh %161 : vector<2x32xf32>
    %cst_84 = arith.constant 1.000000e+00 : f32
    %163 = vector.broadcast %cst_84 : f32 to vector<2x32xf32>
    %164 = arith.subf %163, %157 : vector<2x32xf32>
    %165 = arith.mulf %164, %162 : vector<2x32xf32>
    %166 = arith.mulf %157, %136 : vector<2x32xf32>
    %167 = arith.addf %165, %166 : vector<2x32xf32>
    %cst_85 = arith.constant dense<0.000000e+00> : vector<2x32xf32>
    %168 = tpu.matmul %167, %10, %cst_85 {dimension_numbers = #tpu.dot_dimension_numbers<[1], [0], [0], [1], [0, 0, 1, 1], [], []>} : vector<2x32xf32>, vector<32x32xf32>, vector<2x32xf32> -> vector<2x32xf32>
    %cst_86 = arith.constant dense<0.000000e+00> : vector<2x32xf32>
    %169 = tpu.matmul %167, %12, %cst_86 {dimension_numbers = #tpu.dot_dimension_numbers<[1], [0], [0], [1], [0, 0, 1, 1], [], []>} : vector<2x32xf32>, vector<32x32xf32>, vector<2x32xf32> -> vector<2x32xf32>
    %cst_87 = arith.constant dense<0.000000e+00> : vector<2x32xf32>
    %170 = tpu.matmul %167, %14, %cst_87 {dimension_numbers = #tpu.dot_dimension_numbers<[1], [0], [0], [1], [0, 0, 1, 1], [], []>} : vector<2x32xf32>, vector<32x32xf32>, vector<2x32xf32> -> vector<2x32xf32>
    %171 = vector.broadcast %26 : vector<1x32xf32> to vector<2x32xf32>
    %172 = arith.addf %170, %171 : vector<2x32xf32>
    %173 = vector.extract_strided_slice %32 {offsets = [4, 0, 0], sizes = [1, 2, 32], strides = [1, 1, 1]} : vector<8x2x32xf32> to vector<1x2x32xf32>
    %174 = vector.shape_cast %173 : vector<1x2x32xf32> to vector<2x32xf32>
    %175 = arith.addf %174, %168 : vector<2x32xf32>
    %176 = arith.negf %175 : vector<2x32xf32>
    %177 = math.exp %176 : vector<2x32xf32>
    %cst_88 = arith.constant 1.000000e+00 : f32
    %178 = vector.broadcast %cst_88 : f32 to vector<2x32xf32>
    %179 = arith.addf %178, %177 : vector<2x32xf32>
    %180 = arith.divf %178, %179 : vector<2x32xf32>
    %181 = vector.extract_strided_slice %38 {offsets = [4, 0, 0], sizes = [1, 2, 32], strides = [1, 1, 1]} : vector<8x2x32xf32> to vector<1x2x32xf32>
    %182 = vector.shape_cast %181 : vector<1x2x32xf32> to vector<2x32xf32>
    %183 = arith.addf %182, %169 : vector<2x32xf32>
    %184 = arith.negf %183 : vector<2x32xf32>
    %185 = math.exp %184 : vector<2x32xf32>
    %cst_89 = arith.constant 1.000000e+00 : f32
    %186 = vector.broadcast %cst_89 : f32 to vector<2x32xf32>
    %187 = arith.addf %186, %185 : vector<2x32xf32>
    %188 = arith.divf %186, %187 : vector<2x32xf32>
    %189 = vector.extract_strided_slice %42 {offsets = [4, 0, 0], sizes = [1, 2, 32], strides = [1, 1, 1]} : vector<8x2x32xf32> to vector<1x2x32xf32>
    %190 = vector.shape_cast %189 : vector<1x2x32xf32> to vector<2x32xf32>
    %191 = arith.mulf %180, %172 : vector<2x32xf32>
    %192 = arith.addf %190, %191 : vector<2x32xf32>
    %193 = math.tanh %192 : vector<2x32xf32>
    %cst_90 = arith.constant 1.000000e+00 : f32
    %194 = vector.broadcast %cst_90 : f32 to vector<2x32xf32>
    %195 = arith.subf %194, %188 : vector<2x32xf32>
    %196 = arith.mulf %195, %193 : vector<2x32xf32>
    %197 = arith.mulf %188, %167 : vector<2x32xf32>
    %198 = arith.addf %196, %197 : vector<2x32xf32>
    %cst_91 = arith.constant dense<0.000000e+00> : vector<2x32xf32>
    %199 = tpu.matmul %198, %10, %cst_91 {dimension_numbers = #tpu.dot_dimension_numbers<[1], [0], [0], [1], [0, 0, 1, 1], [], []>} : vector<2x32xf32>, vector<32x32xf32>, vector<2x32xf32> -> vector<2x32xf32>
    %cst_92 = arith.constant dense<0.000000e+00> : vector<2x32xf32>
    %200 = tpu.matmul %198, %12, %cst_92 {dimension_numbers = #tpu.dot_dimension_numbers<[1], [0], [0], [1], [0, 0, 1, 1], [], []>} : vector<2x32xf32>, vector<32x32xf32>, vector<2x32xf32> -> vector<2x32xf32>
    %cst_93 = arith.constant dense<0.000000e+00> : vector<2x32xf32>
    %201 = tpu.matmul %198, %14, %cst_93 {dimension_numbers = #tpu.dot_dimension_numbers<[1], [0], [0], [1], [0, 0, 1, 1], [], []>} : vector<2x32xf32>, vector<32x32xf32>, vector<2x32xf32> -> vector<2x32xf32>
    %202 = vector.broadcast %26 : vector<1x32xf32> to vector<2x32xf32>
    %203 = arith.addf %201, %202 : vector<2x32xf32>
    %204 = vector.extract_strided_slice %32 {offsets = [5, 0, 0], sizes = [1, 2, 32], strides = [1, 1, 1]} : vector<8x2x32xf32> to vector<1x2x32xf32>
    %205 = vector.shape_cast %204 : vector<1x2x32xf32> to vector<2x32xf32>
    %206 = arith.addf %205, %199 : vector<2x32xf32>
    %207 = arith.negf %206 : vector<2x32xf32>
    %208 = math.exp %207 : vector<2x32xf32>
    %cst_94 = arith.constant 1.000000e+00 : f32
    %209 = vector.broadcast %cst_94 : f32 to vector<2x32xf32>
    %210 = arith.addf %209, %208 : vector<2x32xf32>
    %211 = arith.divf %209, %210 : vector<2x32xf32>
    %212 = vector.extract_strided_slice %38 {offsets = [5, 0, 0], sizes = [1, 2, 32], strides = [1, 1, 1]} : vector<8x2x32xf32> to vector<1x2x32xf32>
    %213 = vector.shape_cast %212 : vector<1x2x32xf32> to vector<2x32xf32>
    %214 = arith.addf %213, %200 : vector<2x32xf32>
    %215 = arith.negf %214 : vector<2x32xf32>
    %216 = math.exp %215 : vector<2x32xf32>
    %cst_95 = arith.constant 1.000000e+00 : f32
    %217 = vector.broadcast %cst_95 : f32 to vector<2x32xf32>
    %218 = arith.addf %217, %216 : vector<2x32xf32>
    %219 = arith.divf %217, %218 : vector<2x32xf32>
    %220 = vector.extract_strided_slice %42 {offsets = [5, 0, 0], sizes = [1, 2, 32], strides = [1, 1, 1]} : vector<8x2x32xf32> to vector<1x2x32xf32>
    %221 = vector.shape_cast %220 : vector<1x2x32xf32> to vector<2x32xf32>
    %222 = arith.mulf %211, %203 : vector<2x32xf32>
    %223 = arith.addf %221, %222 : vector<2x32xf32>
    %224 = math.tanh %223 : vector<2x32xf32>
    %cst_96 = arith.constant 1.000000e+00 : f32
    %225 = vector.broadcast %cst_96 : f32 to vector<2x32xf32>
    %226 = arith.subf %225, %219 : vector<2x32xf32>
    %227 = arith.mulf %226, %224 : vector<2x32xf32>
    %228 = arith.mulf %219, %198 : vector<2x32xf32>
    %229 = arith.addf %227, %228 : vector<2x32xf32>
    %cst_97 = arith.constant dense<0.000000e+00> : vector<2x32xf32>
    %230 = tpu.matmul %229, %10, %cst_97 {dimension_numbers = #tpu.dot_dimension_numbers<[1], [0], [0], [1], [0, 0, 1, 1], [], []>} : vector<2x32xf32>, vector<32x32xf32>, vector<2x32xf32> -> vector<2x32xf32>
    %cst_98 = arith.constant dense<0.000000e+00> : vector<2x32xf32>
    %231 = tpu.matmul %229, %12, %cst_98 {dimension_numbers = #tpu.dot_dimension_numbers<[1], [0], [0], [1], [0, 0, 1, 1], [], []>} : vector<2x32xf32>, vector<32x32xf32>, vector<2x32xf32> -> vector<2x32xf32>
    %cst_99 = arith.constant dense<0.000000e+00> : vector<2x32xf32>
    %232 = tpu.matmul %229, %14, %cst_99 {dimension_numbers = #tpu.dot_dimension_numbers<[1], [0], [0], [1], [0, 0, 1, 1], [], []>} : vector<2x32xf32>, vector<32x32xf32>, vector<2x32xf32> -> vector<2x32xf32>
    %233 = vector.broadcast %26 : vector<1x32xf32> to vector<2x32xf32>
    %234 = arith.addf %232, %233 : vector<2x32xf32>
    %235 = vector.extract_strided_slice %32 {offsets = [6, 0, 0], sizes = [1, 2, 32], strides = [1, 1, 1]} : vector<8x2x32xf32> to vector<1x2x32xf32>
    %236 = vector.shape_cast %235 : vector<1x2x32xf32> to vector<2x32xf32>
    %237 = arith.addf %236, %230 : vector<2x32xf32>
    %238 = arith.negf %237 : vector<2x32xf32>
    %239 = math.exp %238 : vector<2x32xf32>
    %cst_100 = arith.constant 1.000000e+00 : f32
    %240 = vector.broadcast %cst_100 : f32 to vector<2x32xf32>
    %241 = arith.addf %240, %239 : vector<2x32xf32>
    %242 = arith.divf %240, %241 : vector<2x32xf32>
    %243 = vector.extract_strided_slice %38 {offsets = [6, 0, 0], sizes = [1, 2, 32], strides = [1, 1, 1]} : vector<8x2x32xf32> to vector<1x2x32xf32>
    %244 = vector.shape_cast %243 : vector<1x2x32xf32> to vector<2x32xf32>
    %245 = arith.addf %244, %231 : vector<2x32xf32>
    %246 = arith.negf %245 : vector<2x32xf32>
    %247 = math.exp %246 : vector<2x32xf32>
    %cst_101 = arith.constant 1.000000e+00 : f32
    %248 = vector.broadcast %cst_101 : f32 to vector<2x32xf32>
    %249 = arith.addf %248, %247 : vector<2x32xf32>
    %250 = arith.divf %248, %249 : vector<2x32xf32>
    %251 = vector.extract_strided_slice %42 {offsets = [6, 0, 0], sizes = [1, 2, 32], strides = [1, 1, 1]} : vector<8x2x32xf32> to vector<1x2x32xf32>
    %252 = vector.shape_cast %251 : vector<1x2x32xf32> to vector<2x32xf32>
    %253 = arith.mulf %242, %234 : vector<2x32xf32>
    %254 = arith.addf %252, %253 : vector<2x32xf32>
    %255 = math.tanh %254 : vector<2x32xf32>
    %cst_102 = arith.constant 1.000000e+00 : f32
    %256 = vector.broadcast %cst_102 : f32 to vector<2x32xf32>
    %257 = arith.subf %256, %250 : vector<2x32xf32>
    %258 = arith.mulf %257, %255 : vector<2x32xf32>
    %259 = arith.mulf %250, %229 : vector<2x32xf32>
    %260 = arith.addf %258, %259 : vector<2x32xf32>
    %cst_103 = arith.constant dense<0.000000e+00> : vector<2x32xf32>
    %261 = tpu.matmul %260, %10, %cst_103 {dimension_numbers = #tpu.dot_dimension_numbers<[1], [0], [0], [1], [0, 0, 1, 1], [], []>} : vector<2x32xf32>, vector<32x32xf32>, vector<2x32xf32> -> vector<2x32xf32>
    %cst_104 = arith.constant dense<0.000000e+00> : vector<2x32xf32>
    %262 = tpu.matmul %260, %12, %cst_104 {dimension_numbers = #tpu.dot_dimension_numbers<[1], [0], [0], [1], [0, 0, 1, 1], [], []>} : vector<2x32xf32>, vector<32x32xf32>, vector<2x32xf32> -> vector<2x32xf32>
    %cst_105 = arith.constant dense<0.000000e+00> : vector<2x32xf32>
    %263 = tpu.matmul %260, %14, %cst_105 {dimension_numbers = #tpu.dot_dimension_numbers<[1], [0], [0], [1], [0, 0, 1, 1], [], []>} : vector<2x32xf32>, vector<32x32xf32>, vector<2x32xf32> -> vector<2x32xf32>
    %264 = vector.broadcast %26 : vector<1x32xf32> to vector<2x32xf32>
    %265 = arith.addf %263, %264 : vector<2x32xf32>
    %266 = vector.extract_strided_slice %32 {offsets = [7, 0, 0], sizes = [1, 2, 32], strides = [1, 1, 1]} : vector<8x2x32xf32> to vector<1x2x32xf32>
    %267 = vector.shape_cast %266 : vector<1x2x32xf32> to vector<2x32xf32>
    %268 = arith.addf %267, %261 : vector<2x32xf32>
    %269 = arith.negf %268 : vector<2x32xf32>
    %270 = math.exp %269 : vector<2x32xf32>
    %cst_106 = arith.constant 1.000000e+00 : f32
    %271 = vector.broadcast %cst_106 : f32 to vector<2x32xf32>
    %272 = arith.addf %271, %270 : vector<2x32xf32>
    %273 = arith.divf %271, %272 : vector<2x32xf32>
    %274 = vector.extract_strided_slice %38 {offsets = [7, 0, 0], sizes = [1, 2, 32], strides = [1, 1, 1]} : vector<8x2x32xf32> to vector<1x2x32xf32>
    %275 = vector.shape_cast %274 : vector<1x2x32xf32> to vector<2x32xf32>
    %276 = arith.addf %275, %262 : vector<2x32xf32>
    %277 = arith.negf %276 : vector<2x32xf32>
    %278 = math.exp %277 : vector<2x32xf32>
    %cst_107 = arith.constant 1.000000e+00 : f32
    %279 = vector.broadcast %cst_107 : f32 to vector<2x32xf32>
    %280 = arith.addf %279, %278 : vector<2x32xf32>
    %281 = arith.divf %279, %280 : vector<2x32xf32>
    %282 = vector.extract_strided_slice %42 {offsets = [7, 0, 0], sizes = [1, 2, 32], strides = [1, 1, 1]} : vector<8x2x32xf32> to vector<1x2x32xf32>
    %283 = vector.shape_cast %282 : vector<1x2x32xf32> to vector<2x32xf32>
    %284 = arith.mulf %273, %265 : vector<2x32xf32>
    %285 = arith.addf %283, %284 : vector<2x32xf32>
    %286 = math.tanh %285 : vector<2x32xf32>
    %cst_108 = arith.constant 1.000000e+00 : f32
    %287 = vector.broadcast %cst_108 : f32 to vector<2x32xf32>
    %288 = arith.subf %287, %281 : vector<2x32xf32>
    %289 = arith.mulf %288, %286 : vector<2x32xf32>
    %290 = arith.mulf %281, %260 : vector<2x32xf32>
    %291 = arith.addf %289, %290 : vector<2x32xf32>
    %c0_109 = arith.constant 0 : index
    %c0_110 = arith.constant 0 : index
    %c0_111 = arith.constant 0 : index
    %c0_112 = arith.constant 0 : index
    %292 = vector.load %arg7[%c0_109, %c0_110, %c0_111, %c0_112] : memref<1x3x2x32xf32, #tpu.memory_space<vmem>>, vector<1x1x2x32xf32>
    %293 = vector.shape_cast %292 : vector<1x1x2x32xf32> to vector<2x32xf32>
    %294 = vector.shape_cast %291 : vector<2x32xf32> to vector<1x1x2x32xf32>
    tpu.vector_store %arg7[%c0_109, %c0_110, %c0_111, %c0_112], %294 {strides = array<i32>} : memref<1x3x2x32xf32, #tpu.memory_space<vmem>>, vector<1x1x2x32xf32>,
    %295 = tpu.concatenate %74, %105, %136, %167, %198, %229, %260, %291 in 0 : vector<2x32xf32>, vector<2x32xf32>, vector<2x32xf32>, vector<2x32xf32>, vector<2x32xf32>, vector<2x32xf32>, vector<2x32xf32>, vector<2x32xf32> -> vector<16x32xf32>
    %c0_113 = arith.constant 0 : index
    %c0_114 = arith.constant 0 : index
    %c0_115 = arith.constant 0 : index
    %c0_116 = arith.constant 0 : index
    %c0_117 = arith.constant 0 : index
    %296 = vector.load %arg3[%c0_113, %c0_114, %c0_115, %c0_116, %c0_117] : memref<1x2x3x32x32xf32, #tpu.memory_space<vmem>>, vector<1x1x1x32x32xf32>
    %297 = vector.shape_cast %296 : vector<1x1x1x32x32xf32> to vector<32x32xf32>
    %c0_118 = arith.constant 0 : index
    %c0_119 = arith.constant 0 : index
    %c1_120 = arith.constant 1 : index
    %c0_121 = arith.constant 0 : index
    %c0_122 = arith.constant 0 : index
    %298 = vector.load %arg3[%c0_118, %c0_119, %c1_120, %c0_121, %c0_122] : memref<1x2x3x32x32xf32, #tpu.memory_space<vmem>>, vector<1x1x1x32x32xf32>
    %299 = vector.shape_cast %298 : vector<1x1x1x32x32xf32> to vector<32x32xf32>
    %c0_123 = arith.constant 0 : index
    %c0_124 = arith.constant 0 : index
    %c2_125 = arith.constant 2 : index
    %c0_126 = arith.constant 0 : index
    %c0_127 = arith.constant 0 : index
    %300 = vector.load %arg3[%c0_123, %c0_124, %c2_125, %c0_126, %c0_127] : memref<1x2x3x32x32xf32, #tpu.memory_space<vmem>>, vector<1x1x1x32x32xf32>
    %301 = vector.shape_cast %300 : vector<1x1x1x32x32xf32> to vector<32x32xf32>
    %c0_128 = arith.constant 0 : index
    %c1_129 = arith.constant 1 : index
    %c0_130 = arith.constant 0 : index
    %c0_131 = arith.constant 0 : index
    %c0_132 = arith.constant 0 : index
    %302 = vector.load %arg4[%c0_128, %c1_129, %c0_130, %c0_131, %c0_132] : memref<1x3x3x32x32xf32, #tpu.memory_space<vmem>>, vector<1x1x1x32x32xf32>
    %303 = vector.shape_cast %302 : vector<1x1x1x32x32xf32> to vector<32x32xf32>
    %c0_133 = arith.constant 0 : index
    %c1_134 = arith.constant 1 : index
    %c1_135 = arith.constant 1 : index
    %c0_136 = arith.constant 0 : index
    %c0_137 = arith.constant 0 : index
    %304 = vector.load %arg4[%c0_133, %c1_134, %c1_135, %c0_136, %c0_137] : memref<1x3x3x32x32xf32, #tpu.memory_space<vmem>>, vector<1x1x1x32x32xf32>
    %305 = vector.shape_cast %304 : vector<1x1x1x32x32xf32> to vector<32x32xf32>
    %c0_138 = arith.constant 0 : index
    %c1_139 = arith.constant 1 : index
    %c2_140 = arith.constant 2 : index
    %c0_141 = arith.constant 0 : index
    %c0_142 = arith.constant 0 : index
    %306 = vector.load %arg4[%c0_138, %c1_139, %c2_140, %c0_141, %c0_142] : memref<1x3x3x32x32xf32, #tpu.memory_space<vmem>>, vector<1x1x1x32x32xf32>
    %307 = vector.shape_cast %306 : vector<1x1x1x32x32xf32> to vector<32x32xf32>
    %c0_143 = arith.constant 0 : index
    %c1_144 = arith.constant 1 : index
    %c0_145 = arith.constant 0 : index
    %c0_146 = arith.constant 0 : index
    %c0_147 = arith.constant 0 : index
    %308 = vector.load %arg5[%c0_143, %c1_144, %c0_145, %c0_146, %c0_147] : memref<1x3x3x1x32xf32, #tpu.memory_space<vmem>>, vector<1x1x1x1x32xf32>
    %309 = vector.shape_cast %308 : vector<1x1x1x1x32xf32> to vector<1x32xf32>
    %c0_148 = arith.constant 0 : index
    %c1_149 = arith.constant 1 : index
    %c1_150 = arith.constant 1 : index
    %c0_151 = arith.constant 0 : index
    %c0_152 = arith.constant 0 : index
    %310 = vector.load %arg5[%c0_148, %c1_149, %c1_150, %c0_151, %c0_152] : memref<1x3x3x1x32xf32, #tpu.memory_space<vmem>>, vector<1x1x1x1x32xf32>
    %311 = vector.shape_cast %310 : vector<1x1x1x1x32xf32> to vector<1x32xf32>
    %c0_153 = arith.constant 0 : index
    %c1_154 = arith.constant 1 : index
    %c2_155 = arith.constant 2 : index
    %c0_156 = arith.constant 0 : index
    %c0_157 = arith.constant 0 : index
    %312 = vector.load %arg5[%c0_153, %c1_154, %c2_155, %c0_156, %c0_157] : memref<1x3x3x1x32xf32, #tpu.memory_space<vmem>>, vector<1x1x1x1x32xf32>
    %313 = vector.shape_cast %312 : vector<1x1x1x1x32xf32> to vector<1x32xf32>
    %c0_158 = arith.constant 0 : index
    %c1_159 = arith.constant 1 : index
    %c0_160 = arith.constant 0 : index
    %c0_161 = arith.constant 0 : index
    %c0_162 = arith.constant 0 : index
    %314 = vector.load %arg6[%c0_158, %c1_159, %c0_160, %c0_161, %c0_162] : memref<1x3x3x1x32xf32, #tpu.memory_space<vmem>>, vector<1x1x1x1x32xf32>
    %315 = vector.shape_cast %314 : vector<1x1x1x1x32xf32> to vector<1x32xf32>
    %c0_163 = arith.constant 0 : index
    %c1_164 = arith.constant 1 : index
    %c1_165 = arith.constant 1 : index
    %c0_166 = arith.constant 0 : index
    %c0_167 = arith.constant 0 : index
    %316 = vector.load %arg6[%c0_163, %c1_164, %c1_165, %c0_166, %c0_167] : memref<1x3x3x1x32xf32, #tpu.memory_space<vmem>>, vector<1x1x1x1x32xf32>
    %317 = vector.shape_cast %316 : vector<1x1x1x1x32xf32> to vector<1x32xf32>
    %c0_168 = arith.constant 0 : index
    %c1_169 = arith.constant 1 : index
    %c2_170 = arith.constant 2 : index
    %c0_171 = arith.constant 0 : index
    %c0_172 = arith.constant 0 : index
    %318 = vector.load %arg6[%c0_168, %c1_169, %c2_170, %c0_171, %c0_172] : memref<1x3x3x1x32xf32, #tpu.memory_space<vmem>>, vector<1x1x1x1x32xf32>
    %319 = vector.shape_cast %318 : vector<1x1x1x1x32xf32> to vector<1x32xf32>
    %cst_173 = arith.constant dense<0.000000e+00> : vector<16x32xf32>
    %320 = tpu.matmul %295, %297, %cst_173 {dimension_numbers = #tpu.dot_dimension_numbers<[1], [0], [0], [1], [0, 0, 1, 1], [], []>} : vector<16x32xf32>, vector<32x32xf32>, vector<16x32xf32> -> vector<16x32xf32>
    %321 = vector.broadcast %309 : vector<1x32xf32> to vector<16x32xf32>
    %322 = arith.addf %320, %321 : vector<16x32xf32>
    %323 = vector.broadcast %315 : vector<1x32xf32> to vector<16x32xf32>
    %324 = arith.addf %322, %323 : vector<16x32xf32>
    %325 = vector.shape_cast %324 : vector<16x32xf32> to vector<8x2x32xf32>
    %cst_174 = arith.constant dense<0.000000e+00> : vector<16x32xf32>
    %326 = tpu.matmul %295, %299, %cst_174 {dimension_numbers = #tpu.dot_dimension_numbers<[1], [0], [0], [1], [0, 0, 1, 1], [], []>} : vector<16x32xf32>, vector<32x32xf32>, vector<16x32xf32> -> vector<16x32xf32>
    %327 = vector.broadcast %311 : vector<1x32xf32> to vector<16x32xf32>
    %328 = arith.addf %326, %327 : vector<16x32xf32>
    %329 = vector.broadcast %317 : vector<1x32xf32> to vector<16x32xf32>
    %330 = arith.addf %328, %329 : vector<16x32xf32>
    %331 = vector.shape_cast %330 : vector<16x32xf32> to vector<8x2x32xf32>
    %cst_175 = arith.constant dense<0.000000e+00> : vector<16x32xf32>
    %332 = tpu.matmul %295, %301, %cst_175 {dimension_numbers = #tpu.dot_dimension_numbers<[1], [0], [0], [1], [0, 0, 1, 1], [], []>} : vector<16x32xf32>, vector<32x32xf32>, vector<16x32xf32> -> vector<16x32xf32>
    %333 = vector.broadcast %313 : vector<1x32xf32> to vector<16x32xf32>
    %334 = arith.addf %332, %333 : vector<16x32xf32>
    %335 = vector.shape_cast %334 : vector<16x32xf32> to vector<8x2x32xf32>
    %cst_176 = arith.constant 0.000000e+00 : f32
    %336 = vector.broadcast %cst_176 : f32 to vector<2x32xf32>
    %cst_177 = arith.constant dense<0.000000e+00> : vector<2x32xf32>
    %337 = tpu.matmul %336, %303, %cst_177 {dimension_numbers = #tpu.dot_dimension_numbers<[1], [0], [0], [1], [0, 0, 1, 1], [], []>} : vector<2x32xf32>, vector<32x32xf32>, vector<2x32xf32> -> vector<2x32xf32>
    %cst_178 = arith.constant dense<0.000000e+00> : vector<2x32xf32>
    %338 = tpu.matmul %336, %305, %cst_178 {dimension_numbers = #tpu.dot_dimension_numbers<[1], [0], [0], [1], [0, 0, 1, 1], [], []>} : vector<2x32xf32>, vector<32x32xf32>, vector<2x32xf32> -> vector<2x32xf32>
    %cst_179 = arith.constant dense<0.000000e+00> : vector<2x32xf32>
    %339 = tpu.matmul %336, %307, %cst_179 {dimension_numbers = #tpu.dot_dimension_numbers<[1], [0], [0], [1], [0, 0, 1, 1], [], []>} : vector<2x32xf32>, vector<32x32xf32>, vector<2x32xf32> -> vector<2x32xf32>
    %340 = vector.broadcast %319 : vector<1x32xf32> to vector<2x32xf32>
    %341 = arith.addf %339, %340 : vector<2x32xf32>
    %342 = vector.extract_strided_slice %325 {offsets = [0, 0, 0], sizes = [1, 2, 32], strides = [1, 1, 1]} : vector<8x2x32xf32> to vector<1x2x32xf32>
    %343 = vector.shape_cast %342 : vector<1x2x32xf32> to vector<2x32xf32>
    %344 = arith.addf %343, %337 : vector<2x32xf32>
    %345 = arith.negf %344 : vector<2x32xf32>
    %346 = math.exp %345 : vector<2x32xf32>
    %cst_180 = arith.constant 1.000000e+00 : f32
    %347 = vector.broadcast %cst_180 : f32 to vector<2x32xf32>
    %348 = arith.addf %347, %346 : vector<2x32xf32>
    %349 = arith.divf %347, %348 : vector<2x32xf32>
    %350 = vector.extract_strided_slice %331 {offsets = [0, 0, 0], sizes = [1, 2, 32], strides = [1, 1, 1]} : vector<8x2x32xf32> to vector<1x2x32xf32>
    %351 = vector.shape_cast %350 : vector<1x2x32xf32> to vector<2x32xf32>
    %352 = arith.addf %351, %338 : vector<2x32xf32>
    %353 = arith.negf %352 : vector<2x32xf32>
    %354 = math.exp %353 : vector<2x32xf32>
    %cst_181 = arith.constant 1.000000e+00 : f32
    %355 = vector.broadcast %cst_181 : f32 to vector<2x32xf32>
    %356 = arith.addf %355, %354 : vector<2x32xf32>
    %357 = arith.divf %355, %356 : vector<2x32xf32>
    %358 = vector.extract_strided_slice %335 {offsets = [0, 0, 0], sizes = [1, 2, 32], strides = [1, 1, 1]} : vector<8x2x32xf32> to vector<1x2x32xf32>
    %359 = vector.shape_cast %358 : vector<1x2x32xf32> to vector<2x32xf32>
    %360 = arith.mulf %349, %341 : vector<2x32xf32>
    %361 = arith.addf %359, %360 : vector<2x32xf32>
    %362 = math.tanh %361 : vector<2x32xf32>
    %cst_182 = arith.constant 1.000000e+00 : f32
    %363 = vector.broadcast %cst_182 : f32 to vector<2x32xf32>
    %364 = arith.subf %363, %357 : vector<2x32xf32>
    %365 = arith.mulf %364, %362 : vector<2x32xf32>
    %366 = arith.mulf %357, %336 : vector<2x32xf32>
    %367 = arith.addf %365, %366 : vector<2x32xf32>
    %cst_183 = arith.constant dense<0.000000e+00> : vector<2x32xf32>
    %368 = tpu.matmul %367, %303, %cst_183 {dimension_numbers = #tpu.dot_dimension_numbers<[1], [0], [0], [1], [0, 0, 1, 1], [], []>} : vector<2x32xf32>, vector<32x32xf32>, vector<2x32xf32> -> vector<2x32xf32>
    %cst_184 = arith.constant dense<0.000000e+00> : vector<2x32xf32>
    %369 = tpu.matmul %367, %305, %cst_184 {dimension_numbers = #tpu.dot_dimension_numbers<[1], [0], [0], [1], [0, 0, 1, 1], [], []>} : vector<2x32xf32>, vector<32x32xf32>, vector<2x32xf32> -> vector<2x32xf32>
    %cst_185 = arith.constant dense<0.000000e+00> : vector<2x32xf32>
    %370 = tpu.matmul %367, %307, %cst_185 {dimension_numbers = #tpu.dot_dimension_numbers<[1], [0], [0], [1], [0, 0, 1, 1], [], []>} : vector<2x32xf32>, vector<32x32xf32>, vector<2x32xf32> -> vector<2x32xf32>
    %371 = vector.broadcast %319 : vector<1x32xf32> to vector<2x32xf32>
    %372 = arith.addf %370, %371 : vector<2x32xf32>
    %373 = vector.extract_strided_slice %325 {offsets = [1, 0, 0], sizes = [1, 2, 32], strides = [1, 1, 1]} : vector<8x2x32xf32> to vector<1x2x32xf32>
    %374 = vector.shape_cast %373 : vector<1x2x32xf32> to vector<2x32xf32>
    %375 = arith.addf %374, %368 : vector<2x32xf32>
    %376 = arith.negf %375 : vector<2x32xf32>
    %377 = math.exp %376 : vector<2x32xf32>
    %cst_186 = arith.constant 1.000000e+00 : f32
    %378 = vector.broadcast %cst_186 : f32 to vector<2x32xf32>
    %379 = arith.addf %378, %377 : vector<2x32xf32>
    %380 = arith.divf %378, %379 : vector<2x32xf32>
    %381 = vector.extract_strided_slice %331 {offsets = [1, 0, 0], sizes = [1, 2, 32], strides = [1, 1, 1]} : vector<8x2x32xf32> to vector<1x2x32xf32>
    %382 = vector.shape_cast %381 : vector<1x2x32xf32> to vector<2x32xf32>
    %383 = arith.addf %382, %369 : vector<2x32xf32>
    %384 = arith.negf %383 : vector<2x32xf32>
    %385 = math.exp %384 : vector<2x32xf32>
    %cst_187 = arith.constant 1.000000e+00 : f32
    %386 = vector.broadcast %cst_187 : f32 to vector<2x32xf32>
    %387 = arith.addf %386, %385 : vector<2x32xf32>
    %388 = arith.divf %386, %387 : vector<2x32xf32>
    %389 = vector.extract_strided_slice %335 {offsets = [1, 0, 0], sizes = [1, 2, 32], strides = [1, 1, 1]} : vector<8x2x32xf32> to vector<1x2x32xf32>
    %390 = vector.shape_cast %389 : vector<1x2x32xf32> to vector<2x32xf32>
    %391 = arith.mulf %380, %372 : vector<2x32xf32>
    %392 = arith.addf %390, %391 : vector<2x32xf32>
    %393 = math.tanh %392 : vector<2x32xf32>
    %cst_188 = arith.constant 1.000000e+00 : f32
    %394 = vector.broadcast %cst_188 : f32 to vector<2x32xf32>
    %395 = arith.subf %394, %388 : vector<2x32xf32>
    %396 = arith.mulf %395, %393 : vector<2x32xf32>
    %397 = arith.mulf %388, %367 : vector<2x32xf32>
    %398 = arith.addf %396, %397 : vector<2x32xf32>
    %cst_189 = arith.constant dense<0.000000e+00> : vector<2x32xf32>
    %399 = tpu.matmul %398, %303, %cst_189 {dimension_numbers = #tpu.dot_dimension_numbers<[1], [0], [0], [1], [0, 0, 1, 1], [], []>} : vector<2x32xf32>, vector<32x32xf32>, vector<2x32xf32> -> vector<2x32xf32>
    %cst_190 = arith.constant dense<0.000000e+00> : vector<2x32xf32>
    %400 = tpu.matmul %398, %305, %cst_190 {dimension_numbers = #tpu.dot_dimension_numbers<[1], [0], [0], [1], [0, 0, 1, 1], [], []>} : vector<2x32xf32>, vector<32x32xf32>, vector<2x32xf32> -> vector<2x32xf32>
    %cst_191 = arith.constant dense<0.000000e+00> : vector<2x32xf32>
    %401 = tpu.matmul %398, %307, %cst_191 {dimension_numbers = #tpu.dot_dimension_numbers<[1], [0], [0], [1], [0, 0, 1, 1], [], []>} : vector<2x32xf32>, vector<32x32xf32>, vector<2x32xf32> -> vector<2x32xf32>
    %402 = vector.broadcast %319 : vector<1x32xf32> to vector<2x32xf32>
    %403 = arith.addf %401, %402 : vector<2x32xf32>
    %404 = vector.extract_strided_slice %325 {offsets = [2, 0, 0], sizes = [1, 2, 32], strides = [1, 1, 1]} : vector<8x2x32xf32> to vector<1x2x32xf32>
    %405 = vector.shape_cast %404 : vector<1x2x32xf32> to vector<2x32xf32>
    %406 = arith.addf %405, %399 : vector<2x32xf32>
    %407 = arith.negf %406 : vector<2x32xf32>
    %408 = math.exp %407 : vector<2x32xf32>
    %cst_192 = arith.constant 1.000000e+00 : f32
    %409 = vector.broadcast %cst_192 : f32 to vector<2x32xf32>
    %410 = arith.addf %409, %408 : vector<2x32xf32>
    %411 = arith.divf %409, %410 : vector<2x32xf32>
    %412 = vector.extract_strided_slice %331 {offsets = [2, 0, 0], sizes = [1, 2, 32], strides = [1, 1, 1]} : vector<8x2x32xf32> to vector<1x2x32xf32>
    %413 = vector.shape_cast %412 : vector<1x2x32xf32> to vector<2x32xf32>
    %414 = arith.addf %413, %400 : vector<2x32xf32>
    %415 = arith.negf %414 : vector<2x32xf32>
    %416 = math.exp %415 : vector<2x32xf32>
    %cst_193 = arith.constant 1.000000e+00 : f32
    %417 = vector.broadcast %cst_193 : f32 to vector<2x32xf32>
    %418 = arith.addf %417, %416 : vector<2x32xf32>
    %419 = arith.divf %417, %418 : vector<2x32xf32>
    %420 = vector.extract_strided_slice %335 {offsets = [2, 0, 0], sizes = [1, 2, 32], strides = [1, 1, 1]} : vector<8x2x32xf32> to vector<1x2x32xf32>
    %421 = vector.shape_cast %420 : vector<1x2x32xf32> to vector<2x32xf32>
    %422 = arith.mulf %411, %403 : vector<2x32xf32>
    %423 = arith.addf %421, %422 : vector<2x32xf32>
    %424 = math.tanh %423 : vector<2x32xf32>
    %cst_194 = arith.constant 1.000000e+00 : f32
    %425 = vector.broadcast %cst_194 : f32 to vector<2x32xf32>
    %426 = arith.subf %425, %419 : vector<2x32xf32>
    %427 = arith.mulf %426, %424 : vector<2x32xf32>
    %428 = arith.mulf %419, %398 : vector<2x32xf32>
    %429 = arith.addf %427, %428 : vector<2x32xf32>
    %cst_195 = arith.constant dense<0.000000e+00> : vector<2x32xf32>
    %430 = tpu.matmul %429, %303, %cst_195 {dimension_numbers = #tpu.dot_dimension_numbers<[1], [0], [0], [1], [0, 0, 1, 1], [], []>} : vector<2x32xf32>, vector<32x32xf32>, vector<2x32xf32> -> vector<2x32xf32>
    %cst_196 = arith.constant dense<0.000000e+00> : vector<2x32xf32>
    %431 = tpu.matmul %429, %305, %cst_196 {dimension_numbers = #tpu.dot_dimension_numbers<[1], [0], [0], [1], [0, 0, 1, 1], [], []>} : vector<2x32xf32>, vector<32x32xf32>, vector<2x32xf32> -> vector<2x32xf32>
    %cst_197 = arith.constant dense<0.000000e+00> : vector<2x32xf32>
    %432 = tpu.matmul %429, %307, %cst_197 {dimension_numbers = #tpu.dot_dimension_numbers<[1], [0], [0], [1], [0, 0, 1, 1], [], []>} : vector<2x32xf32>, vector<32x32xf32>, vector<2x32xf32> -> vector<2x32xf32>
    %433 = vector.broadcast %319 : vector<1x32xf32> to vector<2x32xf32>
    %434 = arith.addf %432, %433 : vector<2x32xf32>
    %435 = vector.extract_strided_slice %325 {offsets = [3, 0, 0], sizes = [1, 2, 32], strides = [1, 1, 1]} : vector<8x2x32xf32> to vector<1x2x32xf32>
    %436 = vector.shape_cast %435 : vector<1x2x32xf32> to vector<2x32xf32>
    %437 = arith.addf %436, %430 : vector<2x32xf32>
    %438 = arith.negf %437 : vector<2x32xf32>
    %439 = math.exp %438 : vector<2x32xf32>
    %cst_198 = arith.constant 1.000000e+00 : f32
    %440 = vector.broadcast %cst_198 : f32 to vector<2x32xf32>
    %441 = arith.addf %440, %439 : vector<2x32xf32>
    %442 = arith.divf %440, %441 : vector<2x32xf32>
    %443 = vector.extract_strided_slice %331 {offsets = [3, 0, 0], sizes = [1, 2, 32], strides = [1, 1, 1]} : vector<8x2x32xf32> to vector<1x2x32xf32>
    %444 = vector.shape_cast %443 : vector<1x2x32xf32> to vector<2x32xf32>
    %445 = arith.addf %444, %431 : vector<2x32xf32>
    %446 = arith.negf %445 : vector<2x32xf32>
    %447 = math.exp %446 : vector<2x32xf32>
    %cst_199 = arith.constant 1.000000e+00 : f32
    %448 = vector.broadcast %cst_199 : f32 to vector<2x32xf32>
    %449 = arith.addf %448, %447 : vector<2x32xf32>
    %450 = arith.divf %448, %449 : vector<2x32xf32>
    %451 = vector.extract_strided_slice %335 {offsets = [3, 0, 0], sizes = [1, 2, 32], strides = [1, 1, 1]} : vector<8x2x32xf32> to vector<1x2x32xf32>
    %452 = vector.shape_cast %451 : vector<1x2x32xf32> to vector<2x32xf32>
    %453 = arith.mulf %442, %434 : vector<2x32xf32>
    %454 = arith.addf %452, %453 : vector<2x32xf32>
    %455 = math.tanh %454 : vector<2x32xf32>
    %cst_200 = arith.constant 1.000000e+00 : f32
    %456 = vector.broadcast %cst_200 : f32 to vector<2x32xf32>
    %457 = arith.subf %456, %450 : vector<2x32xf32>
    %458 = arith.mulf %457, %455 : vector<2x32xf32>
    %459 = arith.mulf %450, %429 : vector<2x32xf32>
    %460 = arith.addf %458, %459 : vector<2x32xf32>
    %cst_201 = arith.constant dense<0.000000e+00> : vector<2x32xf32>
    %461 = tpu.matmul %460, %303, %cst_201 {dimension_numbers = #tpu.dot_dimension_numbers<[1], [0], [0], [1], [0, 0, 1, 1], [], []>} : vector<2x32xf32>, vector<32x32xf32>, vector<2x32xf32> -> vector<2x32xf32>
    %cst_202 = arith.constant dense<0.000000e+00> : vector<2x32xf32>
    %462 = tpu.matmul %460, %305, %cst_202 {dimension_numbers = #tpu.dot_dimension_numbers<[1], [0], [0], [1], [0, 0, 1, 1], [], []>} : vector<2x32xf32>, vector<32x32xf32>, vector<2x32xf32> -> vector<2x32xf32>
    %cst_203 = arith.constant dense<0.000000e+00> : vector<2x32xf32>
    %463 = tpu.matmul %460, %307, %cst_203 {dimension_numbers = #tpu.dot_dimension_numbers<[1], [0], [0], [1], [0, 0, 1, 1], [], []>} : vector<2x32xf32>, vector<32x32xf32>, vector<2x32xf32> -> vector<2x32xf32>
    %464 = vector.broadcast %319 : vector<1x32xf32> to vector<2x32xf32>
    %465 = arith.addf %463, %464 : vector<2x32xf32>
    %466 = vector.extract_strided_slice %325 {offsets = [4, 0, 0], sizes = [1, 2, 32], strides = [1, 1, 1]} : vector<8x2x32xf32> to vector<1x2x32xf32>
    %467 = vector.shape_cast %466 : vector<1x2x32xf32> to vector<2x32xf32>
    %468 = arith.addf %467, %461 : vector<2x32xf32>
    %469 = arith.negf %468 : vector<2x32xf32>
    %470 = math.exp %469 : vector<2x32xf32>
    %cst_204 = arith.constant 1.000000e+00 : f32
    %471 = vector.broadcast %cst_204 : f32 to vector<2x32xf32>
    %472 = arith.addf %471, %470 : vector<2x32xf32>
    %473 = arith.divf %471, %472 : vector<2x32xf32>
    %474 = vector.extract_strided_slice %331 {offsets = [4, 0, 0], sizes = [1, 2, 32], strides = [1, 1, 1]} : vector<8x2x32xf32> to vector<1x2x32xf32>
    %475 = vector.shape_cast %474 : vector<1x2x32xf32> to vector<2x32xf32>
    %476 = arith.addf %475, %462 : vector<2x32xf32>
    %477 = arith.negf %476 : vector<2x32xf32>
    %478 = math.exp %477 : vector<2x32xf32>
    %cst_205 = arith.constant 1.000000e+00 : f32
    %479 = vector.broadcast %cst_205 : f32 to vector<2x32xf32>
    %480 = arith.addf %479, %478 : vector<2x32xf32>
    %481 = arith.divf %479, %480 : vector<2x32xf32>
    %482 = vector.extract_strided_slice %335 {offsets = [4, 0, 0], sizes = [1, 2, 32], strides = [1, 1, 1]} : vector<8x2x32xf32> to vector<1x2x32xf32>
    %483 = vector.shape_cast %482 : vector<1x2x32xf32> to vector<2x32xf32>
    %484 = arith.mulf %473, %465 : vector<2x32xf32>
    %485 = arith.addf %483, %484 : vector<2x32xf32>
    %486 = math.tanh %485 : vector<2x32xf32>
    %cst_206 = arith.constant 1.000000e+00 : f32
    %487 = vector.broadcast %cst_206 : f32 to vector<2x32xf32>
    %488 = arith.subf %487, %481 : vector<2x32xf32>
    %489 = arith.mulf %488, %486 : vector<2x32xf32>
    %490 = arith.mulf %481, %460 : vector<2x32xf32>
    %491 = arith.addf %489, %490 : vector<2x32xf32>
    %cst_207 = arith.constant dense<0.000000e+00> : vector<2x32xf32>
    %492 = tpu.matmul %491, %303, %cst_207 {dimension_numbers = #tpu.dot_dimension_numbers<[1], [0], [0], [1], [0, 0, 1, 1], [], []>} : vector<2x32xf32>, vector<32x32xf32>, vector<2x32xf32> -> vector<2x32xf32>
    %cst_208 = arith.constant dense<0.000000e+00> : vector<2x32xf32>
    %493 = tpu.matmul %491, %305, %cst_208 {dimension_numbers = #tpu.dot_dimension_numbers<[1], [0], [0], [1], [0, 0, 1, 1], [], []>} : vector<2x32xf32>, vector<32x32xf32>, vector<2x32xf32> -> vector<2x32xf32>
    %cst_209 = arith.constant dense<0.000000e+00> : vector<2x32xf32>
    %494 = tpu.matmul %491, %307, %cst_209 {dimension_numbers = #tpu.dot_dimension_numbers<[1], [0], [0], [1], [0, 0, 1, 1], [], []>} : vector<2x32xf32>, vector<32x32xf32>, vector<2x32xf32> -> vector<2x32xf32>
    %495 = vector.broadcast %319 : vector<1x32xf32> to vector<2x32xf32>
    %496 = arith.addf %494, %495 : vector<2x32xf32>
    %497 = vector.extract_strided_slice %325 {offsets = [5, 0, 0], sizes = [1, 2, 32], strides = [1, 1, 1]} : vector<8x2x32xf32> to vector<1x2x32xf32>
    %498 = vector.shape_cast %497 : vector<1x2x32xf32> to vector<2x32xf32>
    %499 = arith.addf %498, %492 : vector<2x32xf32>
    %500 = arith.negf %499 : vector<2x32xf32>
    %501 = math.exp %500 : vector<2x32xf32>
    %cst_210 = arith.constant 1.000000e+00 : f32
    %502 = vector.broadcast %cst_210 : f32 to vector<2x32xf32>
    %503 = arith.addf %502, %501 : vector<2x32xf32>
    %504 = arith.divf %502, %503 : vector<2x32xf32>
    %505 = vector.extract_strided_slice %331 {offsets = [5, 0, 0], sizes = [1, 2, 32], strides = [1, 1, 1]} : vector<8x2x32xf32> to vector<1x2x32xf32>
    %506 = vector.shape_cast %505 : vector<1x2x32xf32> to vector<2x32xf32>
    %507 = arith.addf %506, %493 : vector<2x32xf32>
    %508 = arith.negf %507 : vector<2x32xf32>
    %509 = math.exp %508 : vector<2x32xf32>
    %cst_211 = arith.constant 1.000000e+00 : f32
    %510 = vector.broadcast %cst_211 : f32 to vector<2x32xf32>
    %511 = arith.addf %510, %509 : vector<2x32xf32>
    %512 = arith.divf %510, %511 : vector<2x32xf32>
    %513 = vector.extract_strided_slice %335 {offsets = [5, 0, 0], sizes = [1, 2, 32], strides = [1, 1, 1]} : vector<8x2x32xf32> to vector<1x2x32xf32>
    %514 = vector.shape_cast %513 : vector<1x2x32xf32> to vector<2x32xf32>
    %515 = arith.mulf %504, %496 : vector<2x32xf32>
    %516 = arith.addf %514, %515 : vector<2x32xf32>
    %517 = math.tanh %516 : vector<2x32xf32>
    %cst_212 = arith.constant 1.000000e+00 : f32
    %518 = vector.broadcast %cst_212 : f32 to vector<2x32xf32>
    %519 = arith.subf %518, %512 : vector<2x32xf32>
    %520 = arith.mulf %519, %517 : vector<2x32xf32>
    %521 = arith.mulf %512, %491 : vector<2x32xf32>
    %522 = arith.addf %520, %521 : vector<2x32xf32>
    %cst_213 = arith.constant dense<0.000000e+00> : vector<2x32xf32>
    %523 = tpu.matmul %522, %303, %cst_213 {dimension_numbers = #tpu.dot_dimension_numbers<[1], [0], [0], [1], [0, 0, 1, 1], [], []>} : vector<2x32xf32>, vector<32x32xf32>, vector<2x32xf32> -> vector<2x32xf32>
    %cst_214 = arith.constant dense<0.000000e+00> : vector<2x32xf32>
    %524 = tpu.matmul %522, %305, %cst_214 {dimension_numbers = #tpu.dot_dimension_numbers<[1], [0], [0], [1], [0, 0, 1, 1], [], []>} : vector<2x32xf32>, vector<32x32xf32>, vector<2x32xf32> -> vector<2x32xf32>
    %cst_215 = arith.constant dense<0.000000e+00> : vector<2x32xf32>
    %525 = tpu.matmul %522, %307, %cst_215 {dimension_numbers = #tpu.dot_dimension_numbers<[1], [0], [0], [1], [0, 0, 1, 1], [], []>} : vector<2x32xf32>, vector<32x32xf32>, vector<2x32xf32> -> vector<2x32xf32>
    %526 = vector.broadcast %319 : vector<1x32xf32> to vector<2x32xf32>
    %527 = arith.addf %525, %526 : vector<2x32xf32>
    %528 = vector.extract_strided_slice %325 {offsets = [6, 0, 0], sizes = [1, 2, 32], strides = [1, 1, 1]} : vector<8x2x32xf32> to vector<1x2x32xf32>
    %529 = vector.shape_cast %528 : vector<1x2x32xf32> to vector<2x32xf32>
    %530 = arith.addf %529, %523 : vector<2x32xf32>
    %531 = arith.negf %530 : vector<2x32xf32>
    %532 = math.exp %531 : vector<2x32xf32>
    %cst_216 = arith.constant 1.000000e+00 : f32
    %533 = vector.broadcast %cst_216 : f32 to vector<2x32xf32>
    %534 = arith.addf %533, %532 : vector<2x32xf32>
    %535 = arith.divf %533, %534 : vector<2x32xf32>
    %536 = vector.extract_strided_slice %331 {offsets = [6, 0, 0], sizes = [1, 2, 32], strides = [1, 1, 1]} : vector<8x2x32xf32> to vector<1x2x32xf32>
    %537 = vector.shape_cast %536 : vector<1x2x32xf32> to vector<2x32xf32>
    %538 = arith.addf %537, %524 : vector<2x32xf32>
    %539 = arith.negf %538 : vector<2x32xf32>
    %540 = math.exp %539 : vector<2x32xf32>
    %cst_217 = arith.constant 1.000000e+00 : f32
    %541 = vector.broadcast %cst_217 : f32 to vector<2x32xf32>
    %542 = arith.addf %541, %540 : vector<2x32xf32>
    %543 = arith.divf %541, %542 : vector<2x32xf32>
    %544 = vector.extract_strided_slice %335 {offsets = [6, 0, 0], sizes = [1, 2, 32], strides = [1, 1, 1]} : vector<8x2x32xf32> to vector<1x2x32xf32>
    %545 = vector.shape_cast %544 : vector<1x2x32xf32> to vector<2x32xf32>
    %546 = arith.mulf %535, %527 : vector<2x32xf32>
    %547 = arith.addf %545, %546 : vector<2x32xf32>
    %548 = math.tanh %547 : vector<2x32xf32>
    %cst_218 = arith.constant 1.000000e+00 : f32
    %549 = vector.broadcast %cst_218 : f32 to vector<2x32xf32>
    %550 = arith.subf %549, %543 : vector<2x32xf32>
    %551 = arith.mulf %550, %548 : vector<2x32xf32>
    %552 = arith.mulf %543, %522 : vector<2x32xf32>
    %553 = arith.addf %551, %552 : vector<2x32xf32>
    %cst_219 = arith.constant dense<0.000000e+00> : vector<2x32xf32>
    %554 = tpu.matmul %553, %303, %cst_219 {dimension_numbers = #tpu.dot_dimension_numbers<[1], [0], [0], [1], [0, 0, 1, 1], [], []>} : vector<2x32xf32>, vector<32x32xf32>, vector<2x32xf32> -> vector<2x32xf32>
    %cst_220 = arith.constant dense<0.000000e+00> : vector<2x32xf32>
    %555 = tpu.matmul %553, %305, %cst_220 {dimension_numbers = #tpu.dot_dimension_numbers<[1], [0], [0], [1], [0, 0, 1, 1], [], []>} : vector<2x32xf32>, vector<32x32xf32>, vector<2x32xf32> -> vector<2x32xf32>
    %cst_221 = arith.constant dense<0.000000e+00> : vector<2x32xf32>
    %556 = tpu.matmul %553, %307, %cst_221 {dimension_numbers = #tpu.dot_dimension_numbers<[1], [0], [0], [1], [0, 0, 1, 1], [], []>} : vector<2x32xf32>, vector<32x32xf32>, vector<2x32xf32> -> vector<2x32xf32>
    %557 = vector.broadcast %319 : vector<1x32xf32> to vector<2x32xf32>
    %558 = arith.addf %556, %557 : vector<2x32xf32>
    %559 = vector.extract_strided_slice %325 {offsets = [7, 0, 0], sizes = [1, 2, 32], strides = [1, 1, 1]} : vector<8x2x32xf32> to vector<1x2x32xf32>
    %560 = vector.shape_cast %559 : vector<1x2x32xf32> to vector<2x32xf32>
    %561 = arith.addf %560, %554 : vector<2x32xf32>
    %562 = arith.negf %561 : vector<2x32xf32>
    %563 = math.exp %562 : vector<2x32xf32>
    %cst_222 = arith.constant 1.000000e+00 : f32
    %564 = vector.broadcast %cst_222 : f32 to vector<2x32xf32>
    %565 = arith.addf %564, %563 : vector<2x32xf32>
    %566 = arith.divf %564, %565 : vector<2x32xf32>
    %567 = vector.extract_strided_slice %331 {offsets = [7, 0, 0], sizes = [1, 2, 32], strides = [1, 1, 1]} : vector<8x2x32xf32> to vector<1x2x32xf32>
    %568 = vector.shape_cast %567 : vector<1x2x32xf32> to vector<2x32xf32>
    %569 = arith.addf %568, %555 : vector<2x32xf32>
    %570 = arith.negf %569 : vector<2x32xf32>
    %571 = math.exp %570 : vector<2x32xf32>
    %cst_223 = arith.constant 1.000000e+00 : f32
    %572 = vector.broadcast %cst_223 : f32 to vector<2x32xf32>
    %573 = arith.addf %572, %571 : vector<2x32xf32>
    %574 = arith.divf %572, %573 : vector<2x32xf32>
    %575 = vector.extract_strided_slice %335 {offsets = [7, 0, 0], sizes = [1, 2, 32], strides = [1, 1, 1]} : vector<8x2x32xf32> to vector<1x2x32xf32>
    %576 = vector.shape_cast %575 : vector<1x2x32xf32> to vector<2x32xf32>
    %577 = arith.mulf %566, %558 : vector<2x32xf32>
    %578 = arith.addf %576, %577 : vector<2x32xf32>
    %579 = math.tanh %578 : vector<2x32xf32>
    %cst_224 = arith.constant 1.000000e+00 : f32
    %580 = vector.broadcast %cst_224 : f32 to vector<2x32xf32>
    %581 = arith.subf %580, %574 : vector<2x32xf32>
    %582 = arith.mulf %581, %579 : vector<2x32xf32>
    %583 = arith.mulf %574, %553 : vector<2x32xf32>
    %584 = arith.addf %582, %583 : vector<2x32xf32>
    %c0_225 = arith.constant 0 : index
    %c1_226 = arith.constant 1 : index
    %c0_227 = arith.constant 0 : index
    %c0_228 = arith.constant 0 : index
    %585 = vector.load %arg7[%c0_225, %c1_226, %c0_227, %c0_228] : memref<1x3x2x32xf32, #tpu.memory_space<vmem>>, vector<1x1x2x32xf32>
    %586 = vector.shape_cast %585 : vector<1x1x2x32xf32> to vector<2x32xf32>
    %587 = vector.shape_cast %584 : vector<2x32xf32> to vector<1x1x2x32xf32>
    tpu.vector_store %arg7[%c0_225, %c1_226, %c0_227, %c0_228], %587 {strides = array<i32>} : memref<1x3x2x32xf32, #tpu.memory_space<vmem>>, vector<1x1x2x32xf32>,
    %588 = tpu.concatenate %367, %398, %429, %460, %491, %522, %553, %584 in 0 : vector<2x32xf32>, vector<2x32xf32>, vector<2x32xf32>, vector<2x32xf32>, vector<2x32xf32>, vector<2x32xf32>, vector<2x32xf32>, vector<2x32xf32> -> vector<16x32xf32>
    %c0_229 = arith.constant 0 : index
    %c1_230 = arith.constant 1 : index
    %c0_231 = arith.constant 0 : index
    %c0_232 = arith.constant 0 : index
    %c0_233 = arith.constant 0 : index
    %589 = vector.load %arg3[%c0_229, %c1_230, %c0_231, %c0_232, %c0_233] : memref<1x2x3x32x32xf32, #tpu.memory_space<vmem>>, vector<1x1x1x32x32xf32>
    %590 = vector.shape_cast %589 : vector<1x1x1x32x32xf32> to vector<32x32xf32>
    %c0_234 = arith.constant 0 : index
    %c1_235 = arith.constant 1 : index
    %c1_236 = arith.constant 1 : index
    %c0_237 = arith.constant 0 : index
    %c0_238 = arith.constant 0 : index
    %591 = vector.load %arg3[%c0_234, %c1_235, %c1_236, %c0_237, %c0_238] : memref<1x2x3x32x32xf32, #tpu.memory_space<vmem>>, vector<1x1x1x32x32xf32>
    %592 = vector.shape_cast %591 : vector<1x1x1x32x32xf32> to vector<32x32xf32>
    %c0_239 = arith.constant 0 : index
    %c1_240 = arith.constant 1 : index
    %c2_241 = arith.constant 2 : index
    %c0_242 = arith.constant 0 : index
    %c0_243 = arith.constant 0 : index
    %593 = vector.load %arg3[%c0_239, %c1_240, %c2_241, %c0_242, %c0_243] : memref<1x2x3x32x32xf32, #tpu.memory_space<vmem>>, vector<1x1x1x32x32xf32>
    %594 = vector.shape_cast %593 : vector<1x1x1x32x32xf32> to vector<32x32xf32>
    %c0_244 = arith.constant 0 : index
    %c2_245 = arith.constant 2 : index
    %c0_246 = arith.constant 0 : index
    %c0_247 = arith.constant 0 : index
    %c0_248 = arith.constant 0 : index
    %595 = vector.load %arg4[%c0_244, %c2_245, %c0_246, %c0_247, %c0_248] : memref<1x3x3x32x32xf32, #tpu.memory_space<vmem>>, vector<1x1x1x32x32xf32>
    %596 = vector.shape_cast %595 : vector<1x1x1x32x32xf32> to vector<32x32xf32>
    %c0_249 = arith.constant 0 : index
    %c2_250 = arith.constant 2 : index
    %c1_251 = arith.constant 1 : index
    %c0_252 = arith.constant 0 : index
    %c0_253 = arith.constant 0 : index
    %597 = vector.load %arg4[%c0_249, %c2_250, %c1_251, %c0_252, %c0_253] : memref<1x3x3x32x32xf32, #tpu.memory_space<vmem>>, vector<1x1x1x32x32xf32>
    %598 = vector.shape_cast %597 : vector<1x1x1x32x32xf32> to vector<32x32xf32>
    %c0_254 = arith.constant 0 : index
    %c2_255 = arith.constant 2 : index
    %c2_256 = arith.constant 2 : index
    %c0_257 = arith.constant 0 : index
    %c0_258 = arith.constant 0 : index
    %599 = vector.load %arg4[%c0_254, %c2_255, %c2_256, %c0_257, %c0_258] : memref<1x3x3x32x32xf32, #tpu.memory_space<vmem>>, vector<1x1x1x32x32xf32>
    %600 = vector.shape_cast %599 : vector<1x1x1x32x32xf32> to vector<32x32xf32>
    %c0_259 = arith.constant 0 : index
    %c2_260 = arith.constant 2 : index
    %c0_261 = arith.constant 0 : index
    %c0_262 = arith.constant 0 : index
    %c0_263 = arith.constant 0 : index
    %601 = vector.load %arg5[%c0_259, %c2_260, %c0_261, %c0_262, %c0_263] : memref<1x3x3x1x32xf32, #tpu.memory_space<vmem>>, vector<1x1x1x1x32xf32>
    %602 = vector.shape_cast %601 : vector<1x1x1x1x32xf32> to vector<1x32xf32>
    %c0_264 = arith.constant 0 : index
    %c2_265 = arith.constant 2 : index
    %c1_266 = arith.constant 1 : index
    %c0_267 = arith.constant 0 : index
    %c0_268 = arith.constant 0 : index
    %603 = vector.load %arg5[%c0_264, %c2_265, %c1_266, %c0_267, %c0_268] : memref<1x3x3x1x32xf32, #tpu.memory_space<vmem>>, vector<1x1x1x1x32xf32>
    %604 = vector.shape_cast %603 : vector<1x1x1x1x32xf32> to vector<1x32xf32>
    %c0_269 = arith.constant 0 : index
    %c2_270 = arith.constant 2 : index
    %c2_271 = arith.constant 2 : index
    %c0_272 = arith.constant 0 : index
    %c0_273 = arith.constant 0 : index
    %605 = vector.load %arg5[%c0_269, %c2_270, %c2_271, %c0_272, %c0_273] : memref<1x3x3x1x32xf32, #tpu.memory_space<vmem>>, vector<1x1x1x1x32xf32>
    %606 = vector.shape_cast %605 : vector<1x1x1x1x32xf32> to vector<1x32xf32>
    %c0_274 = arith.constant 0 : index
    %c2_275 = arith.constant 2 : index
    %c0_276 = arith.constant 0 : index
    %c0_277 = arith.constant 0 : index
    %c0_278 = arith.constant 0 : index
    %607 = vector.load %arg6[%c0_274, %c2_275, %c0_276, %c0_277, %c0_278] : memref<1x3x3x1x32xf32, #tpu.memory_space<vmem>>, vector<1x1x1x1x32xf32>
    %608 = vector.shape_cast %607 : vector<1x1x1x1x32xf32> to vector<1x32xf32>
    %c0_279 = arith.constant 0 : index
    %c2_280 = arith.constant 2 : index
    %c1_281 = arith.constant 1 : index
    %c0_282 = arith.constant 0 : index
    %c0_283 = arith.constant 0 : index
    %609 = vector.load %arg6[%c0_279, %c2_280, %c1_281, %c0_282, %c0_283] : memref<1x3x3x1x32xf32, #tpu.memory_space<vmem>>, vector<1x1x1x1x32xf32>
    %610 = vector.shape_cast %609 : vector<1x1x1x1x32xf32> to vector<1x32xf32>
    %c0_284 = arith.constant 0 : index
    %c2_285 = arith.constant 2 : index
    %c2_286 = arith.constant 2 : index
    %c0_287 = arith.constant 0 : index
    %c0_288 = arith.constant 0 : index
    %611 = vector.load %arg6[%c0_284, %c2_285, %c2_286, %c0_287, %c0_288] : memref<1x3x3x1x32xf32, #tpu.memory_space<vmem>>, vector<1x1x1x1x32xf32>
    %612 = vector.shape_cast %611 : vector<1x1x1x1x32xf32> to vector<1x32xf32>
    %cst_289 = arith.constant dense<0.000000e+00> : vector<16x32xf32>
    %613 = tpu.matmul %588, %590, %cst_289 {dimension_numbers = #tpu.dot_dimension_numbers<[1], [0], [0], [1], [0, 0, 1, 1], [], []>} : vector<16x32xf32>, vector<32x32xf32>, vector<16x32xf32> -> vector<16x32xf32>
    %614 = vector.broadcast %602 : vector<1x32xf32> to vector<16x32xf32>
    %615 = arith.addf %613, %614 : vector<16x32xf32>
    %616 = vector.broadcast %608 : vector<1x32xf32> to vector<16x32xf32>
    %617 = arith.addf %615, %616 : vector<16x32xf32>
    %618 = vector.shape_cast %617 : vector<16x32xf32> to vector<8x2x32xf32>
    %cst_290 = arith.constant dense<0.000000e+00> : vector<16x32xf32>
    %619 = tpu.matmul %588, %592, %cst_290 {dimension_numbers = #tpu.dot_dimension_numbers<[1], [0], [0], [1], [0, 0, 1, 1], [], []>} : vector<16x32xf32>, vector<32x32xf32>, vector<16x32xf32> -> vector<16x32xf32>
    %620 = vector.broadcast %604 : vector<1x32xf32> to vector<16x32xf32>
    %621 = arith.addf %619, %620 : vector<16x32xf32>
    %622 = vector.broadcast %610 : vector<1x32xf32> to vector<16x32xf32>
    %623 = arith.addf %621, %622 : vector<16x32xf32>
    %624 = vector.shape_cast %623 : vector<16x32xf32> to vector<8x2x32xf32>
    %cst_291 = arith.constant dense<0.000000e+00> : vector<16x32xf32>
    %625 = tpu.matmul %588, %594, %cst_291 {dimension_numbers = #tpu.dot_dimension_numbers<[1], [0], [0], [1], [0, 0, 1, 1], [], []>} : vector<16x32xf32>, vector<32x32xf32>, vector<16x32xf32> -> vector<16x32xf32>
    %626 = vector.broadcast %606 : vector<1x32xf32> to vector<16x32xf32>
    %627 = arith.addf %625, %626 : vector<16x32xf32>
    %628 = vector.shape_cast %627 : vector<16x32xf32> to vector<8x2x32xf32>
    %cst_292 = arith.constant 0.000000e+00 : f32
    %629 = vector.broadcast %cst_292 : f32 to vector<2x32xf32>
    %cst_293 = arith.constant dense<0.000000e+00> : vector<2x32xf32>
    %630 = tpu.matmul %629, %596, %cst_293 {dimension_numbers = #tpu.dot_dimension_numbers<[1], [0], [0], [1], [0, 0, 1, 1], [], []>} : vector<2x32xf32>, vector<32x32xf32>, vector<2x32xf32> -> vector<2x32xf32>
    %cst_294 = arith.constant dense<0.000000e+00> : vector<2x32xf32>
    %631 = tpu.matmul %629, %598, %cst_294 {dimension_numbers = #tpu.dot_dimension_numbers<[1], [0], [0], [1], [0, 0, 1, 1], [], []>} : vector<2x32xf32>, vector<32x32xf32>, vector<2x32xf32> -> vector<2x32xf32>
    %cst_295 = arith.constant dense<0.000000e+00> : vector<2x32xf32>
    %632 = tpu.matmul %629, %600, %cst_295 {dimension_numbers = #tpu.dot_dimension_numbers<[1], [0], [0], [1], [0, 0, 1, 1], [], []>} : vector<2x32xf32>, vector<32x32xf32>, vector<2x32xf32> -> vector<2x32xf32>
    %633 = vector.broadcast %612 : vector<1x32xf32> to vector<2x32xf32>
    %634 = arith.addf %632, %633 : vector<2x32xf32>
    %635 = vector.extract_strided_slice %618 {offsets = [0, 0, 0], sizes = [1, 2, 32], strides = [1, 1, 1]} : vector<8x2x32xf32> to vector<1x2x32xf32>
    %636 = vector.shape_cast %635 : vector<1x2x32xf32> to vector<2x32xf32>
    %637 = arith.addf %636, %630 : vector<2x32xf32>
    %638 = arith.negf %637 : vector<2x32xf32>
    %639 = math.exp %638 : vector<2x32xf32>
    %cst_296 = arith.constant 1.000000e+00 : f32
    %640 = vector.broadcast %cst_296 : f32 to vector<2x32xf32>
    %641 = arith.addf %640, %639 : vector<2x32xf32>
    %642 = arith.divf %640, %641 : vector<2x32xf32>
    %643 = vector.extract_strided_slice %624 {offsets = [0, 0, 0], sizes = [1, 2, 32], strides = [1, 1, 1]} : vector<8x2x32xf32> to vector<1x2x32xf32>
    %644 = vector.shape_cast %643 : vector<1x2x32xf32> to vector<2x32xf32>
    %645 = arith.addf %644, %631 : vector<2x32xf32>
    %646 = arith.negf %645 : vector<2x32xf32>
    %647 = math.exp %646 : vector<2x32xf32>
    %cst_297 = arith.constant 1.000000e+00 : f32
    %648 = vector.broadcast %cst_297 : f32 to vector<2x32xf32>
    %649 = arith.addf %648, %647 : vector<2x32xf32>
    %650 = arith.divf %648, %649 : vector<2x32xf32>
    %651 = vector.extract_strided_slice %628 {offsets = [0, 0, 0], sizes = [1, 2, 32], strides = [1, 1, 1]} : vector<8x2x32xf32> to vector<1x2x32xf32>
    %652 = vector.shape_cast %651 : vector<1x2x32xf32> to vector<2x32xf32>
    %653 = arith.mulf %642, %634 : vector<2x32xf32>
    %654 = arith.addf %652, %653 : vector<2x32xf32>
    %655 = math.tanh %654 : vector<2x32xf32>
    %cst_298 = arith.constant 1.000000e+00 : f32
    %656 = vector.broadcast %cst_298 : f32 to vector<2x32xf32>
    %657 = arith.subf %656, %650 : vector<2x32xf32>
    %658 = arith.mulf %657, %655 : vector<2x32xf32>
    %659 = arith.mulf %650, %629 : vector<2x32xf32>
    %660 = arith.addf %658, %659 : vector<2x32xf32>
    %cst_299 = arith.constant dense<0.000000e+00> : vector<2x32xf32>
    %661 = tpu.matmul %660, %596, %cst_299 {dimension_numbers = #tpu.dot_dimension_numbers<[1], [0], [0], [1], [0, 0, 1, 1], [], []>} : vector<2x32xf32>, vector<32x32xf32>, vector<2x32xf32> -> vector<2x32xf32>
    %cst_300 = arith.constant dense<0.000000e+00> : vector<2x32xf32>
    %662 = tpu.matmul %660, %598, %cst_300 {dimension_numbers = #tpu.dot_dimension_numbers<[1], [0], [0], [1], [0, 0, 1, 1], [], []>} : vector<2x32xf32>, vector<32x32xf32>, vector<2x32xf32> -> vector<2x32xf32>
    %cst_301 = arith.constant dense<0.000000e+00> : vector<2x32xf32>
    %663 = tpu.matmul %660, %600, %cst_301 {dimension_numbers = #tpu.dot_dimension_numbers<[1], [0], [0], [1], [0, 0, 1, 1], [], []>} : vector<2x32xf32>, vector<32x32xf32>, vector<2x32xf32> -> vector<2x32xf32>
    %664 = vector.broadcast %612 : vector<1x32xf32> to vector<2x32xf32>
    %665 = arith.addf %663, %664 : vector<2x32xf32>
    %666 = vector.extract_strided_slice %618 {offsets = [1, 0, 0], sizes = [1, 2, 32], strides = [1, 1, 1]} : vector<8x2x32xf32> to vector<1x2x32xf32>
    %667 = vector.shape_cast %666 : vector<1x2x32xf32> to vector<2x32xf32>
    %668 = arith.addf %667, %661 : vector<2x32xf32>
    %669 = arith.negf %668 : vector<2x32xf32>
    %670 = math.exp %669 : vector<2x32xf32>
    %cst_302 = arith.constant 1.000000e+00 : f32
    %671 = vector.broadcast %cst_302 : f32 to vector<2x32xf32>
    %672 = arith.addf %671, %670 : vector<2x32xf32>
    %673 = arith.divf %671, %672 : vector<2x32xf32>
    %674 = vector.extract_strided_slice %624 {offsets = [1, 0, 0], sizes = [1, 2, 32], strides = [1, 1, 1]} : vector<8x2x32xf32> to vector<1x2x32xf32>
    %675 = vector.shape_cast %674 : vector<1x2x32xf32> to vector<2x32xf32>
    %676 = arith.addf %675, %662 : vector<2x32xf32>
    %677 = arith.negf %676 : vector<2x32xf32>
    %678 = math.exp %677 : vector<2x32xf32>
    %cst_303 = arith.constant 1.000000e+00 : f32
    %679 = vector.broadcast %cst_303 : f32 to vector<2x32xf32>
    %680 = arith.addf %679, %678 : vector<2x32xf32>
    %681 = arith.divf %679, %680 : vector<2x32xf32>
    %682 = vector.extract_strided_slice %628 {offsets = [1, 0, 0], sizes = [1, 2, 32], strides = [1, 1, 1]} : vector<8x2x32xf32> to vector<1x2x32xf32>
    %683 = vector.shape_cast %682 : vector<1x2x32xf32> to vector<2x32xf32>
    %684 = arith.mulf %673, %665 : vector<2x32xf32>
    %685 = arith.addf %683, %684 : vector<2x32xf32>
    %686 = math.tanh %685 : vector<2x32xf32>
    %cst_304 = arith.constant 1.000000e+00 : f32
    %687 = vector.broadcast %cst_304 : f32 to vector<2x32xf32>
    %688 = arith.subf %687, %681 : vector<2x32xf32>
    %689 = arith.mulf %688, %686 : vector<2x32xf32>
    %690 = arith.mulf %681, %660 : vector<2x32xf32>
    %691 = arith.addf %689, %690 : vector<2x32xf32>
    %cst_305 = arith.constant dense<0.000000e+00> : vector<2x32xf32>
    %692 = tpu.matmul %691, %596, %cst_305 {dimension_numbers = #tpu.dot_dimension_numbers<[1], [0], [0], [1], [0, 0, 1, 1], [], []>} : vector<2x32xf32>, vector<32x32xf32>, vector<2x32xf32> -> vector<2x32xf32>
    %cst_306 = arith.constant dense<0.000000e+00> : vector<2x32xf32>
    %693 = tpu.matmul %691, %598, %cst_306 {dimension_numbers = #tpu.dot_dimension_numbers<[1], [0], [0], [1], [0, 0, 1, 1], [], []>} : vector<2x32xf32>, vector<32x32xf32>, vector<2x32xf32> -> vector<2x32xf32>
    %cst_307 = arith.constant dense<0.000000e+00> : vector<2x32xf32>
    %694 = tpu.matmul %691, %600, %cst_307 {dimension_numbers = #tpu.dot_dimension_numbers<[1], [0], [0], [1], [0, 0, 1, 1], [], []>} : vector<2x32xf32>, vector<32x32xf32>, vector<2x32xf32> -> vector<2x32xf32>
    %695 = vector.broadcast %612 : vector<1x32xf32> to vector<2x32xf32>
    %696 = arith.addf %694, %695 : vector<2x32xf32>
    %697 = vector.extract_strided_slice %618 {offsets = [2, 0, 0], sizes = [1, 2, 32], strides = [1, 1, 1]} : vector<8x2x32xf32> to vector<1x2x32xf32>
    %698 = vector.shape_cast %697 : vector<1x2x32xf32> to vector<2x32xf32>
    %699 = arith.addf %698, %692 : vector<2x32xf32>
    %700 = arith.negf %699 : vector<2x32xf32>
    %701 = math.exp %700 : vector<2x32xf32>
    %cst_308 = arith.constant 1.000000e+00 : f32
    %702 = vector.broadcast %cst_308 : f32 to vector<2x32xf32>
    %703 = arith.addf %702, %701 : vector<2x32xf32>
    %704 = arith.divf %702, %703 : vector<2x32xf32>
    %705 = vector.extract_strided_slice %624 {offsets = [2, 0, 0], sizes = [1, 2, 32], strides = [1, 1, 1]} : vector<8x2x32xf32> to vector<1x2x32xf32>
    %706 = vector.shape_cast %705 : vector<1x2x32xf32> to vector<2x32xf32>
    %707 = arith.addf %706, %693 : vector<2x32xf32>
    %708 = arith.negf %707 : vector<2x32xf32>
    %709 = math.exp %708 : vector<2x32xf32>
    %cst_309 = arith.constant 1.000000e+00 : f32
    %710 = vector.broadcast %cst_309 : f32 to vector<2x32xf32>
    %711 = arith.addf %710, %709 : vector<2x32xf32>
    %712 = arith.divf %710, %711 : vector<2x32xf32>
    %713 = vector.extract_strided_slice %628 {offsets = [2, 0, 0], sizes = [1, 2, 32], strides = [1, 1, 1]} : vector<8x2x32xf32> to vector<1x2x32xf32>
    %714 = vector.shape_cast %713 : vector<1x2x32xf32> to vector<2x32xf32>
    %715 = arith.mulf %704, %696 : vector<2x32xf32>
    %716 = arith.addf %714, %715 : vector<2x32xf32>
    %717 = math.tanh %716 : vector<2x32xf32>
    %cst_310 = arith.constant 1.000000e+00 : f32
    %718 = vector.broadcast %cst_310 : f32 to vector<2x32xf32>
    %719 = arith.subf %718, %712 : vector<2x32xf32>
    %720 = arith.mulf %719, %717 : vector<2x32xf32>
    %721 = arith.mulf %712, %691 : vector<2x32xf32>
    %722 = arith.addf %720, %721 : vector<2x32xf32>
    %cst_311 = arith.constant dense<0.000000e+00> : vector<2x32xf32>
    %723 = tpu.matmul %722, %596, %cst_311 {dimension_numbers = #tpu.dot_dimension_numbers<[1], [0], [0], [1], [0, 0, 1, 1], [], []>} : vector<2x32xf32>, vector<32x32xf32>, vector<2x32xf32> -> vector<2x32xf32>
    %cst_312 = arith.constant dense<0.000000e+00> : vector<2x32xf32>
    %724 = tpu.matmul %722, %598, %cst_312 {dimension_numbers = #tpu.dot_dimension_numbers<[1], [0], [0], [1], [0, 0, 1, 1], [], []>} : vector<2x32xf32>, vector<32x32xf32>, vector<2x32xf32> -> vector<2x32xf32>
    %cst_313 = arith.constant dense<0.000000e+00> : vector<2x32xf32>
    %725 = tpu.matmul %722, %600, %cst_313 {dimension_numbers = #tpu.dot_dimension_numbers<[1], [0], [0], [1], [0, 0, 1, 1], [], []>} : vector<2x32xf32>, vector<32x32xf32>, vector<2x32xf32> -> vector<2x32xf32>
    %726 = vector.broadcast %612 : vector<1x32xf32> to vector<2x32xf32>
    %727 = arith.addf %725, %726 : vector<2x32xf32>
    %728 = vector.extract_strided_slice %618 {offsets = [3, 0, 0], sizes = [1, 2, 32], strides = [1, 1, 1]} : vector<8x2x32xf32> to vector<1x2x32xf32>
    %729 = vector.shape_cast %728 : vector<1x2x32xf32> to vector<2x32xf32>
    %730 = arith.addf %729, %723 : vector<2x32xf32>
    %731 = arith.negf %730 : vector<2x32xf32>
    %732 = math.exp %731 : vector<2x32xf32>
    %cst_314 = arith.constant 1.000000e+00 : f32
    %733 = vector.broadcast %cst_314 : f32 to vector<2x32xf32>
    %734 = arith.addf %733, %732 : vector<2x32xf32>
    %735 = arith.divf %733, %734 : vector<2x32xf32>
    %736 = vector.extract_strided_slice %624 {offsets = [3, 0, 0], sizes = [1, 2, 32], strides = [1, 1, 1]} : vector<8x2x32xf32> to vector<1x2x32xf32>
    %737 = vector.shape_cast %736 : vector<1x2x32xf32> to vector<2x32xf32>
    %738 = arith.addf %737, %724 : vector<2x32xf32>
    %739 = arith.negf %738 : vector<2x32xf32>
    %740 = math.exp %739 : vector<2x32xf32>
    %cst_315 = arith.constant 1.000000e+00 : f32
    %741 = vector.broadcast %cst_315 : f32 to vector<2x32xf32>
    %742 = arith.addf %741, %740 : vector<2x32xf32>
    %743 = arith.divf %741, %742 : vector<2x32xf32>
    %744 = vector.extract_strided_slice %628 {offsets = [3, 0, 0], sizes = [1, 2, 32], strides = [1, 1, 1]} : vector<8x2x32xf32> to vector<1x2x32xf32>
    %745 = vector.shape_cast %744 : vector<1x2x32xf32> to vector<2x32xf32>
    %746 = arith.mulf %735, %727 : vector<2x32xf32>
    %747 = arith.addf %745, %746 : vector<2x32xf32>
    %748 = math.tanh %747 : vector<2x32xf32>
    %cst_316 = arith.constant 1.000000e+00 : f32
    %749 = vector.broadcast %cst_316 : f32 to vector<2x32xf32>
    %750 = arith.subf %749, %743 : vector<2x32xf32>
    %751 = arith.mulf %750, %748 : vector<2x32xf32>
    %752 = arith.mulf %743, %722 : vector<2x32xf32>
    %753 = arith.addf %751, %752 : vector<2x32xf32>
    %cst_317 = arith.constant dense<0.000000e+00> : vector<2x32xf32>
    %754 = tpu.matmul %753, %596, %cst_317 {dimension_numbers = #tpu.dot_dimension_numbers<[1], [0], [0], [1], [0, 0, 1, 1], [], []>} : vector<2x32xf32>, vector<32x32xf32>, vector<2x32xf32> -> vector<2x32xf32>
    %cst_318 = arith.constant dense<0.000000e+00> : vector<2x32xf32>
    %755 = tpu.matmul %753, %598, %cst_318 {dimension_numbers = #tpu.dot_dimension_numbers<[1], [0], [0], [1], [0, 0, 1, 1], [], []>} : vector<2x32xf32>, vector<32x32xf32>, vector<2x32xf32> -> vector<2x32xf32>
    %cst_319 = arith.constant dense<0.000000e+00> : vector<2x32xf32>
    %756 = tpu.matmul %753, %600, %cst_319 {dimension_numbers = #tpu.dot_dimension_numbers<[1], [0], [0], [1], [0, 0, 1, 1], [], []>} : vector<2x32xf32>, vector<32x32xf32>, vector<2x32xf32> -> vector<2x32xf32>
    %757 = vector.broadcast %612 : vector<1x32xf32> to vector<2x32xf32>
    %758 = arith.addf %756, %757 : vector<2x32xf32>
    %759 = vector.extract_strided_slice %618 {offsets = [4, 0, 0], sizes = [1, 2, 32], strides = [1, 1, 1]} : vector<8x2x32xf32> to vector<1x2x32xf32>
    %760 = vector.shape_cast %759 : vector<1x2x32xf32> to vector<2x32xf32>
    %761 = arith.addf %760, %754 : vector<2x32xf32>
    %762 = arith.negf %761 : vector<2x32xf32>
    %763 = math.exp %762 : vector<2x32xf32>
    %cst_320 = arith.constant 1.000000e+00 : f32
    %764 = vector.broadcast %cst_320 : f32 to vector<2x32xf32>
    %765 = arith.addf %764, %763 : vector<2x32xf32>
    %766 = arith.divf %764, %765 : vector<2x32xf32>
    %767 = vector.extract_strided_slice %624 {offsets = [4, 0, 0], sizes = [1, 2, 32], strides = [1, 1, 1]} : vector<8x2x32xf32> to vector<1x2x32xf32>
    %768 = vector.shape_cast %767 : vector<1x2x32xf32> to vector<2x32xf32>
    %769 = arith.addf %768, %755 : vector<2x32xf32>
    %770 = arith.negf %769 : vector<2x32xf32>
    %771 = math.exp %770 : vector<2x32xf32>
    %cst_321 = arith.constant 1.000000e+00 : f32
    %772 = vector.broadcast %cst_321 : f32 to vector<2x32xf32>
    %773 = arith.addf %772, %771 : vector<2x32xf32>
    %774 = arith.divf %772, %773 : vector<2x32xf32>
    %775 = vector.extract_strided_slice %628 {offsets = [4, 0, 0], sizes = [1, 2, 32], strides = [1, 1, 1]} : vector<8x2x32xf32> to vector<1x2x32xf32>
    %776 = vector.shape_cast %775 : vector<1x2x32xf32> to vector<2x32xf32>
    %777 = arith.mulf %766, %758 : vector<2x32xf32>
    %778 = arith.addf %776, %777 : vector<2x32xf32>
    %779 = math.tanh %778 : vector<2x32xf32>
    %cst_322 = arith.constant 1.000000e+00 : f32
    %780 = vector.broadcast %cst_322 : f32 to vector<2x32xf32>
    %781 = arith.subf %780, %774 : vector<2x32xf32>
    %782 = arith.mulf %781, %779 : vector<2x32xf32>
    %783 = arith.mulf %774, %753 : vector<2x32xf32>
    %784 = arith.addf %782, %783 : vector<2x32xf32>
    %cst_323 = arith.constant dense<0.000000e+00> : vector<2x32xf32>
    %785 = tpu.matmul %784, %596, %cst_323 {dimension_numbers = #tpu.dot_dimension_numbers<[1], [0], [0], [1], [0, 0, 1, 1], [], []>} : vector<2x32xf32>, vector<32x32xf32>, vector<2x32xf32> -> vector<2x32xf32>
    %cst_324 = arith.constant dense<0.000000e+00> : vector<2x32xf32>
    %786 = tpu.matmul %784, %598, %cst_324 {dimension_numbers = #tpu.dot_dimension_numbers<[1], [0], [0], [1], [0, 0, 1, 1], [], []>} : vector<2x32xf32>, vector<32x32xf32>, vector<2x32xf32> -> vector<2x32xf32>
    %cst_325 = arith.constant dense<0.000000e+00> : vector<2x32xf32>
    %787 = tpu.matmul %784, %600, %cst_325 {dimension_numbers = #tpu.dot_dimension_numbers<[1], [0], [0], [1], [0, 0, 1, 1], [], []>} : vector<2x32xf32>, vector<32x32xf32>, vector<2x32xf32> -> vector<2x32xf32>
    %788 = vector.broadcast %612 : vector<1x32xf32> to vector<2x32xf32>
    %789 = arith.addf %787, %788 : vector<2x32xf32>
    %790 = vector.extract_strided_slice %618 {offsets = [5, 0, 0], sizes = [1, 2, 32], strides = [1, 1, 1]} : vector<8x2x32xf32> to vector<1x2x32xf32>
    %791 = vector.shape_cast %790 : vector<1x2x32xf32> to vector<2x32xf32>
    %792 = arith.addf %791, %785 : vector<2x32xf32>
    %793 = arith.negf %792 : vector<2x32xf32>
    %794 = math.exp %793 : vector<2x32xf32>
    %cst_326 = arith.constant 1.000000e+00 : f32
    %795 = vector.broadcast %cst_326 : f32 to vector<2x32xf32>
    %796 = arith.addf %795, %794 : vector<2x32xf32>
    %797 = arith.divf %795, %796 : vector<2x32xf32>
    %798 = vector.extract_strided_slice %624 {offsets = [5, 0, 0], sizes = [1, 2, 32], strides = [1, 1, 1]} : vector<8x2x32xf32> to vector<1x2x32xf32>
    %799 = vector.shape_cast %798 : vector<1x2x32xf32> to vector<2x32xf32>
    %800 = arith.addf %799, %786 : vector<2x32xf32>
    %801 = arith.negf %800 : vector<2x32xf32>
    %802 = math.exp %801 : vector<2x32xf32>
    %cst_327 = arith.constant 1.000000e+00 : f32
    %803 = vector.broadcast %cst_327 : f32 to vector<2x32xf32>
    %804 = arith.addf %803, %802 : vector<2x32xf32>
    %805 = arith.divf %803, %804 : vector<2x32xf32>
    %806 = vector.extract_strided_slice %628 {offsets = [5, 0, 0], sizes = [1, 2, 32], strides = [1, 1, 1]} : vector<8x2x32xf32> to vector<1x2x32xf32>
    %807 = vector.shape_cast %806 : vector<1x2x32xf32> to vector<2x32xf32>
    %808 = arith.mulf %797, %789 : vector<2x32xf32>
    %809 = arith.addf %807, %808 : vector<2x32xf32>
    %810 = math.tanh %809 : vector<2x32xf32>
    %cst_328 = arith.constant 1.000000e+00 : f32
    %811 = vector.broadcast %cst_328 : f32 to vector<2x32xf32>
    %812 = arith.subf %811, %805 : vector<2x32xf32>
    %813 = arith.mulf %812, %810 : vector<2x32xf32>
    %814 = arith.mulf %805, %784 : vector<2x32xf32>
    %815 = arith.addf %813, %814 : vector<2x32xf32>
    %cst_329 = arith.constant dense<0.000000e+00> : vector<2x32xf32>
    %816 = tpu.matmul %815, %596, %cst_329 {dimension_numbers = #tpu.dot_dimension_numbers<[1], [0], [0], [1], [0, 0, 1, 1], [], []>} : vector<2x32xf32>, vector<32x32xf32>, vector<2x32xf32> -> vector<2x32xf32>
    %cst_330 = arith.constant dense<0.000000e+00> : vector<2x32xf32>
    %817 = tpu.matmul %815, %598, %cst_330 {dimension_numbers = #tpu.dot_dimension_numbers<[1], [0], [0], [1], [0, 0, 1, 1], [], []>} : vector<2x32xf32>, vector<32x32xf32>, vector<2x32xf32> -> vector<2x32xf32>
    %cst_331 = arith.constant dense<0.000000e+00> : vector<2x32xf32>
    %818 = tpu.matmul %815, %600, %cst_331 {dimension_numbers = #tpu.dot_dimension_numbers<[1], [0], [0], [1], [0, 0, 1, 1], [], []>} : vector<2x32xf32>, vector<32x32xf32>, vector<2x32xf32> -> vector<2x32xf32>
    %819 = vector.broadcast %612 : vector<1x32xf32> to vector<2x32xf32>
    %820 = arith.addf %818, %819 : vector<2x32xf32>
    %821 = vector.extract_strided_slice %618 {offsets = [6, 0, 0], sizes = [1, 2, 32], strides = [1, 1, 1]} : vector<8x2x32xf32> to vector<1x2x32xf32>
    %822 = vector.shape_cast %821 : vector<1x2x32xf32> to vector<2x32xf32>
    %823 = arith.addf %822, %816 : vector<2x32xf32>
    %824 = arith.negf %823 : vector<2x32xf32>
    %825 = math.exp %824 : vector<2x32xf32>
    %cst_332 = arith.constant 1.000000e+00 : f32
    %826 = vector.broadcast %cst_332 : f32 to vector<2x32xf32>
    %827 = arith.addf %826, %825 : vector<2x32xf32>
    %828 = arith.divf %826, %827 : vector<2x32xf32>
    %829 = vector.extract_strided_slice %624 {offsets = [6, 0, 0], sizes = [1, 2, 32], strides = [1, 1, 1]} : vector<8x2x32xf32> to vector<1x2x32xf32>
    %830 = vector.shape_cast %829 : vector<1x2x32xf32> to vector<2x32xf32>
    %831 = arith.addf %830, %817 : vector<2x32xf32>
    %832 = arith.negf %831 : vector<2x32xf32>
    %833 = math.exp %832 : vector<2x32xf32>
    %cst_333 = arith.constant 1.000000e+00 : f32
    %834 = vector.broadcast %cst_333 : f32 to vector<2x32xf32>
    %835 = arith.addf %834, %833 : vector<2x32xf32>
    %836 = arith.divf %834, %835 : vector<2x32xf32>
    %837 = vector.extract_strided_slice %628 {offsets = [6, 0, 0], sizes = [1, 2, 32], strides = [1, 1, 1]} : vector<8x2x32xf32> to vector<1x2x32xf32>
    %838 = vector.shape_cast %837 : vector<1x2x32xf32> to vector<2x32xf32>
    %839 = arith.mulf %828, %820 : vector<2x32xf32>
    %840 = arith.addf %838, %839 : vector<2x32xf32>
    %841 = math.tanh %840 : vector<2x32xf32>
    %cst_334 = arith.constant 1.000000e+00 : f32
    %842 = vector.broadcast %cst_334 : f32 to vector<2x32xf32>
    %843 = arith.subf %842, %836 : vector<2x32xf32>
    %844 = arith.mulf %843, %841 : vector<2x32xf32>
    %845 = arith.mulf %836, %815 : vector<2x32xf32>
    %846 = arith.addf %844, %845 : vector<2x32xf32>
    %cst_335 = arith.constant dense<0.000000e+00> : vector<2x32xf32>
    %847 = tpu.matmul %846, %596, %cst_335 {dimension_numbers = #tpu.dot_dimension_numbers<[1], [0], [0], [1], [0, 0, 1, 1], [], []>} : vector<2x32xf32>, vector<32x32xf32>, vector<2x32xf32> -> vector<2x32xf32>
    %cst_336 = arith.constant dense<0.000000e+00> : vector<2x32xf32>
    %848 = tpu.matmul %846, %598, %cst_336 {dimension_numbers = #tpu.dot_dimension_numbers<[1], [0], [0], [1], [0, 0, 1, 1], [], []>} : vector<2x32xf32>, vector<32x32xf32>, vector<2x32xf32> -> vector<2x32xf32>
    %cst_337 = arith.constant dense<0.000000e+00> : vector<2x32xf32>
    %849 = tpu.matmul %846, %600, %cst_337 {dimension_numbers = #tpu.dot_dimension_numbers<[1], [0], [0], [1], [0, 0, 1, 1], [], []>} : vector<2x32xf32>, vector<32x32xf32>, vector<2x32xf32> -> vector<2x32xf32>
    %850 = vector.broadcast %612 : vector<1x32xf32> to vector<2x32xf32>
    %851 = arith.addf %849, %850 : vector<2x32xf32>
    %852 = vector.extract_strided_slice %618 {offsets = [7, 0, 0], sizes = [1, 2, 32], strides = [1, 1, 1]} : vector<8x2x32xf32> to vector<1x2x32xf32>
    %853 = vector.shape_cast %852 : vector<1x2x32xf32> to vector<2x32xf32>
    %854 = arith.addf %853, %847 : vector<2x32xf32>
    %855 = arith.negf %854 : vector<2x32xf32>
    %856 = math.exp %855 : vector<2x32xf32>
    %cst_338 = arith.constant 1.000000e+00 : f32
    %857 = vector.broadcast %cst_338 : f32 to vector<2x32xf32>
    %858 = arith.addf %857, %856 : vector<2x32xf32>
    %859 = arith.divf %857, %858 : vector<2x32xf32>
    %860 = vector.extract_strided_slice %624 {offsets = [7, 0, 0], sizes = [1, 2, 32], strides = [1, 1, 1]} : vector<8x2x32xf32> to vector<1x2x32xf32>
    %861 = vector.shape_cast %860 : vector<1x2x32xf32> to vector<2x32xf32>
    %862 = arith.addf %861, %848 : vector<2x32xf32>
    %863 = arith.negf %862 : vector<2x32xf32>
    %864 = math.exp %863 : vector<2x32xf32>
    %cst_339 = arith.constant 1.000000e+00 : f32
    %865 = vector.broadcast %cst_339 : f32 to vector<2x32xf32>
    %866 = arith.addf %865, %864 : vector<2x32xf32>
    %867 = arith.divf %865, %866 : vector<2x32xf32>
    %868 = vector.extract_strided_slice %628 {offsets = [7, 0, 0], sizes = [1, 2, 32], strides = [1, 1, 1]} : vector<8x2x32xf32> to vector<1x2x32xf32>
    %869 = vector.shape_cast %868 : vector<1x2x32xf32> to vector<2x32xf32>
    %870 = arith.mulf %859, %851 : vector<2x32xf32>
    %871 = arith.addf %869, %870 : vector<2x32xf32>
    %872 = math.tanh %871 : vector<2x32xf32>
    %cst_340 = arith.constant 1.000000e+00 : f32
    %873 = vector.broadcast %cst_340 : f32 to vector<2x32xf32>
    %874 = arith.subf %873, %867 : vector<2x32xf32>
    %875 = arith.mulf %874, %872 : vector<2x32xf32>
    %876 = arith.mulf %867, %846 : vector<2x32xf32>
    %877 = arith.addf %875, %876 : vector<2x32xf32>
    %c0_341 = arith.constant 0 : index
    %c2_342 = arith.constant 2 : index
    %c0_343 = arith.constant 0 : index
    %c0_344 = arith.constant 0 : index
    %878 = vector.load %arg7[%c0_341, %c2_342, %c0_343, %c0_344] : memref<1x3x2x32xf32, #tpu.memory_space<vmem>>, vector<1x1x2x32xf32>
    %879 = vector.shape_cast %878 : vector<1x1x2x32xf32> to vector<2x32xf32>
    %880 = vector.shape_cast %877 : vector<2x32xf32> to vector<1x1x2x32xf32>
    tpu.vector_store %arg7[%c0_341, %c2_342, %c0_343, %c0_344], %880 {strides = array<i32>} : memref<1x3x2x32xf32, #tpu.memory_space<vmem>>, vector<1x1x2x32xf32>,
    return
  }
  func.func @transform_0(%arg0: i32) -> (i32, i32, i32, i32) {
    %c0_i32 = arith.constant 0 : i32
    %c0_i32_0 = arith.constant 0 : i32
    %c0_i32_1 = arith.constant 0 : i32
    %c0_i32_2 = arith.constant 0 : i32
    return %arg0, %c0_i32, %c0_i32_0, %c0_i32_1 : i32, i32, i32, i32
  }
  func.func @transform_1(%arg0: i32) -> (i32, i32, i32, i32) {
    %c0_i32 = arith.constant 0 : i32
    %c0_i32_0 = arith.constant 0 : i32
    %c0_i32_1 = arith.constant 0 : i32
    %c0_i32_2 = arith.constant 0 : i32
    return %arg0, %c0_i32, %c0_i32_0, %c0_i32_1 : i32, i32, i32, i32
  }
  func.func @transform_2(%arg0: i32) -> (i32, i32, i32, i32, i32) {
    %c0_i32 = arith.constant 0 : i32
    %c0_i32_0 = arith.constant 0 : i32
    %c0_i32_1 = arith.constant 0 : i32
    %c0_i32_2 = arith.constant 0 : i32
    %c0_i32_3 = arith.constant 0 : i32
    return %arg0, %c0_i32, %c0_i32_0, %c0_i32_1, %c0_i32_2 : i32, i32, i32, i32, i32
  }
  func.func @transform_3(%arg0: i32) -> (i32, i32, i32, i32, i32) {
    %c0_i32 = arith.constant 0 : i32
    %c0_i32_0 = arith.constant 0 : i32
    %c0_i32_1 = arith.constant 0 : i32
    %c0_i32_2 = arith.constant 0 : i32
    %c0_i32_3 = arith.constant 0 : i32
    return %arg0, %c0_i32, %c0_i32_0, %c0_i32_1, %c0_i32_2 : i32, i32, i32, i32, i32
  }
  func.func @transform_4(%arg0: i32) -> (i32, i32, i32, i32, i32) {
    %c0_i32 = arith.constant 0 : i32
    %c0_i32_0 = arith.constant 0 : i32
    %c0_i32_1 = arith.constant 0 : i32
    %c0_i32_2 = arith.constant 0 : i32
    %c0_i32_3 = arith.constant 0 : i32
    return %arg0, %c0_i32, %c0_i32_0, %c0_i32_1, %c0_i32_2 : i32, i32, i32, i32, i32
  }
  func.func @transform_5(%arg0: i32) -> (i32, i32, i32, i32, i32) {
    %c0_i32 = arith.constant 0 : i32
    %c0_i32_0 = arith.constant 0 : i32
    %c0_i32_1 = arith.constant 0 : i32
    %c0_i32_2 = arith.constant 0 : i32
    %c0_i32_3 = arith.constant 0 : i32
    return %arg0, %c0_i32, %c0_i32_0, %c0_i32_1, %c0_i32_2 : i32, i32, i32, i32, i32
  }
  func.func @transform_6(%arg0: i32) -> (i32, i32, i32, i32) {
    %c0_i32 = arith.constant 0 : i32
    %c0_i32_0 = arith.constant 0 : i32
    %c0_i32_1 = arith.constant 0 : i32
    %c0_i32_2 = arith.constant 0 : i32
    return %arg0, %c0_i32, %c0_i32_0, %c0_i32_1 : i32, i32, i32, i32
  }
}

</mosaic_0001>

<bundles_post_ra>
// kernel: forward.1
= control target key start
LH: loop header
LB: loop body
LE: loop exit
PB: predicated region body
PF: predicated region fallthrough
CT: control target
= control target key end

     0   :  { %11 = vsyncpa [#allocation3], 0  ;;  %s11113_s0 = inlined_call_operand.vmem [shape: f32[3,8,2,16], index: 0, kind: input, shape index: {}]   ;;  %s11114_s1 = inlined_call_operand.vmem [shape: f32[3,3,16,32], index: 1, kind: input, shape index: {}]   ;;  %s11115_s2 = inlined_call_operand.vmem [shape: f32[3,2,3,32,32], index: 2, kind: input, shape index: {}]   ;;  %s11116_s3 = inlined_call_operand.hbm [shape: f32[3,3,3,32,32], index: 3, kind: input, shape index: {}]   ;;  %s11117_s4 = inlined_call_operand.vmem [shape: f32[3,3,3,1,32], index: 4, kind: input, shape index: {}]   ;;  %s11118_s5 = inlined_call_operand.vmem [shape: f32[3,3,3,1,32], index: 5, kind: input, shape index: {}]   ;;  %s11119_s6 = inlined_call_operand.vmem [shape: f32[3,3,2,32], index: 6, kind: output, shape index: {}]  }
   0x1   :  { %13 = vsyncpa [#allocation3 + $0x1], 0  ;;  %s9529_s21 = smov 0   ;;  %s9531_s22 = smov 0  }
   0x2   :  { %s9533_s23 = smov 0   ;;  %s9535_s24 = smov 0  }
   0x3 LB: > { %s9548_s25 = sadd.s32 4294967295, %s9486_s24   ;;  %s9551_s26 = sadd.s32 1, %s9486_s24   ;;  %s9486_s24 = sphi %s9535_s24, %s11128_s24   ;;  %s9482_s23 = sphi %s9533_s23, %s11127_s23   ;;  %s9478_s22 = sphi %s9531_s22, %s11126_s22   ;;  %s9474_s21 = sphi %s9529_s21, %s11125_s21  }
   0x4   : > { %s101_s27 = ssub.s32 %s9486_s24, %s9551_s26  ;;  %s104_s28 = sadd.s32 1, %s9482_s23 }
   0x5   : > { %p102_p0 = scmp.eq.s32.totalorder %s101_s27, 0  ;;  %p111_p1 = scmp.ne.s32.totalorder %s9482_s23, %s9478_s22 }
   0x6   : > { %p112_p2 = scmp.eq.s32.totalorder %s9486_s24, 0  ;;  %p117_p3 = scmp.ne.s32.totalorder %s9478_s22, %s9474_s21 }
   0x7   : > { %s9561_s29 = scalar_select %p102_p0, %s9482_s23, %s104_s28  }
   0x8   : > { %p113_p4 = por %p112_p2, %p111_p1  ;;  %p118_p5 = scmp.eq.s32.totalorder %s9548_s25, 0 }
   0x9   : > { %p9146_p6 = scmp.lt.s32.totalorder %s9486_s24, 3  ;;  %s243_s7 = sand.u32 1, %s9482_s23  }
   0xa   : > { %p9565_p7 = por %p118_p5, %p117_p3  ;;  %s9133_s8 = smul.u32 288, %s243_s7 }
   0xb   : > { %s9134_s9 = smul.u32 4608, %s9486_s24  ;;  %p9571_p8 = pnand %p9146_p6, %p113_p4 }
   0xc   : > { %s11121_s30 = scalar_select %p9565_p7, 1, 0 }
   0xd   : > { %s9578_s13 = scalar_lea.hbm %s11116_s3, %s9134_s9  ;;  %s247_s14 = scalar_lea.vmem [#allocation2], %s9133_s8 }
   0xe   : > { %s254_s15 = sshll.u32 %s247_s14, 4  ;;  %s9583_s16 = scalar_lea.sflag [#allocation3], %s243_s7  ;;  %s9580_s15 = int_to_ptr.vmem [resolvable:$true] %s254_s15 }
   0xf   : > { %s9424_s17 = scalar_lea.hbm %s9578_s13, 4608  ;;  %p9426_p11 = pneg %p9571_p8 }
  0x10   : > { %p9425_p10 = scmp.ne.s32.totalorder %s9578_s13, %s9424_s17  ;;  %s9429_s20 = scalar_lea.hbm %s11116_s3, 13824 }
  0x11   : > { %p9430_p0 = scmp.lt.s32.totalorder %s9578_s13, %s11116_s3  ;;  %p9431_p1 = scmp.lt.s32.totalorder %s9429_s20, %s9424_s17 }
  0x12   : > { %p9427_p12 = pnand %p9426_p11, %p9425_p10 }
  0x13   : > { %p9432_p2 = por %p9431_p1, %p9430_p0 }
  0x14   : > { %p9428_p13 = pneg %p9427_p12 }
  0x16   : > { %p9433_p3 = pnand %p9432_p2, %p9428_p13 }
  0x18   : > { %9436 = shalt.err (!%p9433_p3)
}
  0x19   : > { %s9437_s28 = scalar_lea.vmem %s9580_s15, 4608  ;;  %s9488_s7 = smov [#allocation2]  }
  0x1a   : > { %p9438_p4 = scmp.ne.s32.totalorder %s9580_s15, %s9437_s28  ;;  %s9442_s8 = sshll.u32 %s9488_s7, 4  ;;  %s9443_s8 = int_to_ptr.vmem [resolvable:$false] %s9442_s8 }
  0x1b   : > { %s9444_s9 = scalar_lea.vmem %s9443_s8, 9216  ;;  %p9445_p10 = scmp.lt.s32.totalorder %s9580_s15, %s9443_s8 }
  0x1c   : > { %p9440_p5 = pnand %p9438_p4, %p9426_p11  ;;  %p9446_p12 = scmp.lt.s32.totalorder %s9444_s9, %s9437_s28 }
  0x1e   : > { %p9441_p6 = pneg %p9440_p5  ;;  %p9447_p9 = por %p9446_p12, %p9445_p10 }
  0x20   : > { %p9448_p7 = pnand %p9447_p9, %p9441_p6 }
  0x22   : > { %9451 = shalt.err (!%p9448_p7)
}
  0x23   : > { %s9489_s11 = smov 128   ;;  %s9490_s12 = smov 8  }
  0x24   : > { %9145 = dma.hbm_to_vmem [thread:$0]  (!%p9571_p8), %s9578_s13, 4608, %s9580_s15, %s9583_s16, %s9489_s11, %s9489_s11, %s9490_s12  }
  0x25   : > { %p276_p11 = scmp.lt.s32.totalorder %s9486_s24, 4  ;;  %p11123_p13 = scmp.ge.s32.totalorder %s9486_s24, 1 }
  0x27   : > { %p277_p0 = pnand %p11123_p13, %p276_p11 }
  0x28   : > { %s282_s14 = sand.u32 (!%p277_p0), 1, %s9478_s22   ;;  %p11124_p7 = scmp.ne.s32.totalorder (!%p277_p0), %s11121_s30, 0 }
  0x29   : > { %280 = sbr.rel (%p277_p0) target bundleno = 6081 (0x17c1), region = 44  ;;  %s283_s18 = scalar_lea.sflag (!%p277_p0), [#allocation3], %s282_s14 }
  0x2a   : > { %s9135_s17 = smul.u32 (!%p277_p0), 288, %s282_s14 }
  0x2c   : > { %s9608_s19 = scalar_lea.vmem (!%p277_p0), [#allocation2], %s9135_s17 }
  0x2e   : > { %9469 = dma.done.wait (%p11124_p7), %s283_s18, 4608  }
  0x2f   : > { %9471 = vsyncadd (%p11124_p7), %s283_s18, 4294962688  ;;  %p338_p9 = scmp.lt.s32.totalorder %s9548_s25, 2  ;;  %v425_v0 = vlaneseq  ;;  %v9491_v1 = vmov 1983009808   ;;  %v9492_v24 = vmov 0.0   ;;  %vm454_vm0 = vcmask 130048  }
  0x30   : > { %v423_v2 = vunpack.c.l.s4 %v9491_v1  ;;  %v9643_v30 = vld [vmem:[%s9608_s19 + $0x18] sm:$0xff]  ;;  %v9649_v32 = vld [vmem:[%s9608_s19 + $0x10] sm:$0xff]  ;;  %v9655_v33 = vld [vmem:[%s9608_s19 + $0x8] sm:$0xff]  ;;  %vm9493_vm1 = vmmov 0   ;;  %vm844_vm2 = vcmask 261120   ;;  %vm2782_vm3 = vcmask 1041408  }
  0x31   : > { %s11130_s25 = smov (!%p338_p9, %s9548_s25), 2  ;;  %v426_v4 = vshrl.u32 %v425_v0, 7  ;;  %v9658_v34 = vld [vmem:[%s9608_s19 + $0x38] sm:$0xff]  ;;  %v9665_v35 = vld [vmem:[%s9608_s19] sm:$0xff]  ;;  %v9670_v36 = vld [vmem:[%s9608_s19 + $0x30] sm:$0xff]  ;;  %vm2784_vm4 = vcmask 1043456  }
  0x32   : > { %v424_v3 = vunpack.c.0.s8 %v423_v2  ;;  %s9136_s24 = smul.u32 48, %s11130_s25  ;;  %s7845_s10 = sshll.u32 %s11130_s25, 4  ;;  %v9678_v37 = vld [vmem:[%s9608_s19 + $0x28] sm:$0xff]  ;;  %v9683_v38 = vld [vmem:[%s9608_s19 + $0x58] sm:$0xff]  ;;  %v9687_v39 = vld [vmem:[%s9608_s19 + $0x20] sm:$0xff]  ;;  %vm2786_vm5 = vcmask 1045504  }
  0x33   : > { %s342_s16 = scalar_lea.vmem %s11113_s0, %s7845_s10  ;;  %v9694_v40 = vld [vmem:[%s9608_s19 + $0x50] sm:$0xff]  ;;  %v9701_v41 = vld [vmem:[%s9608_s19 + $0x48] sm:$0xff]  ;;  %v9707_v42 = vld [vmem:[%s9608_s19 + $0x40] sm:$0xff]  ;;  %s9138_s27 = smul.u32 9, %s11130_s25  ;;  %vm2723_vm6 = vcmask 254976  }
  0x34   : > { %s9626_s21 = scalar_lea.vmem %s11114_s1, %s9136_s24  ;;  %v9631_v8 = vsub.s32 %v424_v3, %v426_v4  ;;  %v366_v10 = vld [vmem:[%s342_s16] sm:$0x3]  ;;  %v367_v11 = vld [vmem:[%s342_s16 + $0x2] sm:$0x3]  ;;  %v368_v12 = vld [vmem:[%s342_s16 + $0x4] sm:$0x3] }
  0x35   : > { %v375_v5 = vld [vmem:[%s9626_s21 + $0x8] sm:$0xff]  ;;  %v7623_v6 = vld [vmem:[%s9626_s21 + $0x18] sm:$0xff]  ;;  %v374_v7 = vld [vmem:[%s9626_s21] sm:$0xff]  ;;  %v420_v14 = vcombine.low %v366_v10, %v367_v11  ;;  %s9741_s8 = scalar_lea.vmem %s11117_s4, %s9138_s27  ;;  %s9746_s12 = scalar_lea.vmem %s11118_s5, %s9138_s27 }
  0x36   : > { %8254 = vmatprep.subr.mxu0 %v375_v5  ;;  %8261 = vmatprep.subr.mxu1 %v7623_v6  ;;  %v7622_v9 = vld [vmem:[%s9626_s21 + $0x10] sm:$0xff]  ;;  %v369_v13 = vld [vmem:[%s342_s16 + $0x6] sm:$0x3]  ;;  %v7625_v15 = vld [vmem:[%s9626_s21 + $0x28] sm:$0xff]  ;;  %s9137_s14 = smul.u32 192, %s11130_s25 }
  0x37   : > { %8255 = vmatpush3.msra.mxu0 %v375_v5  ;;  %8262 = vmatpush3.msra.mxu1 %v7623_v6  ;;  %v421_v16 = vcombine.low %v368_v12, %v369_v13  ;;  %v370_v17 = vld [vmem:[%s342_s16 + $0x8] sm:$0x3]  ;;  %v371_v18 = vld [vmem:[%s342_s16 + $0xa] sm:$0x3]  ;;  %v372_v19 = vld [vmem:[%s342_s16 + $0xc] sm:$0x3]  ;;  %v428_v20 = vrot.slane %v420_v14, %v9631_v8 }
  0x38   : > { %8256 = vmatprep.subr.mxu0 %v374_v7  ;;  %8263 = vmatprep.subr.mxu1 %v7622_v9  ;;  %v373_v21 = vld [vmem:[%s342_s16 + $0xe] sm:$0x3]  ;;  %v437_v22 = vcombine.low %v370_v17, %v371_v18  ;;  %v7624_v31 = vld [vmem:[%s9626_s21 + $0x20] sm:$0xff]  ;;  %s10131_s24 = scalar_lea.vmem %s11115_s2, %s9137_s14  ;;  %s9139_s10 = smul.u32 6, %s11130_s25 }
  0x39   : > { %8257 = vmatpush3.msra.mxu0 %v374_v7  ;;  %8264 = vmatpush3.msra.mxu1 %v7622_v9  ;;  %v435_v23 = vrot.slane %v421_v16, %v9631_v8  ;;  %v438_v25 = vcombine.low %v372_v19, %v373_v21  ;;  %v7638_v43 = vld [vmem:[%s9741_s8] ss:$0 sm:$0xff]  ;;  %v7642_v44 = vld [vmem:[%s9741_s8 + $0x1] ss:$0 sm:$0xff]  ;;  %v7646_v56 = vld [vmem:[%s9741_s8 + $0x2] ss:$0 sm:$0xff] }
  0x3a   : > { %8268 = vmatprep.subr.mxu0 %v7625_v15  ;;  %8275 = vmatprep.subr.mxu1 %v9492_v24  ;;  %v445_v26 = vrot.slane %v437_v22, %v9631_v8  ;;  %v7641_v45 = vld [vmem:[%s9746_s12] ss:$0 sm:$0xff]  ;;  %v7645_v47 = vld [vmem:[%s9746_s12 + $0x1] ss:$0 sm:$0xff]  ;;  %s10157_s16 = scalar_lea.vmem %s11119_s6, %s9139_s10 }
  0x3b   : > { %v436_v27 = vcombine.low %v428_v20, %v435_v23  ;;  %v452_v28 = vrot.slane %v438_v25, %v9631_v8 }
  0x3d   : > { %8258 = vmatprep.mubr.msk.f32.mxu0 %vm454_vm0, %v436_v27  ;;  %8265 = vmatprep.mubr.msk.f32.mxu1 %vm454_vm0, %v436_v27  ;;  %v453_v29 = vcombine.low %v445_v26, %v452_v28 }
  0x3f   : > { %8259 = vmatmul.mubr.msk.f32.vlgmr.msra.gmra.mxu0 %vm454_vm0, %v453_v29  ;;  %8266 = vmatmul.mubr.msk.f32.vlgmr.msra.gmra.mxu1 %vm454_vm0, %v453_v29 }
  0x40   : > { %8269 = vmatpush3.msra.mxu0 %v7625_v15  ;;  %8276 = vmatpush3.msra.mxu1 %v9643_v30  ;;  %v9774_v15 = vld [vmem:[%s9746_s12 + $0x2] ss:$0 sm:$0xff] }
  0x41   : > { %8270 = vmatprep.subr.mxu0 %v7624_v31  ;;  %8277 = vmatprep.subr.mxu1 %v9492_v24 }
  0x42   : > { %8271 = vmatpush3.msra.mxu0 %v7624_v31  ;;  %8278 = vmatpush3.msra.mxu1 %v9649_v32 }
  0x43   : > { %8272 = vmatprep.mubr.msk.f32.mxu0 %vm454_vm0, %v436_v27  ;;  %8279 = vmatprep.subr.mxu1 %v9492_v24 }
  0x44   : > { %8286 = vmatprep.subr.mxu0 %v9492_v24  ;;  %8273 = vmatmul.mubr.msk.f32.vlgmr.msra.gmra.mxu0 %vm454_vm0, %v453_v29 }
  0x45   : > { %8280 = vmatpush3.msra.mxu1 %v9655_v33  ;;  %8287 = vmatpush3.msra.mxu0 %v9658_v34 }
  0x46   : > { %8281 = vmatprep.subr.mxu1 %v9492_v24  ;;  %8288 = vmatprep.subr.mxu0 %v9492_v24 }
  0x47   : > { %8282 = vmatpush3.msra.mxu1 %v9665_v35  ;;  %8283 = vmatprep.mubr.msk.f32.mxu1 %vm9493_vm1, %v9492_v24 }
  0x48   : > { %8289 = vmatpush3.msra.mxu0 %v9670_v36  ;;  %8284 = vmatmul.mubr.f32.vlgmr.msra.gmra.mxu1 %v9492_v24 }
  0x49   : > { %8290 = vmatprep.subr.mxu0 %v9492_v24  ;;  %8294 = vmatprep.mubr.msk.f32.mxu0 %vm9493_vm1, %v9492_v24 }
  0x4a   : > { %8291 = vmatpush3.msra.mxu0 %v9678_v37  ;;  %8297 = vmatprep.subr.mxu1 %v9492_v24 }
  0x4b   : > { %8292 = vmatprep.subr.mxu0 %v9492_v24  ;;  %8298 = vmatpush3.msra.mxu1 %v9683_v38 }
  0x4c   : > { %8293 = vmatpush3.msra.mxu0 %v9687_v39  ;;  %8299 = vmatprep.subr.mxu1 %v9492_v24 }
  0x4d   : > { %8295 = vmatmul.mubr.f32.vlgmr.msra.gmra.mxu0 %v9492_v24  ;;  %8300 = vmatpush3.msra.mxu1 %v9694_v40 }
  0x4e   : > { %8301 = vmatprep.subr.mxu1 %v9492_v24  ;;  %8305 = vmatprep.mubr.msk.f32.mxu1 %vm9493_vm1, %v9492_v24 }
  0x4f   : > { %8302 = vmatpush3.msra.mxu1 %v9701_v41  ;;  %8308 = vmatprep.subr.mxu0 %v9492_v24 }
  0x50   : > { %8303 = vmatprep.subr.mxu1 %v9492_v24  ;;  %8309 = vmatpush3.msra.mxu0 %v9643_v30 }
  0x51   : > { %8304 = vmatpush3.msra.mxu1 %v9707_v42  ;;  %8310 = vmatprep.subr.mxu0 %v9492_v24 }
  0x52   : > { %8306 = vmatmul.mubr.f32.vlgmr.msra.gmra.mxu1 %v9492_v24  ;;  %8319 = vmatprep.subr.mxu1 %v9492_v24 }
  0x53   : > { %8320 = vmatpush3.msra.mxu1 %v9658_v34  ;;  %8311 = vmatpush3.msra.mxu0 %v9649_v32 }
  0x54   : > { %8321 = vmatprep.subr.mxu1 %v9492_v24  ;;  %8312 = vmatprep.subr.mxu0 %v9492_v24 }
  0x55   : > { %8322 = vmatpush3.msra.mxu1 %v9670_v36  ;;  %8313 = vmatpush3.msra.mxu0 %v9655_v33 }
  0x56   : > { %8323 = vmatprep.subr.mxu1 %v9492_v24  ;;  %8314 = vmatprep.subr.mxu0 %v9492_v24 }
  0x57   : > { %8324 = vmatpush3.msra.mxu1 %v9678_v37  ;;  %8315 = vmatpush3.msra.mxu0 %v9665_v35 }
  0x58   : > { %8325 = vmatprep.subr.mxu1 %v9492_v24  ;;  %8316 = vmatprep.mubr.msk.f32.mxu0 %vm9493_vm1, %v9492_v24 }
  0x59   : > { %8326 = vmatpush3.msra.mxu1 %v9687_v39  ;;  %8327 = vmatprep.mubr.msk.f32.mxu1 %vm9493_vm1, %v9492_v24 }
  0x5a   : > { %8330 = vmatprep.subr.mxu0 %v9492_v24  ;;  %8341 = vmatprep.subr.mxu1 %v9492_v24 }
  0xff   : > { %v8260_v46 = vpop.f32.mrf.mxu0  ;;  %v8267_v48 = vpop.f32.mrf.mxu1 }
 0x100   : > { %v531_v49 = vadd.f32 %v8260_v46, %v7638_v43  ;;  %v664_v50 = vadd.f32 %v8267_v48, %v7642_v44 }
 0x101   : > { %v525_v51 = vpop.f32.mrf.mxu0  ;;  %v658_v55 = vpop.f32.mrf.mxu1 }
 0x102   : > { %v9752_v52 = vadd.f32 %v7641_v45, %v531_v49  ;;  %v9754_v53 = vadd.f32 %v7645_v47, %v664_v50  ;;  %v526_v54 = vadd.f32 %v7638_v43, %v525_v51  ;;  %v659_v59 = vadd.f32 %v7642_v44, %v658_v55 }
 0x104   : > { %v9757_v57 = vadd.f32 %v7641_v45, %v526_v54  ;;  %v8274_v58 = vpop.f32.mrf.mxu0  ;;  %v9765_v63 = vadd.f32 %v7645_v47, %v659_v59 }
 0x105   : > { %v9759_v60 = vadd.f32 %v8274_v58, %v7646_v56 }
 0x106   : > { %v9763_v61 = vrot.slane %v9757_v57, %v9631_v8  ;;  %v791_v1 = vpop.f32.mrf.mxu0  ;;  %v9770_v4 = vrot.slane %v9765_v63, %v9631_v8 }
 0x107   : > { %v9776_v16 = vadd.f32 %v7646_v56, %v791_v1 }
 0x108   : > { %v914_v62 = vpop.f32.mrf.mxu1  ;;  %v559_v31 = vcombine.high %v9763_v61, %v9763_v61  ;;  %v692_v49 = vcombine.high %v9770_v4, %v9770_v4 }
 0x109   : > { %v1064_v0 = vadd.f32 %v914_v62, %v9763_v61  ;;  %v9781_v20 = vrot.slane %v9776_v16, %v9631_v8 }
 0x10a   : > { %v8285_v2 = vpop.f32.mrf.mxu1 }
 0x10b   : > { %v7650_v3 = vmul.f32 -1.442695, %v1064_v0  ;;  %v817_v1 = vcombine.high %v9781_v20, %v9781_v20 }
 0x10d   : > { %9184 = vpow2.f32 %v7650_v3  ;;  %v984_v5 = vpop.f32.mrf.mxu0 }
 0x10e   : > { %v1071_v6 = vadd.f32 %v984_v5, %v9770_v4 }
 0x10f   : > { %v8296_v7 = vpop.f32.mrf.mxu0 }
 0x110   : > { %v7651_v10 = vmul.f32 -1.442695, %v1071_v6 }
 0x112   : > { %v1060_v9 = vpop.f32.mrf.mxu1  ;;  %9186 = vpow2.f32 %v7651_v10 }
 0x113   : > { %v1061_v18 = vadd.f32 %v9774_v15, %v1060_v9 }
 0x114   : > { %v8307_v11 = vpop.f32.mrf.mxu1 }
 0x115   : > { %v544_v11 = vcombine.high %v9757_v57, %v9757_v57 }
 0x11a   : > { %v9185_v12 = vpop.eup %9184 }
 0x11b   : > { %v1068_v13 = vadd.f32 1.0, %v9185_v12  ;;  %v9871_v12 = vrot.slane %v544_v11, %v9631_v8 }
 0x11d   : > { %9188 = vrcp.f32 %v1068_v13 }
 0x11f   : > { %v9187_v14 = vpop.eup %9186 }
 0x120   : > { %v1075_v17 = vadd.f32 1.0, %v9187_v14 }
 0x122   : > { %9190 = vrcp.f32 %v1075_v17 }
 0x12a   : > { %v9189_v19 = vpop.eup %9188 }
 0x12b   : > { %v1078_v21 = vmul.f32 %v9189_v19, %v1061_v18  ;;  %v677_v18 = vcombine.high %v9765_v63, %v9765_v63  ;;  %v802_v63 = vcombine.high %v9776_v16, %v9776_v16  ;;  %v560_v16 = vcombine.high %v9871_v12, %v9871_v12 }
 0x12d   : > { %v1079_v22 = vadd.f32 %v1078_v21, %v9781_v20 }
 0x12f   : > { %9192 = vtanh.f32 %v1079_v22  ;;  %v9191_v23 = vpop.eup %9190  ;;  %v9877_v22 = vrot.slane %v677_v18, %v9631_v8 }
 0x130   : > { %v1081_v25 = vsub.f32 1.0, %v9191_v23  ;;  %v1083_v28 = vmul.f32 0.0, %v9191_v23 }
 0x13c   : > { %v9193_v26 = vpop.eup %9192 }
 0x13d   : > { %v1082_v27 = vmul.f32 %v9193_v26, %v1081_v25 }
 0x13f   : > { %v9784_v29 = vadd.f32 %v1083_v28, %v1082_v27 }
 0x141   : > { %8317 = vmatmul.mubr.msk.f32.vlgmr.msra.gmra.mxu0 %vm844_vm2, %v9784_v29  ;;  %8328 = vmatmul.mubr.msk.f32.vlgmr.msra.gmra.mxu1 %vm844_vm2, %v9784_v29 }
 0x142   : > { %8331 = vmatpush3.msra.mxu0 %v9683_v38  ;;  %8338 = vmatprep.mubr.msk.f32.mxu0 %vm9493_vm1, %v9492_v24 }
 0x143   : > { %8332 = vmatprep.subr.mxu0 %v9492_v24  ;;  %8342 = vmatpush3.msra.mxu1 %v9643_v30 }
 0x144   : > { %8333 = vmatpush3.msra.mxu0 %v9694_v40  ;;  %8343 = vmatprep.subr.mxu1 %v9492_v24 }
 0x145   : > { %8334 = vmatprep.subr.mxu0 %v9492_v24  ;;  %8344 = vmatpush3.msra.mxu1 %v9649_v32 }
 0x146   : > { %8335 = vmatpush3.msra.mxu0 %v9701_v41  ;;  %8345 = vmatprep.subr.mxu1 %v9492_v24 }
 0x147   : > { %8336 = vmatprep.subr.mxu0 %v9492_v24  ;;  %8346 = vmatpush3.msra.mxu1 %v9655_v33 }
 0x148   : > { %8337 = vmatpush3.msra.mxu0 %v9707_v42  ;;  %8347 = vmatprep.subr.mxu1 %v9492_v24 }
 0x149   : > { %8339 = vmatmul.mubr.msk.f32.vlgmr.msra.gmra.mxu0 %vm844_vm2, %v9784_v29  ;;  %8352 = vmatprep.subr.mxu0 %v9492_v24 }
 0x14a   : > { %8353 = vmatpush3.msra.mxu0 %v9658_v34  ;;  %8348 = vmatpush3.msra.mxu1 %v9665_v35 }
 0x14b   : > { %8354 = vmatprep.subr.mxu0 %v9492_v24  ;;  %8349 = vmatprep.mubr.msk.f32.mxu1 %vm9493_vm1, %v9492_v24 }
 0x14c   : > { %8355 = vmatpush3.msra.mxu0 %v9670_v36  ;;  %8360 = vmatprep.mubr.msk.f32.mxu0 %vm9493_vm1, %v9492_v24 }
 0x14d   : > { %8356 = vmatprep.subr.mxu0 %v9492_v24  ;;  %8363 = vmatprep.subr.mxu1 %v9492_v24 }
 0x14e   : > { %8357 = vmatpush3.msra.mxu0 %v9678_v37 }
 0x14f   : > { %8358 = vmatprep.subr.mxu0 %v9492_v24 }
 0x150   : > { %8359 = vmatpush3.msra.mxu0 %v9687_v39 }
 0x151   : > { %8374 = vmatprep.subr.mxu0 %v9492_v24 }
 0x201   : > { %v1154_v43 = vpop.f32.mrf.mxu0  ;;  %v1224_v44 = vpop.f32.mrf.mxu1 }
 0x202   : > { %v1298_v45 = vadd.f32 %v1154_v43, %v559_v31  ;;  %v1305_v50 = vadd.f32 %v1224_v44, %v692_v49 }
 0x203   : > { %v8318_v46 = vpop.f32.mrf.mxu0  ;;  %v8329_v47 = vpop.f32.mrf.mxu1 }
 0x204   : > { %v7655_v48 = vmul.f32 -1.442695, %v1298_v45  ;;  %v7656_v55 = vmul.f32 -1.442695, %v1305_v50  ;;  %v9884_v46 = vrot.slane %v802_v63, %v9631_v8 }
 0x206   : > { %9194 = vpow2.f32 %v7655_v48 }
 0x207   : > { %9196 = vpow2.f32 %v7656_v55 }
 0x209   : > { %v1294_v51 = vpop.f32.mrf.mxu0 }
 0x20a   : > { %v1295_v62 = vadd.f32 %v9774_v15, %v1294_v51 }
 0x20b   : > { %v8340_v54 = vpop.f32.mrf.mxu0 }
 0x213   : > { %v9195_v56 = vpop.eup %9194 }
 0x214   : > { %v1302_v58 = vadd.f32 1.0, %v9195_v56  ;;  %v9197_v59 = vpop.eup %9196 }
 0x215   : > { %v1309_v61 = vadd.f32 1.0, %v9197_v59 }
 0x216   : > { %9198 = vrcp.f32 %v1302_v58 }
 0x217   : > { %9200 = vrcp.f32 %v1309_v61 }
 0x223   : > { %v9199_v0 = vpop.eup %9198 }
 0x224   : > { %v1312_v2 = vmul.f32 %v9199_v0, %v1295_v62  ;;  %v9201_v4 = vpop.eup %9200 }
 0x225   : > { %v1315_v5 = vsub.f32 1.0, %v9201_v4  ;;  %v1317_v9 = vmul.f32 %v9201_v4, %v9784_v29 }
 0x226   : > { %v1313_v3 = vadd.f32 %v1312_v2, %v817_v1  ;;  %v693_v2 = vcombine.high %v9877_v22, %v9877_v22 }
 0x228   : > { %9202 = vtanh.f32 %v1313_v3 }
 0x235   : > { %v9203_v6 = vpop.eup %9202 }
 0x236   : > { %v1316_v7 = vmul.f32 %v9203_v6, %v1315_v5 }
 0x238   : > { %v9830_v10 = vadd.f32 %v1317_v9, %v1316_v7 }
 0x23a   : > { %8350 = vmatmul.mubr.msk.f32.vlgmr.msra.gmra.mxu1 %vm844_vm2, %v9830_v10  ;;  %8361 = vmatmul.mubr.msk.f32.vlgmr.msra.gmra.mxu0 %vm844_vm2, %v9830_v10 }
 0x23b   : > { %8364 = vmatpush3.msra.mxu1 %v9683_v38  ;;  %8371 = vmatprep.mubr.msk.f32.mxu1 %vm9493_vm1, %v9492_v24 }
 0x23c   : > { %8365 = vmatprep.subr.mxu1 %v9492_v24  ;;  %8375 = vmatpush3.msra.mxu0 %v9643_v30 }
 0x23d   : > { %8366 = vmatpush3.msra.mxu1 %v9694_v40  ;;  %8376 = vmatprep.subr.mxu0 %v9492_v24 }
 0x23e   : > { %8367 = vmatprep.subr.mxu1 %v9492_v24  ;;  %8377 = vmatpush3.msra.mxu0 %v9649_v32 }
 0x23f   : > { %8368 = vmatpush3.msra.mxu1 %v9701_v41  ;;  %8378 = vmatprep.subr.mxu0 %v9492_v24 }
 0x240   : > { %8369 = vmatprep.subr.mxu1 %v9492_v24  ;;  %8379 = vmatpush3.msra.mxu0 %v9655_v33 }
 0x241   : > { %8370 = vmatpush3.msra.mxu1 %v9707_v42  ;;  %8380 = vmatprep.subr.mxu0 %v9492_v24 }
 0x242   : > { %8372 = vmatmul.mubr.msk.f32.vlgmr.msra.gmra.mxu1 %vm844_vm2, %v9830_v10  ;;  %8385 = vmatprep.subr.mxu1 %v9492_v24 }
 0x243   : > { %8386 = vmatpush3.msra.mxu1 %v9658_v34  ;;  %8381 = vmatpush3.msra.mxu0 %v9665_v35 }
 0x244   : > { %8387 = vmatprep.subr.mxu1 %v9492_v24  ;;  %8382 = vmatprep.mubr.msk.f32.mxu0 %vm9493_vm1, %v9492_v24 }
 0x245   : > { %8388 = vmatpush3.msra.mxu1 %v9670_v36  ;;  %8393 = vmatprep.mubr.msk.f32.mxu1 %vm9493_vm1, %v9492_v24 }
 0x246   : > { %8389 = vmatprep.subr.mxu1 %v9492_v24  ;;  %8396 = vmatprep.subr.mxu0 %v9492_v24 }
 0x247   : > { %8390 = vmatpush3.msra.mxu1 %v9678_v37 }
 0x248   : > { %8391 = vmatprep.subr.mxu1 %v9492_v24 }
 0x249   : > { %8392 = vmatpush3.msra.mxu1 %v9687_v39 }
 0x24a   : > { %8407 = vmatprep.subr.mxu1 %v9492_v24 }
 0x2fa   : > { %v1388_v13 = vpop.f32.mrf.mxu1  ;;  %v1458_v14 = vpop.f32.mrf.mxu0 }
 0x2fb   : > { %v1532_v17 = vadd.f32 %v1388_v13, %v9871_v12  ;;  %v1539_v23 = vadd.f32 %v1458_v14, %v9877_v22 }
 0x2fc   : > { %v8351_v19 = vpop.f32.mrf.mxu1  ;;  %v8362_v20 = vpop.f32.mrf.mxu0 }
 0x2fd   : > { %v7660_v21 = vmul.f32 -1.442695, %v1532_v17  ;;  %v7661_v26 = vmul.f32 -1.442695, %v1539_v23  ;;  %v818_v17 = vcombine.high %v9884_v46, %v9884_v46 }
 0x2ff   : > { %9204 = vpow2.f32 %v7660_v21 }
 0x300   : > { %9206 = vpow2.f32 %v7661_v26  ;;  %v9974_v26 = vrot.slane %v9752_v52, %v9631_v8 }
 0x302   : > { %v1528_v57 = vpop.f32.mrf.mxu1 }
 0x303   : > { %v1529_v44 = vadd.f32 %v9774_v15, %v1528_v57 }
 0x304   : > { %v8373_v25 = vpop.f32.mrf.mxu1 }
 0x30c   : > { %v9205_v27 = vpop.eup %9204 }
 0x30d   : > { %v1536_v28 = vadd.f32 1.0, %v9205_v27  ;;  %v9207_v31 = vpop.eup %9206 }
 0x30e   : > { %v1543_v43 = vadd.f32 1.0, %v9207_v31 }
 0x30f   : > { %9208 = vrcp.f32 %v1536_v28 }
 0x310   : > { %9210 = vrcp.f32 %v1543_v43 }
 0x31c   : > { %v9209_v45 = vpop.eup %9208 }
 0x31d   : > { %v1546_v47 = vmul.f32 %v9209_v45, %v1529_v44  ;;  %v9211_v49 = vpop.eup %9210  ;;  %v9979_v45 = vrot.slane %v9754_v53, %v9631_v8 }
 0x31e   : > { %v1549_v50 = vsub.f32 1.0, %v9211_v49  ;;  %v1551_v55 = vmul.f32 %v9211_v49, %v9830_v10 }
 0x31f   : > { %v1547_v48 = vadd.f32 %v1546_v47, %v9884_v46 }
 0x321   : > { %9212 = vtanh.f32 %v1547_v48 }
 0x32e   : > { %v9213_v51 = vpop.eup %9212 }
 0x32f   : > { %v1550_v54 = vmul.f32 %v9213_v51, %v1549_v50 }
 0x331   : > { %v9888_v56 = vadd.f32 %v1551_v55, %v1550_v54 }
 0x333   : > { %8383 = vmatmul.mubr.msk.f32.vlgmr.msra.gmra.mxu0 %vm844_vm2, %v9888_v56  ;;  %8394 = vmatmul.mubr.msk.f32.vlgmr.msra.gmra.mxu1 %vm844_vm2, %v9888_v56 }
 0x334   : > { %8397 = vmatpush3.msra.mxu0 %v9683_v38  ;;  %8404 = vmatprep.mubr.msk.f32.mxu0 %vm9493_vm1, %v9492_v24 }
 0x335   : > { %8398 = vmatprep.subr.mxu0 %v9492_v24  ;;  %8408 = vmatpush3.msra.mxu1 %v9643_v30 }
 0x336   : > { %8399 = vmatpush3.msra.mxu0 %v9694_v40  ;;  %8409 = vmatprep.subr.mxu1 %v9492_v24 }
 0x337   : > { %8400 = vmatprep.subr.mxu0 %v9492_v24  ;;  %8410 = vmatpush3.msra.mxu1 %v9649_v32 }
 0x338   : > { %8401 = vmatpush3.msra.mxu0 %v9701_v41  ;;  %8411 = vmatprep.subr.mxu1 %v9492_v24 }
 0x339   : > { %8402 = vmatprep.subr.mxu0 %v9492_v24  ;;  %8412 = vmatpush3.msra.mxu1 %v9655_v33 }
 0x33a   : > { %8403 = vmatpush3.msra.mxu0 %v9707_v42  ;;  %8413 = vmatprep.subr.mxu1 %v9492_v24 }
 0x33b   : > { %8405 = vmatmul.mubr.msk.f32.vlgmr.msra.gmra.mxu0 %vm844_vm2, %v9888_v56  ;;  %8418 = vmatprep.subr.mxu0 %v9492_v24 }
 0x33c   : > { %8419 = vmatpush3.msra.mxu0 %v9658_v34  ;;  %8414 = vmatpush3.msra.mxu1 %v9665_v35 }
 0x33d   : > { %8420 = vmatprep.subr.mxu0 %v9492_v24  ;;  %8415 = vmatprep.mubr.msk.f32.mxu1 %vm9493_vm1, %v9492_v24 }
 0x33e   : > { %8421 = vmatpush3.msra.mxu0 %v9670_v36  ;;  %8426 = vmatprep.mubr.msk.f32.mxu0 %vm9493_vm1, %v9492_v24 }
 0x33f   : > { %8422 = vmatprep.subr.mxu0 %v9492_v24  ;;  %8429 = vmatprep.subr.mxu1 %v9492_v24 }
 0x340   : > { %8423 = vmatpush3.msra.mxu0 %v9678_v37 }
 0x341   : > { %8424 = vmatprep.subr.mxu0 %v9492_v24 }
 0x342   : > { %8425 = vmatpush3.msra.mxu0 %v9687_v39 }
 0x343   : > { %8440 = vmatprep.subr.mxu0 %v9492_v24 }
 0x3f3   : > { %v1622_v58 = vpop.f32.mrf.mxu0  ;;  %v1692_v59 = vpop.f32.mrf.mxu1 }
 0x3f4   : > { %v1766_v61 = vadd.f32 %v1622_v58, %v560_v16  ;;  %v1773_v3 = vadd.f32 %v1692_v59, %v693_v2  ;;  %v9985_v59 = vrot.slane %v9759_v60, %v9631_v8 }
 0x3f5   : > { %v8384_v62 = vpop.f32.mrf.mxu0  ;;  %v8395_v0 = vpop.f32.mrf.mxu1 }
 0x3f6   : > { %v7665_v1 = vmul.f32 -1.442695, %v1766_v61  ;;  %v7666_v6 = vmul.f32 -1.442695, %v1773_v3 }
 0x3f8   : > { %9214 = vpow2.f32 %v7665_v1 }
 0x3f9   : > { %9216 = vpow2.f32 %v7666_v6  ;;  %v576_v6 = vcombine.high %v9974_v26, %v9974_v26 }
 0x3fb   : > { %v1762_v4 = vpop.f32.mrf.mxu0 }
 0x3fc   : > { %v1763_v13 = vadd.f32 %v9774_v15, %v1762_v4 }
 0x3fd   : > { %v8406_v5 = vpop.f32.mrf.mxu0 }
 0x405   : > { %v9215_v7 = vpop.eup %9214 }
 0x406   : > { %v1770_v9 = vadd.f32 1.0, %v9215_v7  ;;  %v9217_v11 = vpop.eup %9216 }
 0x407   : > { %v1777_v12 = vadd.f32 1.0, %v9217_v11 }
 0x408   : > { %9218 = vrcp.f32 %v1770_v9 }
 0x409   : > { %9220 = vrcp.f32 %v1777_v12 }
 0x415   : > { %v9219_v14 = vpop.eup %9218 }
 0x416   : > { %v1780_v18 = vmul.f32 %v9219_v14, %v1763_v13  ;;  %v9221_v20 = vpop.eup %9220 }
 0x417   : > { %v1783_v21 = vsub.f32 1.0, %v9221_v20  ;;  %v1785_v57 = vmul.f32 %v9221_v20, %v9888_v56 }
 0x418   : > { %v1781_v19 = vadd.f32 %v1780_v18, %v818_v17  ;;  %v709_v17 = vcombine.high %v9979_v45, %v9979_v45 }
 0x41a   : > { %9222 = vtanh.f32 %v1781_v19 }
 0x427   : > { %v9223_v22 = vpop.eup %9222 }
 0x428   : > { %v1784_v23 = vmul.f32 %v9223_v22, %v1783_v21 }
 0x42a   : > { %v9934_v25 = vadd.f32 %v1785_v57, %v1784_v23 }
 0x42c   : > { %8416 = vmatmul.mubr.msk.f32.vlgmr.msra.gmra.mxu1 %vm844_vm2, %v9934_v25  ;;  %8427 = vmatmul.mubr.msk.f32.vlgmr.msra.gmra.mxu0 %vm844_vm2, %v9934_v25 }
 0x42d   : > { %8430 = vmatpush3.msra.mxu1 %v9683_v38  ;;  %8437 = vmatprep.mubr.msk.f32.mxu1 %vm9493_vm1, %v9492_v24 }
 0x42e   : > { %8431 = vmatprep.subr.mxu1 %v9492_v24  ;;  %8441 = vmatpush3.msra.mxu0 %v9643_v30 }
 0x42f   : > { %8432 = vmatpush3.msra.mxu1 %v9694_v40  ;;  %8442 = vmatprep.subr.mxu0 %v9492_v24 }
 0x430   : > { %8433 = vmatprep.subr.mxu1 %v9492_v24  ;;  %8443 = vmatpush3.msra.mxu0 %v9649_v32 }
 0x431   : > { %8434 = vmatpush3.msra.mxu1 %v9701_v41  ;;  %8444 = vmatprep.subr.mxu0 %v9492_v24 }
 0x432   : > { %8435 = vmatprep.subr.mxu1 %v9492_v24  ;;  %8445 = vmatpush3.msra.mxu0 %v9655_v33 }
 0x433   : > { %8436 = vmatpush3.msra.mxu1 %v9707_v42  ;;  %8446 = vmatprep.subr.mxu0 %v9492_v24 }
 0x434   : > { %8438 = vmatmul.mubr.msk.f32.vlgmr.msra.gmra.mxu1 %vm844_vm2, %v9934_v25  ;;  %8451 = vmatprep.subr.mxu1 %v9492_v24 }
 0x435   : > { %8452 = vmatpush3.msra.mxu1 %v9658_v34  ;;  %8447 = vmatpush3.msra.mxu0 %v9665_v35 }
 0x436   : > { %8453 = vmatprep.subr.mxu1 %v9492_v24  ;;  %8448 = vmatprep.mubr.msk.f32.mxu0 %vm9493_vm1, %v9492_v24 }
 0x437   : > { %8454 = vmatpush3.msra.mxu1 %v9670_v36  ;;  %8459 = vmatprep.mubr.msk.f32.mxu1 %vm9493_vm1, %v9492_v24 }
 0x438   : > { %8455 = vmatprep.subr.mxu1 %v9492_v24  ;;  %8462 = vmatprep.subr.mxu0 %v9492_v24 }
 0x439   : > { %8456 = vmatpush3.msra.mxu1 %v9678_v37 }
 0x43a   : > { %8457 = vmatprep.subr.mxu1 %v9492_v24 }
 0x43b   : > { %8458 = vmatpush3.msra.mxu1 %v9687_v39 }
 0x43c   : > { %8473 = vmatprep.subr.mxu1 %v9492_v24 }
 0x4ec   : > { %v1856_v27 = vpop.f32.mrf.mxu1  ;;  %v1926_v28 = vpop.f32.mrf.mxu0 }
 0x4ed   : > { %v2000_v31 = vadd.f32 %v1856_v27, %v9974_v26  ;;  %v2007_v46 = vadd.f32 %v1926_v28, %v9979_v45 }
 0x4ee   : > { %v8417_v63 = vpop.f32.mrf.mxu1  ;;  %v8428_v43 = vpop.f32.mrf.mxu0 }
 0x4ef   : > { %v7670_v44 = vmul.f32 -1.442695, %v2000_v31  ;;  %v7671_v49 = vmul.f32 -1.442695, %v2007_v46  ;;  %v834_v31 = vcombine.high %v9985_v59, %v9985_v59 }
 0x4f1   : > { %9224 = vpow2.f32 %v7670_v44 }
 0x4f2   : > { %9226 = vpow2.f32 %v7671_v49 }
 0x4f4   : > { %v1996_v47 = vpop.f32.mrf.mxu1 }
 0x4f5   : > { %v1997_v16 = vadd.f32 %v9774_v15, %v1996_v47 }
 0x4f6   : > { %v8439_v48 = vpop.f32.mrf.mxu1 }
 0x4fe   : > { %v9225_v50 = vpop.eup %9224 }
 0x4ff   : > { %v2004_v51 = vadd.f32 1.0, %v9225_v50  ;;  %v9227_v54 = vpop.eup %9226 }
 0x500   : > { %v2011_v55 = vadd.f32 1.0, %v9227_v54 }
 0x501   : > { %9228 = vrcp.f32 %v2004_v51 }
 0x502   : > { %9230 = vrcp.f32 %v2011_v55 }
 0x50e   : > { %v9229_v58 = vpop.eup %9228 }
 0x50f   : > { %v2014_v61 = vmul.f32 %v9229_v58, %v1997_v16  ;;  %v9231_v0 = vpop.eup %9230 }
 0x510   : > { %v2017_v1 = vsub.f32 1.0, %v9231_v0  ;;  %v2019_v4 = vmul.f32 %v9231_v0, %v9934_v25 }
 0x511   : > { %v2015_v62 = vadd.f32 %v2014_v61, %v9985_v59 }
 0x513   : > { %9232 = vtanh.f32 %v2015_v62 }
 0x520   : > { %v9233_v2 = vpop.eup %9232 }
 0x521   : > { %v2018_v3 = vmul.f32 %v9233_v2, %v2017_v1 }
 0x523   : > { %v9989_v5 = vadd.f32 %v2019_v4, %v2018_v3 }
 0x525   : > { %8449 = vmatmul.mubr.msk.f32.vlgmr.msra.gmra.mxu0 %vm844_vm2, %v9989_v5  ;;  %8460 = vmatmul.mubr.msk.f32.vlgmr.msra.gmra.mxu1 %vm844_vm2, %v9989_v5 }
 0x526   : > { %8463 = vmatpush3.msra.mxu0 %v9683_v38  ;;  %8470 = vmatprep.mubr.msk.f32.mxu0 %vm9493_vm1, %v9492_v24 }
 0x527   : > { %8464 = vmatprep.subr.mxu0 %v9492_v24  ;;  %8474 = vmatpush3.msra.mxu1 %v9643_v30 }
 0x528   : > { %8465 = vmatpush3.msra.mxu0 %v9694_v40  ;;  %8475 = vmatprep.subr.mxu1 %v9492_v24 }
 0x529   : > { %8466 = vmatprep.subr.mxu0 %v9492_v24  ;;  %8476 = vmatpush3.msra.mxu1 %v9649_v32 }
 0x52a   : > { %8467 = vmatpush3.msra.mxu0 %v9701_v41  ;;  %8477 = vmatprep.subr.mxu1 %v9492_v24 }
 0x52b   : > { %8468 = vmatprep.subr.mxu0 %v9492_v24  ;;  %8478 = vmatpush3.msra.mxu1 %v9655_v33 }
 0x52c   : > { %8469 = vmatpush3.msra.mxu0 %v9707_v42  ;;  %8479 = vmatprep.subr.mxu1 %v9492_v24 }
 0x52d   : > { %8471 = vmatmul.mubr.msk.f32.vlgmr.msra.gmra.mxu0 %vm844_vm2, %v9989_v5  ;;  %8484 = vmatprep.subr.mxu0 %v9492_v24 }
 0x52e   : > { %8485 = vmatpush3.msra.mxu0 %v9658_v34  ;;  %8480 = vmatpush3.msra.mxu1 %v9665_v35 }
 0x52f   : > { %8486 = vmatprep.subr.mxu0 %v9492_v24  ;;  %8481 = vmatprep.mubr.msk.f32.mxu1 %vm9493_vm1, %v9492_v24 }
 0x530   : > { %8487 = vmatpush3.msra.mxu0 %v9670_v36  ;;  %8492 = vmatprep.mubr.msk.f32.mxu0 %vm9493_vm1, %v9492_v24 }
 0x531   : > { %8488 = vmatprep.subr.mxu0 %v9492_v24  ;;  %8495 = vmatprep.subr.mxu1 %v9492_v24 }
 0x532   : > { %8489 = vmatpush3.msra.mxu0 %v9678_v37 }
 0x533   : > { %8490 = vmatprep.subr.mxu0 %v9492_v24 }
 0x534   : > { %8491 = vmatpush3.msra.mxu0 %v9687_v39 }
 0x535   : > { %8506 = vmatprep.subr.mxu0 %v9492_v24 }
 0x5e5   : > { %v2090_v7 = vpop.f32.mrf.mxu0  ;;  %v2160_v9 = vpop.f32.mrf.mxu1 }
 0x5e6   : > { %v2234_v11 = vadd.f32 %v2090_v7, %v576_v6  ;;  %v2241_v18 = vadd.f32 %v2160_v9, %v709_v17  ;;  %v2743_v6 = vcombine.low %v9934_v25, %v9934_v25  ;;  %v2725_v7 = vcombine.low %v9830_v10, %v9830_v10 }
 0x5e7   : > { %v8450_v12 = vpop.f32.mrf.mxu0  ;;  %v8461_v13 = vpop.f32.mrf.mxu1 }
 0x5e8   : > { %v7675_v14 = vmul.f32 -1.442695, %v2234_v11  ;;  %v7676_v21 = vmul.f32 -1.442695, %v2241_v18  ;;  %v2750_v11 = vrot.slane %v2743_v6, %v9631_v8  ;;  %v2732_v13 = vrot.slane %v2725_v7, %v9631_v8  ;;  %v10169_v6 = vld [vmem:[%s9608_s19 + $0x78] sm:$0xff] }
 0x5ea   : > { %9234 = vpow2.f32 %v7675_v14  ;;  %v2783_v10 = vsel %vm2782_vm3, %v9784_v29, %v2732_v13  ;;  %v2792_v29 = vld [vmem:[%s10131_s24 + $0x8] sm:$0xff]  ;;  %v10190_v13 = vld [vmem:[%s9608_s19 + $0x60] sm:$0xff] }
 0x5eb   : > { %9236 = vpow2.f32 %v7676_v21 }
 0x5ed   : > { %v2230_v19 = vpop.f32.mrf.mxu0 }
 0x5ee   : > { %v2231_v27 = vadd.f32 %v9774_v15, %v2230_v19 }
 0x5ef   : > { %v8472_v20 = vpop.f32.mrf.mxu0 }
 0x5f0   : > { %v2751_v20 = vcombine.low %v2750_v11, %v2750_v11  ;;  %v7692_v11 = vld [vmem:[%s10131_s24 + $0x48] sm:$0xff] }
 0x5f7   : > { %v9235_v22 = vpop.eup %9234 }
 0x5f8   : > { %v2238_v23 = vadd.f32 1.0, %v9235_v22  ;;  %v9237_v57 = vpop.eup %9236  ;;  %v7688_v22 = vld [vmem:[%s10131_s24 + $0x28] sm:$0xff] }
 0x5f9   : > { %v2245_v26 = vadd.f32 1.0, %v9237_v57  ;;  %v7687_v57 = vld [vmem:[%s10131_s24 + $0x20] sm:$0xff] }
 0x5fa   : > { %9238 = vrcp.f32 %v2238_v23  ;;  %v2791_v23 = vld [vmem:[%s10131_s24] sm:$0xff] }
 0x5fb   : > { %9240 = vrcp.f32 %v2245_v26  ;;  %v7694_v26 = vld [vmem:[%s10131_s24 + $0x58] sm:$0xff] }
 0x607   : > { %v9239_v28 = vpop.eup %9238 }
 0x608   : > { %v2248_v63 = vmul.f32 %v9239_v28, %v2231_v27  ;;  %v9241_v44 = vpop.eup %9240 }
 0x609   : > { %v2251_v45 = vsub.f32 1.0, %v9241_v44  ;;  %v2253_v48 = vmul.f32 %v9241_v44, %v9989_v5 }
 0x60a   : > { %v2249_v43 = vadd.f32 %v2248_v63, %v834_v31 }
 0x60c   : > { %9242 = vtanh.f32 %v2249_v43 }
 0x619   : > { %v9243_v46 = vpop.eup %9242 }
 0x61a   : > { %v2252_v47 = vmul.f32 %v9243_v46, %v2251_v45 }
 0x61c   : > { %v10035_v49 = vadd.f32 %v2253_v48, %v2252_v47 }
 0x61e   : > { %8482 = vmatmul.mubr.msk.f32.vlgmr.msra.gmra.mxu1 %vm844_vm2, %v10035_v49  ;;  %8493 = vmatmul.mubr.msk.f32.vlgmr.msra.gmra.mxu0 %vm844_vm2, %v10035_v49 }
 0x61f   : > { %8496 = vmatpush3.msra.mxu1 %v9683_v38  ;;  %8503 = vmatprep.mubr.msk.f32.mxu1 %vm9493_vm1, %v9492_v24 }
 0x620   : > { %8497 = vmatprep.subr.mxu1 %v9492_v24  ;;  %8507 = vmatpush3.msra.mxu0 %v9643_v30  ;;  %v561_v30 = vcombine.high %v9752_v52, %v9752_v52 }
 0x621   : > { %8498 = vmatpush3.msra.mxu1 %v9694_v40  ;;  %8508 = vmatprep.subr.mxu0 %v9492_v24 }
 0x622   : > { %8499 = vmatprep.subr.mxu1 %v9492_v24  ;;  %8509 = vmatpush3.msra.mxu0 %v9649_v32  ;;  %v10075_v32 = vrot.slane %v561_v30, %v9631_v8 }
 0x623   : > { %8500 = vmatpush3.msra.mxu1 %v9701_v41  ;;  %8510 = vmatprep.subr.mxu0 %v9492_v24 }
 0x624   : > { %8501 = vmatprep.subr.mxu1 %v9492_v24  ;;  %8511 = vmatpush3.msra.mxu0 %v9655_v33  ;;  %v577_v27 = vcombine.high %v10075_v32, %v10075_v32 }
 0x625   : > { %8502 = vmatpush3.msra.mxu1 %v9707_v42  ;;  %8512 = vmatprep.subr.mxu0 %v9492_v24 }
 0x626   : > { %8504 = vmatmul.mubr.msk.f32.vlgmr.msra.gmra.mxu1 %vm844_vm2, %v10035_v49  ;;  %8517 = vmatprep.subr.mxu1 %v9492_v24 }
 0x627   : > { %8518 = vmatpush3.msra.mxu1 %v9658_v34  ;;  %8513 = vmatpush3.msra.mxu0 %v9665_v35 }
 0x628   : > { %8519 = vmatprep.subr.mxu1 %v9492_v24  ;;  %8514 = vmatprep.mubr.msk.f32.mxu0 %vm9493_vm1, %v9492_v24 }
 0x629   : > { %8520 = vmatpush3.msra.mxu1 %v9670_v36  ;;  %8525 = vmatprep.mubr.msk.f32.mxu1 %vm9493_vm1, %v9492_v24  ;;  %v694_v36 = vcombine.high %v9754_v53, %v9754_v53  ;;  %v819_v53 = vcombine.high %v9759_v60, %v9759_v60  ;;  %v2740_v60 = vrot.slane %v9888_v56, %v9631_v8 }
 0x62a   : > { %8521 = vmatprep.subr.mxu1 %v9492_v24  ;;  %8528 = vmatprep.subr.mxu0 %v9492_v24 }
 0x62b   : > { %8522 = vmatpush3.msra.mxu1 %v9678_v37  ;;  %v10081_v54 = vrot.slane %v694_v36, %v9631_v8  ;;  %v10088_v2 = vrot.slane %v819_v53, %v9631_v8  ;;  %v2741_v17 = vcombine.low %v2740_v60, %v2740_v60  ;;  %v10177_v60 = vld [vmem:[%s9608_s19 + $0x70] sm:$0xff] }
 0x62c   : > { %8523 = vmatprep.subr.mxu1 %v9492_v24 }
 0x62d   : > { %8524 = vmatpush3.msra.mxu1 %v9687_v39  ;;  %v2785_v56 = vsel %vm2784_vm4, %v2783_v10, %v2741_v17  ;;  %v710_v46 = vcombine.high %v10081_v54, %v10081_v54  ;;  %v10203_v17 = vld [vmem:[%s9608_s19 + $0xb8] sm:$0xff]  ;;  %v10228_v10 = vld [vmem:[%s9608_s19 + $0x80] sm:$0xff] }
 0x62e   : > { %v10110_v21 = vsel %vm2786_vm5, %v2785_v56, %v2751_v20  ;;  %v10218_v20 = vld [vmem:[%s9608_s19 + $0x88] sm:$0xff]  ;;  %v10234_v56 = vld [vmem:[%s9608_s19 + $0xa0] sm:$0xff] }
 0x6de   : > { %v2324_v33 = vpop.f32.mrf.mxu1  ;;  %v2394_v34 = vpop.f32.mrf.mxu0 }
 0x6df   : > { %v2468_v35 = vadd.f32 %v2324_v33, %v10075_v32  ;;  %v2475_v39 = vadd.f32 %v2394_v34, %v10081_v54 }
 0x6e0   : > { %v8483_v50 = vpop.f32.mrf.mxu1  ;;  %v8494_v51 = vpop.f32.mrf.mxu0 }
 0x6e1   : > { %v7680_v37 = vmul.f32 -1.442695, %v2468_v35  ;;  %v7681_v16 = vmul.f32 -1.442695, %v2475_v39 }
 0x6e3   : > { %9244 = vpow2.f32 %v7680_v37  ;;  %v835_v37 = vcombine.high %v10088_v2, %v10088_v2 }
 0x6e4   : > { %9246 = vpow2.f32 %v7681_v16 }
 0x6e6   : > { %v2464_v52 = vpop.f32.mrf.mxu1 }
 0x6e7   : > { %v2465_v0 = vadd.f32 %v9774_v15, %v2464_v52 }
 0x6e8   : > { %v8505_v55 = vpop.f32.mrf.mxu1 }
 0x6f0   : > { %v9245_v58 = vpop.eup %9244 }
 0x6f1   : > { %v2472_v59 = vadd.f32 1.0, %v9245_v58  ;;  %v9247_v61 = vpop.eup %9246 }
 0x6f2   : > { %v2479_v62 = vadd.f32 1.0, %v9247_v61 }
 0x6f3   : > { %9248 = vrcp.f32 %v2472_v59 }
 0x6f4   : > { %9250 = vrcp.f32 %v2479_v62 }
 0x700   : > { %v9249_v1 = vpop.eup %9248 }
 0x701   : > { %v2482_v3 = vmul.f32 %v9249_v1, %v2465_v0  ;;  %v9251_v9 = vpop.eup %9250 }
 0x702   : > { %v2485_v12 = vsub.f32 1.0, %v9251_v9  ;;  %v2487_v19 = vmul.f32 %v9251_v9, %v10035_v49  ;;  %v7693_v9 = vld [vmem:[%s10131_s24 + $0x50] sm:$0xff] }
 0x703   : > { %v2483_v4 = vadd.f32 %v2482_v3, %v10088_v2 }
 0x705   : > { %9252 = vtanh.f32 %v2483_v4 }
 0x712   : > { %v9253_v14 = vpop.eup %9252 }
 0x713   : > { %v2486_v18 = vmul.f32 %v9253_v14, %v2485_v12  ;;  %v7691_v12 = vld [vmem:[%s10131_s24 + $0x40] sm:$0xff]  ;;  %v10198_v14 = vld [vmem:[%s9608_s19 + $0x98] sm:$0xff] }
 0x715   : > { %v10100_v25 = vadd.f32 %v2487_v19, %v2486_v18  ;;  %v10207_v18 = vld [vmem:[%s9608_s19 + $0x90] sm:$0xff] }
 0x716   : > { %v10214_v19 = vld [vmem:[%s9608_s19 + $0xb0] sm:$0xff] }
 0x717   : > { %8515 = vmatmul.mubr.msk.f32.vlgmr.msra.gmra.mxu0 %vm844_vm2, %v10100_v25  ;;  %8526 = vmatmul.mubr.msk.f32.vlgmr.msra.gmra.mxu1 %vm844_vm2, %v10100_v25  ;;  %v2768_v61 = vrot.slane %v10100_v25, %v9631_v8 }
 0x718   : > { %8529 = vmatpush3.msra.mxu0 %v9683_v38  ;;  %8547 = vmatprep.mubr.msk.f32.mxu1 %vm844_vm2, %v10110_v21  ;;  %v2794_v38 = vld [vmem:[%s10131_s24 + $0x18] sm:$0xff] }
 0x719   : > { %8530 = vmatprep.subr.mxu0 %v9492_v24  ;;  %8536 = vmatprep.mubr.msk.f32.mxu0 %vm9493_vm1, %v9492_v24  ;;  %v2769_v1 = vcombine.low %v2768_v61, %v2768_v61 }
 0x71a   : > { %8531 = vmatpush3.msra.mxu0 %v9694_v40  ;;  %v7690_v40 = vld [vmem:[%s10131_s24 + $0x38] sm:$0xff]  ;;  %8539 = vmatprep.subr.mxu1 %v2794_v38 }
 0x71b   : > { %8532 = vmatprep.subr.mxu0 %v9492_v24  ;;  %8540 = vmatpush3.msra.mxu1 %v2794_v38  ;;  %v7717_v38 = vld [vmem:[%s9741_s8 + $0x4] ss:$0 sm:$0xff] }
 0x71c   : > { %8533 = vmatpush3.msra.mxu0 %v9701_v41  ;;  %v2793_v41 = vld [vmem:[%s10131_s24 + $0x10] sm:$0xff] }
 0x71d   : > { %8534 = vmatprep.subr.mxu0 %v9492_v24  ;;  %8541 = vmatprep.subr.mxu1 %v2793_v41 }
 0x71e   : > { %8535 = vmatpush3.msra.mxu0 %v9707_v42  ;;  %v7689_v42 = vld [vmem:[%s10131_s24 + $0x30] sm:$0xff]  ;;  %8542 = vmatpush3.msra.mxu1 %v2793_v41 }
 0x71f   : > { %8537 = vmatmul.mubr.msk.f32.vlgmr.msra.gmra.mxu0 %vm844_vm2, %v10100_v25  ;;  %8550 = vmatprep.subr.mxu0 %v7690_v40 }
 0x720   : > { %8558 = vmatprep.mubr.msk.f32.mxu0 %vm844_vm2, %v10110_v21  ;;  %8551 = vmatpush3.msra.mxu0 %v7690_v40  ;;  %v7716_v40 = vld [vmem:[%s9746_s12 + $0x3] ss:$0 sm:$0xff] }
 0x721   : > { %8552 = vmatprep.subr.mxu0 %v7689_v42  ;;  %8543 = vmatprep.subr.mxu1 %v2792_v29 }
 0x722   : > { %8553 = vmatpush3.msra.mxu0 %v7689_v42  ;;  %8544 = vmatpush3.msra.mxu1 %v2792_v29  ;;  %v7720_v42 = vld [vmem:[%s9746_s12 + $0x4] ss:$0 sm:$0xff] }
 0x723   : > { %8554 = vmatprep.subr.mxu0 %v7688_v22  ;;  %8545 = vmatprep.subr.mxu1 %v2791_v23 }
 0x724   : > { %8555 = vmatpush3.msra.mxu0 %v7688_v22  ;;  %8546 = vmatpush3.msra.mxu1 %v2791_v23 }
 0x725   : > { %8556 = vmatprep.subr.mxu0 %v7687_v57  ;;  %8561 = vmatprep.subr.mxu1 %v7694_v26 }
 0x726   : > { %8557 = vmatpush3.msra.mxu0 %v7687_v57 }
 0x727   : > { %8572 = vmatprep.subr.mxu0 %v9492_v24 }
 0x7d7   : > { %v2558_v28 = vpop.f32.mrf.mxu0  ;;  %v2628_v31 = vpop.f32.mrf.mxu1 }
 0x7d8   : > { %v2702_v63 = vadd.f32 %v2558_v28, %v577_v27  ;;  %v2709_v47 = vadd.f32 %v2628_v31, %v710_v46 }
 0x7d9   : > { %v8516_v43 = vpop.f32.mrf.mxu0  ;;  %v8527_v44 = vpop.f32.mrf.mxu1 }
 0x7da   : > { %v7685_v45 = vmul.f32 -1.442695, %v2702_v63  ;;  %v7686_v33 = vmul.f32 -1.442695, %v2709_v47  ;;  %v7721_v43 = vld [vmem:[%s9741_s8 + $0x5] ss:$0 sm:$0xff] }
 0x7dc   : > { %9254 = vpow2.f32 %v7685_v45 }
 0x7dd   : > { %9256 = vpow2.f32 %v7686_v33 }
 0x7df   : > { %v2698_v48 = vpop.f32.mrf.mxu0 }
 0x7e0   : > { %v2699_v50 = vadd.f32 %v9774_v15, %v2698_v48  ;;  %v2753_v15 = vcombine.low %v10035_v49, %v10035_v49 }
 0x7e1   : > { %v8538_v30 = vpop.f32.mrf.mxu0 }
 0x7e2   : > { %v2760_v62 = vrot.slane %v2753_v15, %v9631_v8 }
 0x7e4   : > { %v2788_v3 = vsel %vm2782_vm3, %v9989_v5, %v2760_v62  ;;  %v10184_v5 = vld [vmem:[%s9608_s19 + $0x68] sm:$0xff] }
 0x7e5   : > { %v2789_v4 = vsel %vm2784_vm4, %v2788_v3, %v2769_v1 }
 0x7e9   : > { %v9255_v34 = vpop.eup %9254 }
 0x7ea   : > { %v2706_v35 = vadd.f32 1.0, %v9255_v34  ;;  %v9257_v32 = vpop.eup %9256 }
 0x7eb   : > { %v2713_v36 = vadd.f32 1.0, %v9257_v32 }
 0x7ec   : > { %9258 = vrcp.f32 %v2706_v35 }
 0x7ed   : > { %9260 = vrcp.f32 %v2713_v36 }
 0x7f9   : > { %v9259_v51 = vpop.eup %9258 }
 0x7fa   : > { %v2716_v39 = vmul.f32 %v9259_v51, %v2699_v50  ;;  %v9261_v52 = vpop.eup %9260 }
 0x7fb   : > { %v2719_v55 = vsub.f32 1.0, %v9261_v52  ;;  %v2721_v59 = vmul.f32 %v9261_v52, %v10100_v25  ;;  %v10224_v25 = vld [vmem:[%s9608_s19 + $0xa8] sm:$0xff] }
 0x7fc   : > { %v2717_v54 = vadd.f32 %v2716_v39, %v835_v37 }
 0x7fe   : > { %9262 = vtanh.f32 %v2717_v54 }
 0x80b   : > { %v9263_v16 = vpop.eup %9262 }
 0x80c   : > { %v2720_v58 = vmul.f32 %v9263_v16, %v2719_v55 }
 0x80e   : > { %v2722_v53 = vadd.f32 %v2721_v59, %v2720_v58  ;;  %v10293_v59 = vld [vmem:[%s9746_s12 + $0x5] ss:$0 sm:$0xff] }
 0x810   : > { %2724 = vst.msk [vmem:[%s10157_s16] sm:$0x3] %vm2723_vm6, %v2722_v53  ;;  %v2772_v0 = vcombine.low %v2722_v53, %v2722_v53 }
 0x812   : > { %v2779_v49 = vrot.slane %v2772_v0, %v9631_v8 }
 0x814   : > { %v2780_v2 = vcombine.low %v2779_v49, %v2779_v49 }
 0x816   : > { %v2790_v7 = vsel %vm2786_vm5, %v2789_v4, %v2780_v2 }
 0x817   : > { %8548 = vmatmul.mubr.msk.f32.vlgmr.msra.gmra.mxu1 %vm844_vm2, %v2790_v7  ;;  %8559 = vmatmul.mubr.msk.f32.vlgmr.msra.gmra.mxu0 %vm844_vm2, %v2790_v7 }
 0x818   : > { %8562 = vmatpush3.msra.mxu1 %v7694_v26  ;;  %8573 = vmatpush3.msra.mxu0 %v10169_v6 }
 0x819   : > { %8563 = vmatprep.subr.mxu1 %v7693_v9  ;;  %8569 = vmatprep.mubr.msk.f32.mxu1 %vm844_vm2, %v10110_v21  ;;  %v7713_v21 = vld [vmem:[%s9741_s8 + $0x3] ss:$0 sm:$0xff] }
 0x81a   : > { %8574 = vmatprep.subr.mxu0 %v9492_v24  ;;  %8564 = vmatpush3.msra.mxu1 %v7693_v9 }
 0x81b   : > { %8575 = vmatpush3.msra.mxu0 %v10177_v60  ;;  %8565 = vmatprep.subr.mxu1 %v7692_v11 }
 0x81c   : > { %8576 = vmatprep.subr.mxu0 %v9492_v24  ;;  %8566 = vmatpush3.msra.mxu1 %v7692_v11 }
 0x81d   : > { %8577 = vmatpush3.msra.mxu0 %v10184_v5  ;;  %8567 = vmatprep.subr.mxu1 %v7691_v12 }
 0x81e   : > { %8578 = vmatprep.subr.mxu0 %v9492_v24  ;;  %8568 = vmatpush3.msra.mxu1 %v7691_v12 }
 0x81f   : > { %8579 = vmatpush3.msra.mxu0 %v10190_v13  ;;  %8580 = vmatprep.mubr.msk.f32.mxu0 %vm9493_vm1, %v9492_v24 }
 0x820   : > { %8570 = vmatmul.mubr.msk.f32.vlgmr.msra.gmra.mxu1 %vm844_vm2, %v2790_v7  ;;  %8581 = vmatmul.mubr.f32.vlgmr.msra.gmra.mxu0 %v9492_v24 }
 0x821   : > { %8583 = vmatprep.subr.mxu1 %v9492_v24  ;;  %8591 = vmatprep.mubr.msk.f32.mxu1 %vm9493_vm1, %v9492_v24 }
 0x822   : > { %8584 = vmatpush3.msra.mxu1 %v10198_v14  ;;  %8594 = vmatprep.subr.mxu0 %v9492_v24 }
 0x823   : > { %8585 = vmatprep.subr.mxu1 %v9492_v24  ;;  %8595 = vmatpush3.msra.mxu0 %v10203_v17 }
 0x824   : > { %8586 = vmatpush3.msra.mxu1 %v10207_v18  ;;  %8596 = vmatprep.subr.mxu0 %v9492_v24 }
 0x825   : > { %8587 = vmatprep.subr.mxu1 %v9492_v24  ;;  %8597 = vmatpush3.msra.mxu0 %v10214_v19 }
 0x826   : > { %8588 = vmatpush3.msra.mxu1 %v10218_v20  ;;  %8598 = vmatprep.subr.mxu0 %v9492_v24 }
 0x827   : > { %8589 = vmatprep.subr.mxu1 %v9492_v24  ;;  %8599 = vmatpush3.msra.mxu0 %v10224_v25 }
 0x828   : > { %8590 = vmatpush3.msra.mxu1 %v10228_v10  ;;  %8600 = vmatprep.subr.mxu0 %v9492_v24 }
 0x829   : > { %8592 = vmatmul.mubr.f32.vlgmr.msra.gmra.mxu1 %v9492_v24  ;;  %8601 = vmatpush3.msra.mxu0 %v10234_v56 }
 0x82a   : > { %8602 = vmatprep.mubr.msk.f32.mxu0 %vm9493_vm1, %v9492_v24  ;;  %8605 = vmatprep.subr.mxu1 %v9492_v24 }
 0x82b   : > { %8603 = vmatmul.mubr.f32.vlgmr.msra.gmra.mxu0 %v9492_v24  ;;  %8606 = vmatpush3.msra.mxu1 %v10169_v6 }
 0x82c   : > { %8616 = vmatprep.subr.mxu0 %v9492_v24  ;;  %8607 = vmatprep.subr.mxu1 %v9492_v24 }
 0x82d   : > { %8617 = vmatpush3.msra.mxu0 %v10198_v14  ;;  %8608 = vmatpush3.msra.mxu1 %v10177_v60 }
 0x82e   : > { %8618 = vmatprep.subr.mxu0 %v9492_v24  ;;  %8609 = vmatprep.subr.mxu1 %v9492_v24 }
 0x82f   : > { %8619 = vmatpush3.msra.mxu0 %v10207_v18  ;;  %8610 = vmatpush3.msra.mxu1 %v10184_v5 }
 0x830   : > { %8620 = vmatprep.subr.mxu0 %v9492_v24  ;;  %8611 = vmatprep.subr.mxu1 %v9492_v24 }
 0x831   : > { %8621 = vmatpush3.msra.mxu0 %v10218_v20  ;;  %8612 = vmatpush3.msra.mxu1 %v10190_v13 }
 0x832   : > { %8622 = vmatprep.subr.mxu0 %v9492_v24  ;;  %8613 = vmatprep.mubr.msk.f32.mxu1 %vm9493_vm1, %v9492_v24 }
 0x833   : > { %8623 = vmatpush3.msra.mxu0 %v10228_v10  ;;  %8624 = vmatprep.mubr.msk.f32.mxu0 %vm9493_vm1, %v9492_v24 }
 0x834   : > { %8627 = vmatprep.subr.mxu1 %v9492_v24  ;;  %8638 = vmatprep.subr.mxu0 %v9492_v24 }
 0x8d7   : > { %v8549_v41 = vpop.f32.mrf.mxu1  ;;  %v8560_v29 = vpop.f32.mrf.mxu0 }
 0x8d8   : > { %v2916_v22 = vadd.f32 %v8549_v41, %v7713_v21  ;;  %v3049_v23 = vadd.f32 %v8560_v29, %v7717_v38 }
 0x8d9   : > { %v2910_v57 = vpop.f32.mrf.mxu1  ;;  %v3043_v63 = vpop.f32.mrf.mxu0 }
 0x8da   : > { %v10271_v26 = vadd.f32 %v7716_v40, %v2916_v22  ;;  %v10273_v27 = vadd.f32 %v7720_v42, %v3049_v23  ;;  %v2911_v28 = vadd.f32 %v7713_v21, %v2910_v57  ;;  %v3044_v45 = vadd.f32 %v7717_v38, %v3043_v63 }
 0x8dc   : > { %v10275_v31 = vadd.f32 %v7716_v40, %v2911_v28  ;;  %v10285_v35 = vadd.f32 %v7720_v42, %v3044_v45 }
 0x8de   : > { %v10280_v44 = vrot.slane %v10275_v31, %v9631_v8  ;;  %v10289_v36 = vrot.slane %v10285_v35, %v9631_v8 }
 0x8e0   : > { %v8571_v46 = vpop.f32.mrf.mxu1  ;;  %v3295_v47 = vpop.f32.mrf.mxu0  ;;  %v2944_v12 = vcombine.high %v10280_v44, %v10280_v44  ;;  %v3077_v22 = vcombine.high %v10289_v36, %v10289_v36 }
 0x8e1   : > { %v10282_v48 = vadd.f32 %v8571_v46, %v7721_v43  ;;  %v3445_v30 = vadd.f32 %v3295_v47, %v10280_v44 }
 0x8e2   : > { %v8582_v33 = vpop.f32.mrf.mxu0  ;;  %v3176_v32 = vpop.f32.mrf.mxu1 }
 0x8e3   : > { %v7725_v34 = vmul.f32 -1.442695, %v3445_v30  ;;  %v10295_v15 = vadd.f32 %v7721_v43, %v3176_v32 }
 0x8e5   : > { %9264 = vpow2.f32 %v7725_v34  ;;  %v10300_v0 = vrot.slane %v10295_v15, %v9631_v8 }
 0x8e7   : > { %v3202_v33 = vcombine.high %v10300_v0, %v10300_v0 }
 0x8e9   : > { %v3365_v50 = vpop.f32.mrf.mxu1 }
 0x8ea   : > { %v3452_v51 = vadd.f32 %v3365_v50, %v10289_v36 }
 0x8eb   : > { %v8593_v37 = vpop.f32.mrf.mxu1  ;;  %v3441_v39 = vpop.f32.mrf.mxu0 }
 0x8ec   : > { %v7726_v54 = vmul.f32 -1.442695, %v3452_v51  ;;  %v3442_v53 = vadd.f32 %v10293_v59, %v3441_v39 }
 0x8ed   : > { %v8604_v52 = vpop.f32.mrf.mxu0 }
 0x8ee   : > { %9266 = vpow2.f32 %v7726_v54  ;;  %v2929_v52 = vcombine.high %v10275_v31, %v10275_v31 }
 0x8f2   : > { %v9265_v55 = vpop.eup %9264 }
 0x8f3   : > { %v3449_v16 = vadd.f32 1.0, %v9265_v55  ;;  %v10390_v55 = vrot.slane %v2929_v52, %v9631_v8 }
 0x8f5   : > { %9268 = vrcp.f32 %v3449_v16 }
 0x8fb   : > { %v9267_v58 = vpop.eup %9266 }
 0x8fc   : > { %v3456_v61 = vadd.f32 1.0, %v9267_v58 }
 0x8fe   : > { %9270 = vrcp.f32 %v3456_v61 }
 0x902   : > { %v9269_v62 = vpop.eup %9268 }
 0x903   : > { %v3459_v1 = vmul.f32 %v9269_v62, %v3442_v53  ;;  %v3062_v53 = vcombine.high %v10285_v35, %v10285_v35  ;;  %v3187_v35 = vcombine.high %v10295_v15, %v10295_v15  ;;  %v2945_v15 = vcombine.high %v10390_v55, %v10390_v55 }
 0x905   : > { %v3460_v49 = vadd.f32 %v3459_v1, %v10300_v0 }
 0x907   : > { %9272 = vtanh.f32 %v3460_v49  ;;  %v10396_v49 = vrot.slane %v3062_v53, %v9631_v8 }
 0x90b   : > { %v9271_v2 = vpop.eup %9270 }
 0x90c   : > { %v3462_v3 = vsub.f32 1.0, %v9271_v2  ;;  %v3464_v9 = vmul.f32 0.0, %v9271_v2 }
 0x914   : > { %v9273_v4 = vpop.eup %9272 }
 0x915   : > { %v3463_v7 = vmul.f32 %v9273_v4, %v3462_v3 }
 0x917   : > { %v10303_v11 = vadd.f32 %v3464_v9, %v3463_v7 }
 0x919   : > { %8614 = vmatmul.mubr.msk.f32.vlgmr.msra.gmra.mxu1 %vm844_vm2, %v10303_v11  ;;  %8625 = vmatmul.mubr.msk.f32.vlgmr.msra.gmra.mxu0 %vm844_vm2, %v10303_v11 }
 0x91a   : > { %8628 = vmatpush3.msra.mxu1 %v10203_v17  ;;  %8635 = vmatprep.mubr.msk.f32.mxu1 %vm9493_vm1, %v9492_v24 }
 0x91b   : > { %8629 = vmatprep.subr.mxu1 %v9492_v24  ;;  %8639 = vmatpush3.msra.mxu0 %v10169_v6 }
 0x91c   : > { %8630 = vmatpush3.msra.mxu1 %v10214_v19  ;;  %8640 = vmatprep.subr.mxu0 %v9492_v24 }
 0x91d   : > { %8631 = vmatprep.subr.mxu1 %v9492_v24  ;;  %8641 = vmatpush3.msra.mxu0 %v10177_v60 }
 0x91e   : > { %8632 = vmatpush3.msra.mxu1 %v10224_v25  ;;  %8642 = vmatprep.subr.mxu0 %v9492_v24 }
 0x91f   : > { %8633 = vmatprep.subr.mxu1 %v9492_v24  ;;  %8643 = vmatpush3.msra.mxu0 %v10184_v5 }
 0x920   : > { %8634 = vmatpush3.msra.mxu1 %v10234_v56  ;;  %8644 = vmatprep.subr.mxu0 %v9492_v24 }
 0x921   : > { %8636 = vmatmul.mubr.msk.f32.vlgmr.msra.gmra.mxu1 %vm844_vm2, %v10303_v11  ;;  %8649 = vmatprep.subr.mxu1 %v9492_v24 }
 0x922   : > { %8650 = vmatpush3.msra.mxu1 %v10198_v14  ;;  %8645 = vmatpush3.msra.mxu0 %v10190_v13 }
 0x923   : > { %8651 = vmatprep.subr.mxu1 %v9492_v24  ;;  %8646 = vmatprep.mubr.msk.f32.mxu0 %vm9493_vm1, %v9492_v24 }
 0x924   : > { %8652 = vmatpush3.msra.mxu1 %v10207_v18  ;;  %8657 = vmatprep.mubr.msk.f32.mxu1 %vm9493_vm1, %v9492_v24 }
 0x925   : > { %8653 = vmatprep.subr.mxu1 %v9492_v24  ;;  %8660 = vmatprep.subr.mxu0 %v9492_v24 }
 0x926   : > { %8654 = vmatpush3.msra.mxu1 %v10218_v20 }
 0x927   : > { %8655 = vmatprep.subr.mxu1 %v9492_v24 }
 0x928   : > { %8656 = vmatpush3.msra.mxu1 %v10228_v10 }
 0x929   : > { %8671 = vmatprep.subr.mxu1 %v9492_v24 }
 0x9d9   : > { %v3535_v21 = vpop.f32.mrf.mxu1  ;;  %v3605_v38 = vpop.f32.mrf.mxu0 }
 0x9da   : > { %v3679_v40 = vadd.f32 %v3535_v21, %v2944_v12  ;;  %v3686_v23 = vadd.f32 %v3605_v38, %v3077_v22 }
 0x9db   : > { %v8615_v41 = vpop.f32.mrf.mxu1  ;;  %v8626_v42 = vpop.f32.mrf.mxu0 }
 0x9dc   : > { %v7730_v29 = vmul.f32 -1.442695, %v3679_v40  ;;  %v7731_v63 = vmul.f32 -1.442695, %v3686_v23  ;;  %v10403_v41 = vrot.slane %v3187_v35, %v9631_v8 }
 0x9de   : > { %9274 = vpow2.f32 %v7730_v29 }
 0x9df   : > { %9276 = vpow2.f32 %v7731_v63 }
 0x9e1   : > { %v3675_v57 = vpop.f32.mrf.mxu1 }
 0x9e2   : > { %v3676_v47 = vadd.f32 %v10293_v59, %v3675_v57 }
 0x9e3   : > { %v8637_v28 = vpop.f32.mrf.mxu1 }
 0x9eb   : > { %v9275_v43 = vpop.eup %9274 }
 0x9ec   : > { %v3683_v45 = vadd.f32 1.0, %v9275_v43  ;;  %v9277_v46 = vpop.eup %9276 }
 0x9ed   : > { %v3690_v44 = vadd.f32 1.0, %v9277_v46 }
 0x9ee   : > { %9278 = vrcp.f32 %v3683_v45 }
 0x9ef   : > { %9280 = vrcp.f32 %v3690_v44 }
 0x9fb   : > { %v9279_v30 = vpop.eup %9278 }
 0x9fc   : > { %v3693_v34 = vmul.f32 %v9279_v30, %v3676_v47  ;;  %v9281_v36 = vpop.eup %9280 }
 0x9fd   : > { %v3696_v50 = vsub.f32 1.0, %v9281_v36  ;;  %v3698_v39 = vmul.f32 %v9281_v36, %v10303_v11 }
 0x9fe   : > { %v3694_v32 = vadd.f32 %v3693_v34, %v3202_v33  ;;  %v3078_v34 = vcombine.high %v10396_v49, %v10396_v49 }
 0xa00   : > { %9282 = vtanh.f32 %v3694_v32 }
 0xa0d   : > { %v9283_v51 = vpop.eup %9282 }
 0xa0e   : > { %v3697_v37 = vmul.f32 %v9283_v51, %v3696_v50 }
 0xa10   : > { %v10349_v54 = vadd.f32 %v3698_v39, %v3697_v37 }
 0xa12   : > { %8647 = vmatmul.mubr.msk.f32.vlgmr.msra.gmra.mxu0 %vm844_vm2, %v10349_v54  ;;  %8658 = vmatmul.mubr.msk.f32.vlgmr.msra.gmra.mxu1 %vm844_vm2, %v10349_v54 }
 0xa13   : > { %8661 = vmatpush3.msra.mxu0 %v10203_v17  ;;  %8668 = vmatprep.mubr.msk.f32.mxu0 %vm9493_vm1, %v9492_v24 }
 0xa14   : > { %8662 = vmatprep.subr.mxu0 %v9492_v24  ;;  %8672 = vmatpush3.msra.mxu1 %v10169_v6 }
 0xa15   : > { %8663 = vmatpush3.msra.mxu0 %v10214_v19  ;;  %8673 = vmatprep.subr.mxu1 %v9492_v24 }
 0xa16   : > { %8664 = vmatprep.subr.mxu0 %v9492_v24  ;;  %8674 = vmatpush3.msra.mxu1 %v10177_v60 }
 0xa17   : > { %8665 = vmatpush3.msra.mxu0 %v10224_v25  ;;  %8675 = vmatprep.subr.mxu1 %v9492_v24 }
 0xa18   : > { %8666 = vmatprep.subr.mxu0 %v9492_v24  ;;  %8676 = vmatpush3.msra.mxu1 %v10184_v5 }
 0xa19   : > { %8667 = vmatpush3.msra.mxu0 %v10234_v56  ;;  %8677 = vmatprep.subr.mxu1 %v9492_v24 }
 0xa1a   : > { %8669 = vmatmul.mubr.msk.f32.vlgmr.msra.gmra.mxu0 %vm844_vm2, %v10349_v54  ;;  %8682 = vmatprep.subr.mxu0 %v9492_v24 }
 0xa1b   : > { %8683 = vmatpush3.msra.mxu0 %v10198_v14  ;;  %8678 = vmatpush3.msra.mxu1 %v10190_v13 }
 0xa1c   : > { %8684 = vmatprep.subr.mxu0 %v9492_v24  ;;  %8679 = vmatprep.mubr.msk.f32.mxu1 %vm9493_vm1, %v9492_v24 }
 0xa1d   : > { %8685 = vmatpush3.msra.mxu0 %v10207_v18  ;;  %8690 = vmatprep.mubr.msk.f32.mxu0 %vm9493_vm1, %v9492_v24 }
 0xa1e   : > { %8686 = vmatprep.subr.mxu0 %v9492_v24  ;;  %8693 = vmatprep.subr.mxu1 %v9492_v24 }
 0xa1f   : > { %8687 = vmatpush3.msra.mxu0 %v10218_v20 }
 0xa20   : > { %8688 = vmatprep.subr.mxu0 %v9492_v24 }
 0xa21   : > { %8689 = vmatpush3.msra.mxu0 %v10228_v10 }
 0xa22   : > { %8704 = vmatprep.subr.mxu0 %v9492_v24 }
 0xad2   : > { %v3769_v16 = vpop.f32.mrf.mxu0  ;;  %v3839_v58 = vpop.f32.mrf.mxu1 }
 0xad3   : > { %v3913_v61 = vadd.f32 %v3769_v16, %v10390_v55  ;;  %v3920_v2 = vadd.f32 %v3839_v58, %v10396_v49 }
 0xad4   : > { %v8648_v62 = vpop.f32.mrf.mxu0  ;;  %v8659_v0 = vpop.f32.mrf.mxu1 }
 0xad5   : > { %v7735_v1 = vmul.f32 -1.442695, %v3913_v61  ;;  %v7736_v4 = vmul.f32 -1.442695, %v3920_v2  ;;  %v3203_v61 = vcombine.high %v10403_v41, %v10403_v41 }
 0xad7   : > { %9284 = vpow2.f32 %v7735_v1 }
 0xad8   : > { %9286 = vpow2.f32 %v7736_v4  ;;  %v10493_v4 = vrot.slane %v10271_v26, %v9631_v8 }
 0xada   : > { %v3909_v31 = vpop.f32.mrf.mxu0 }
 0xadb   : > { %v3910_v38 = vadd.f32 %v10293_v59, %v3909_v31 }
 0xadc   : > { %v8670_v3 = vpop.f32.mrf.mxu0 }
 0xae4   : > { %v9285_v7 = vpop.eup %9284 }
 0xae5   : > { %v3917_v9 = vadd.f32 1.0, %v9285_v7  ;;  %v9287_v12 = vpop.eup %9286 }
 0xae6   : > { %v3924_v21 = vadd.f32 1.0, %v9287_v12 }
 0xae7   : > { %9288 = vrcp.f32 %v3917_v9 }
 0xae8   : > { %9290 = vrcp.f32 %v3924_v21 }
 0xaf4   : > { %v9289_v40 = vpop.eup %9288 }
 0xaf5   : > { %v3927_v42 = vmul.f32 %v9289_v40, %v3910_v38  ;;  %v9291_v22 = vpop.eup %9290  ;;  %v10498_v40 = vrot.slane %v10273_v27, %v9631_v8 }
 0xaf6   : > { %v3930_v23 = vsub.f32 1.0, %v9291_v22  ;;  %v3932_v63 = vmul.f32 %v9291_v22, %v10349_v54 }
 0xaf7   : > { %v3928_v29 = vadd.f32 %v3927_v42, %v10403_v41 }
 0xaf9   : > { %9292 = vtanh.f32 %v3928_v29 }
 0xb06   : > { %v9293_v57 = vpop.eup %9292 }
 0xb07   : > { %v3931_v28 = vmul.f32 %v9293_v57, %v3930_v23 }
 0xb09   : > { %v10407_v43 = vadd.f32 %v3932_v63, %v3931_v28 }
 0xb0b   : > { %8680 = vmatmul.mubr.msk.f32.vlgmr.msra.gmra.mxu1 %vm844_vm2, %v10407_v43  ;;  %8691 = vmatmul.mubr.msk.f32.vlgmr.msra.gmra.mxu0 %vm844_vm2, %v10407_v43 }
 0xb0c   : > { %8694 = vmatpush3.msra.mxu1 %v10203_v17  ;;  %8701 = vmatprep.mubr.msk.f32.mxu1 %vm9493_vm1, %v9492_v24 }
 0xb0d   : > { %8695 = vmatprep.subr.mxu1 %v9492_v24  ;;  %8705 = vmatpush3.msra.mxu0 %v10169_v6 }
 0xb0e   : > { %8696 = vmatpush3.msra.mxu1 %v10214_v19  ;;  %8706 = vmatprep.subr.mxu0 %v9492_v24 }
 0xb0f   : > { %8697 = vmatprep.subr.mxu1 %v9492_v24  ;;  %8707 = vmatpush3.msra.mxu0 %v10177_v60 }
 0xb10   : > { %8698 = vmatpush3.msra.mxu1 %v10224_v25  ;;  %8708 = vmatprep.subr.mxu0 %v9492_v24 }
 0xb11   : > { %8699 = vmatprep.subr.mxu1 %v9492_v24  ;;  %8709 = vmatpush3.msra.mxu0 %v10184_v5 }
 0xb12   : > { %8700 = vmatpush3.msra.mxu1 %v10234_v56  ;;  %8710 = vmatprep.subr.mxu0 %v9492_v24 }
 0xb13   : > { %8702 = vmatmul.mubr.msk.f32.vlgmr.msra.gmra.mxu1 %vm844_vm2, %v10407_v43  ;;  %8715 = vmatprep.subr.mxu1 %v9492_v24 }
 0xb14   : > { %8716 = vmatpush3.msra.mxu1 %v10198_v14  ;;  %8711 = vmatpush3.msra.mxu0 %v10190_v13 }
 0xb15   : > { %8717 = vmatprep.subr.mxu1 %v9492_v24  ;;  %8712 = vmatprep.mubr.msk.f32.mxu0 %vm9493_vm1, %v9492_v24 }
 0xb16   : > { %8718 = vmatpush3.msra.mxu1 %v10207_v18  ;;  %8723 = vmatprep.mubr.msk.f32.mxu1 %vm9493_vm1, %v9492_v24 }
 0xb17   : > { %8719 = vmatprep.subr.mxu1 %v9492_v24  ;;  %8726 = vmatprep.subr.mxu0 %v9492_v24 }
 0xb18   : > { %8720 = vmatpush3.msra.mxu1 %v10218_v20 }
 0xb19   : > { %8721 = vmatprep.subr.mxu1 %v9492_v24 }
 0xb1a   : > { %8722 = vmatpush3.msra.mxu1 %v10228_v10 }
 0xb1b   : > { %8737 = vmatprep.subr.mxu1 %v9492_v24 }
 0xbcb   : > { %v4003_v45 = vpop.f32.mrf.mxu1  ;;  %v4073_v46 = vpop.f32.mrf.mxu0 }
 0xbcc   : > { %v4147_v44 = vadd.f32 %v4003_v45, %v2945_v15  ;;  %v4154_v32 = vadd.f32 %v4073_v46, %v3078_v34  ;;  %v10504_v46 = vrot.slane %v10282_v48, %v9631_v8 }
 0xbcd   : > { %v8681_v47 = vpop.f32.mrf.mxu1  ;;  %v8692_v30 = vpop.f32.mrf.mxu0 }
 0xbce   : > { %v7740_v33 = vmul.f32 -1.442695, %v4147_v44  ;;  %v7741_v51 = vmul.f32 -1.442695, %v4154_v32 }
 0xbd0   : > { %9294 = vpow2.f32 %v7740_v33 }
 0xbd1   : > { %9296 = vpow2.f32 %v7741_v51  ;;  %v2961_v51 = vcombine.high %v10493_v4, %v10493_v4 }
 0xbd3   : > { %v4143_v36 = vpop.f32.mrf.mxu1 }
 0xbd4   : > { %v4144_v16 = vadd.f32 %v10293_v59, %v4143_v36 }
 0xbd5   : > { %v8703_v50 = vpop.f32.mrf.mxu1 }
 0xbdd   : > { %v9295_v37 = vpop.eup %9294 }
 0xbde   : > { %v4151_v39 = vadd.f32 1.0, %v9295_v37  ;;  %v9297_v52 = vpop.eup %9296 }
 0xbdf   : > { %v4158_v55 = vadd.f32 1.0, %v9297_v52 }
 0xbe0   : > { %9298 = vrcp.f32 %v4151_v39 }
 0xbe1   : > { %9300 = vrcp.f32 %v4158_v55 }
 0xbed   : > { %v9299_v58 = vpop.eup %9298 }
 0xbee   : > { %v4161_v53 = vmul.f32 %v9299_v58, %v4144_v16  ;;  %v9301_v0 = vpop.eup %9300 }
 0xbef   : > { %v4164_v1 = vsub.f32 1.0, %v9301_v0  ;;  %v4166_v31 = vmul.f32 %v9301_v0, %v10407_v43 }
 0xbf0   : > { %v4162_v62 = vadd.f32 %v4161_v53, %v3203_v61  ;;  %v3094_v61 = vcombine.high %v10498_v40, %v10498_v40 }
 0xbf2   : > { %9302 = vtanh.f32 %v4162_v62 }
 0xbff   : > { %v9303_v49 = vpop.eup %9302 }
 0xc00   : > { %v4165_v2 = vmul.f32 %v9303_v49, %v4164_v1 }
 0xc02   : > { %v10453_v3 = vadd.f32 %v4166_v31, %v4165_v2 }
 0xc04   : > { %8713 = vmatmul.mubr.msk.f32.vlgmr.msra.gmra.mxu0 %vm844_vm2, %v10453_v3  ;;  %8724 = vmatmul.mubr.msk.f32.vlgmr.msra.gmra.mxu1 %vm844_vm2, %v10453_v3 }
 0xc05   : > { %8727 = vmatpush3.msra.mxu0 %v10203_v17  ;;  %8734 = vmatprep.mubr.msk.f32.mxu0 %vm9493_vm1, %v9492_v24 }
 0xc06   : > { %8728 = vmatprep.subr.mxu0 %v9492_v24  ;;  %8738 = vmatpush3.msra.mxu1 %v10169_v6 }
 0xc07   : > { %8729 = vmatpush3.msra.mxu0 %v10214_v19  ;;  %8739 = vmatprep.subr.mxu1 %v9492_v24 }
 0xc08   : > { %8730 = vmatprep.subr.mxu0 %v9492_v24  ;;  %8740 = vmatpush3.msra.mxu1 %v10177_v60 }
 0xc09   : > { %8731 = vmatpush3.msra.mxu0 %v10224_v25  ;;  %8741 = vmatprep.subr.mxu1 %v9492_v24 }
 0xc0a   : > { %8732 = vmatprep.subr.mxu0 %v9492_v24  ;;  %8742 = vmatpush3.msra.mxu1 %v10184_v5 }
 0xc0b   : > { %8733 = vmatpush3.msra.mxu0 %v10234_v56  ;;  %8743 = vmatprep.subr.mxu1 %v9492_v24 }
 0xc0c   : > { %8735 = vmatmul.mubr.msk.f32.vlgmr.msra.gmra.mxu0 %vm844_vm2, %v10453_v3  ;;  %8748 = vmatprep.subr.mxu0 %v9492_v24 }
 0xc0d   : > { %8749 = vmatpush3.msra.mxu0 %v10198_v14  ;;  %8744 = vmatpush3.msra.mxu1 %v10190_v13 }
 0xc0e   : > { %8750 = vmatprep.subr.mxu0 %v9492_v24  ;;  %8745 = vmatprep.mubr.msk.f32.mxu1 %vm9493_vm1, %v9492_v24 }
 0xc0f   : > { %8751 = vmatpush3.msra.mxu0 %v10207_v18  ;;  %8756 = vmatprep.mubr.msk.f32.mxu0 %vm9493_vm1, %v9492_v24 }
 0xc10   : > { %8752 = vmatprep.subr.mxu0 %v9492_v24  ;;  %8759 = vmatprep.subr.mxu1 %v9492_v24 }
 0xc11   : > { %8753 = vmatpush3.msra.mxu0 %v10218_v20 }
 0xc12   : > { %8754 = vmatprep.subr.mxu0 %v9492_v24 }
 0xc13   : > { %8755 = vmatpush3.msra.mxu0 %v10228_v10 }
 0xc14   : > { %8770 = vmatprep.subr.mxu0 %v9492_v24 }
 0xcc4   : > { %v4237_v7 = vpop.f32.mrf.mxu0  ;;  %v4307_v9 = vpop.f32.mrf.mxu1 }
 0xcc5   : > { %v4381_v12 = vadd.f32 %v4237_v7, %v10493_v4  ;;  %v4388_v41 = vadd.f32 %v4307_v9, %v10498_v40 }
 0xcc6   : > { %v8714_v35 = vpop.f32.mrf.mxu0  ;;  %v8725_v21 = vpop.f32.mrf.mxu1 }
 0xcc7   : > { %v7745_v38 = vmul.f32 -1.442695, %v4381_v12  ;;  %v7746_v22 = vmul.f32 -1.442695, %v4388_v41  ;;  %v3219_v12 = vcombine.high %v10504_v46, %v10504_v46 }
 0xcc9   : > { %9304 = vpow2.f32 %v7745_v38 }
 0xcca   : > { %9306 = vpow2.f32 %v7746_v22 }
 0xccc   : > { %v4377_v42 = vpop.f32.mrf.mxu0 }
 0xccd   : > { %v4378_v15 = vadd.f32 %v10293_v59, %v4377_v42 }
 0xcce   : > { %v8736_v29 = vpop.f32.mrf.mxu0 }
 0xcd6   : > { %v9305_v23 = vpop.eup %9304 }
 0xcd7   : > { %v4385_v57 = vadd.f32 1.0, %v9305_v23  ;;  %v9307_v28 = vpop.eup %9306 }
 0xcd8   : > { %v4392_v63 = vadd.f32 1.0, %v9307_v28 }
 0xcd9   : > { %9308 = vrcp.f32 %v4385_v57 }
 0xcda   : > { %9310 = vrcp.f32 %v4392_v63 }
 0xce6   : > { %v9309_v45 = vpop.eup %9308 }
 0xce7   : > { %v4395_v44 = vmul.f32 %v9309_v45, %v4378_v15  ;;  %v9311_v30 = vpop.eup %9310 }
 0xce8   : > { %v4398_v33 = vsub.f32 1.0, %v9311_v30  ;;  %v4400_v36 = vmul.f32 %v9311_v30, %v10453_v3 }
 0xce9   : > { %v4396_v47 = vadd.f32 %v4395_v44, %v10504_v46 }
 0xceb   : > { %9312 = vtanh.f32 %v4396_v47 }
 0xcf8   : > { %v9313_v34 = vpop.eup %9312 }
 0xcf9   : > { %v4399_v32 = vmul.f32 %v9313_v34, %v4398_v33 }
 0xcfb   : > { %v10508_v50 = vadd.f32 %v4400_v36, %v4399_v32 }
 0xcfd   : > { %8746 = vmatmul.mubr.msk.f32.vlgmr.msra.gmra.mxu1 %vm844_vm2, %v10508_v50  ;;  %8757 = vmatmul.mubr.msk.f32.vlgmr.msra.gmra.mxu0 %vm844_vm2, %v10508_v50 }
 0xcfe   : > { %8760 = vmatpush3.msra.mxu1 %v10203_v17  ;;  %8767 = vmatprep.mubr.msk.f32.mxu1 %vm9493_vm1, %v9492_v24 }
 0xcff   : > { %8761 = vmatprep.subr.mxu1 %v9492_v24  ;;  %8771 = vmatpush3.msra.mxu0 %v10169_v6 }
 0xd00   : > { %8762 = vmatpush3.msra.mxu1 %v10214_v19  ;;  %8772 = vmatprep.subr.mxu0 %v9492_v24 }
 0xd01   : > { %8763 = vmatprep.subr.mxu1 %v9492_v24  ;;  %8773 = vmatpush3.msra.mxu0 %v10177_v60 }
 0xd02   : > { %8764 = vmatpush3.msra.mxu1 %v10224_v25  ;;  %8774 = vmatprep.subr.mxu0 %v9492_v24 }
 0xd03   : > { %8765 = vmatprep.subr.mxu1 %v9492_v24  ;;  %8775 = vmatpush3.msra.mxu0 %v10184_v5 }
 0xd04   : > { %8766 = vmatpush3.msra.mxu1 %v10234_v56  ;;  %8776 = vmatprep.subr.mxu0 %v9492_v24 }
 0xd05   : > { %8768 = vmatmul.mubr.msk.f32.vlgmr.msra.gmra.mxu1 %vm844_vm2, %v10508_v50  ;;  %8781 = vmatprep.subr.mxu1 %v9492_v24 }
 0xd06   : > { %8782 = vmatpush3.msra.mxu1 %v10198_v14  ;;  %8777 = vmatpush3.msra.mxu0 %v10190_v13 }
 0xd07   : > { %8783 = vmatprep.subr.mxu1 %v9492_v24  ;;  %8778 = vmatprep.mubr.msk.f32.mxu0 %vm9493_vm1, %v9492_v24 }
 0xd08   : > { %8784 = vmatpush3.msra.mxu1 %v10207_v18  ;;  %8789 = vmatprep.mubr.msk.f32.mxu1 %vm9493_vm1, %v9492_v24 }
 0xd09   : > { %8785 = vmatprep.subr.mxu1 %v9492_v24  ;;  %8792 = vmatprep.subr.mxu0 %v9492_v24 }
 0xd0a   : > { %8786 = vmatpush3.msra.mxu1 %v10218_v20 }
 0xd0b   : > { %8787 = vmatprep.subr.mxu1 %v9492_v24 }
 0xd0c   : > { %8788 = vmatpush3.msra.mxu1 %v10228_v10 }
 0xd0d   : > { %8803 = vmatprep.subr.mxu1 %v9492_v24 }
 0xdbd   : > { %v4471_v37 = vpop.f32.mrf.mxu1  ;;  %v4541_v39 = vpop.f32.mrf.mxu0 }
 0xdbe   : > { %v4615_v52 = vadd.f32 %v4471_v37, %v2961_v51  ;;  %v4622_v53 = vadd.f32 %v4541_v39, %v3094_v61  ;;  %v5124_v51 = vcombine.low %v10453_v3, %v10453_v3  ;;  %v5106_v37 = vcombine.low %v10349_v54, %v10349_v54 }
 0xdbf   : > { %v8747_v55 = vpop.f32.mrf.mxu1  ;;  %v8758_v16 = vpop.f32.mrf.mxu0 }
 0xdc0   : > { %v7750_v58 = vmul.f32 -1.442695, %v4615_v52  ;;  %v7751_v1 = vmul.f32 -1.442695, %v4622_v53  ;;  %v5131_v52 = vrot.slane %v5124_v51, %v9631_v8  ;;  %v5113_v16 = vrot.slane %v5106_v37, %v9631_v8  ;;  %v10676_v51 = vld [vmem:[%s9608_s19 + $0xd8] sm:$0xff] }
 0xdc2   : > { %9314 = vpow2.f32 %v7750_v58  ;;  %v5163_v54 = vsel %vm2782_vm3, %v10303_v11, %v5113_v16  ;;  %v7770_v11 = vld [vmem:[%s10131_s24 + $0x98] sm:$0xff]  ;;  %v10697_v16 = vld [vmem:[%s9608_s19 + $0xc0] sm:$0xff] }
 0xdc3   : > { %9316 = vpow2.f32 %v7751_v1 }
 0xdc5   : > { %v4611_v62 = vpop.f32.mrf.mxu1 }
 0xdc6   : > { %v4612_v7 = vadd.f32 %v10293_v59, %v4611_v62 }
 0xdc7   : > { %v8769_v0 = vpop.f32.mrf.mxu1 }
 0xdc8   : > { %v5132_v0 = vcombine.low %v5131_v52, %v5131_v52  ;;  %v7772_v52 = vld [vmem:[%s10131_s24 + $0xa8] sm:$0xff] }
 0xdcf   : > { %v9315_v49 = vpop.eup %9314 }
 0xdd0   : > { %v4619_v2 = vadd.f32 1.0, %v9315_v49  ;;  %v9317_v31 = vpop.eup %9316  ;;  %v7769_v49 = vld [vmem:[%s10131_s24 + $0x90] sm:$0xff] }
 0xdd1   : > { %v4626_v4 = vadd.f32 1.0, %v9317_v31  ;;  %v7767_v31 = vld [vmem:[%s10131_s24 + $0x80] sm:$0xff] }
 0xdd2   : > { %9318 = vrcp.f32 %v4619_v2  ;;  %v7768_v2 = vld [vmem:[%s10131_s24 + $0x88] sm:$0xff] }
 0xdd3   : > { %9320 = vrcp.f32 %v4626_v4  ;;  %v7774_v4 = vld [vmem:[%s10131_s24 + $0xb8] sm:$0xff] }
 0xddf   : > { %v9319_v9 = vpop.eup %9318 }
 0xde0   : > { %v4629_v35 = vmul.f32 %v9319_v9, %v4612_v7  ;;  %v9321_v38 = vpop.eup %9320 }
 0xde1   : > { %v4632_v40 = vsub.f32 1.0, %v9321_v38  ;;  %v4634_v29 = vmul.f32 %v9321_v38, %v10508_v50 }
 0xde2   : > { %v4630_v21 = vadd.f32 %v4629_v35, %v3219_v12 }
 0xde4   : > { %9322 = vtanh.f32 %v4630_v21 }
 0xdf1   : > { %v9323_v41 = vpop.eup %9322 }
 0xdf2   : > { %v4633_v42 = vmul.f32 %v9323_v41, %v4632_v40 }
 0xdf4   : > { %v10554_v22 = vadd.f32 %v4634_v29, %v4633_v42 }
 0xdf6   : > { %8779 = vmatmul.mubr.msk.f32.vlgmr.msra.gmra.mxu0 %vm844_vm2, %v10554_v22  ;;  %8790 = vmatmul.mubr.msk.f32.vlgmr.msra.gmra.mxu1 %vm844_vm2, %v10554_v22 }
 0xdf7   : > { %8793 = vmatpush3.msra.mxu0 %v10203_v17  ;;  %8800 = vmatprep.mubr.msk.f32.mxu0 %vm9493_vm1, %v9492_v24 }
 0xdf8   : > { %8794 = vmatprep.subr.mxu0 %v9492_v24  ;;  %8804 = vmatpush3.msra.mxu1 %v10169_v6  ;;  %v2946_v6 = vcombine.high %v10271_v26, %v10271_v26 }
 0xdf9   : > { %8795 = vmatpush3.msra.mxu0 %v10214_v19  ;;  %8805 = vmatprep.subr.mxu1 %v9492_v24 }
 0xdfa   : > { %8796 = vmatprep.subr.mxu0 %v9492_v24  ;;  %8806 = vmatpush3.msra.mxu1 %v10177_v60  ;;  %v10594_v60 = vrot.slane %v2946_v6, %v9631_v8 }
 0xdfb   : > { %8797 = vmatpush3.msra.mxu0 %v10224_v25  ;;  %8807 = vmatprep.subr.mxu1 %v9492_v24 }
 0xdfc   : > { %8798 = vmatprep.subr.mxu0 %v9492_v24  ;;  %8808 = vmatpush3.msra.mxu1 %v10184_v5  ;;  %v2962_v7 = vcombine.high %v10594_v60, %v10594_v60 }
 0xdfd   : > { %8799 = vmatpush3.msra.mxu0 %v10234_v56  ;;  %8809 = vmatprep.subr.mxu1 %v9492_v24 }
 0xdfe   : > { %8801 = vmatmul.mubr.msk.f32.vlgmr.msra.gmra.mxu0 %vm844_vm2, %v10554_v22  ;;  %8814 = vmatprep.subr.mxu0 %v9492_v24 }
 0xdff   : > { %8815 = vmatpush3.msra.mxu0 %v10198_v14  ;;  %8810 = vmatpush3.msra.mxu1 %v10190_v13 }
 0xe00   : > { %8816 = vmatprep.subr.mxu0 %v9492_v24  ;;  %8811 = vmatprep.mubr.msk.f32.mxu1 %vm9493_vm1, %v9492_v24 }
 0xe01   : > { %8817 = vmatpush3.msra.mxu0 %v10207_v18  ;;  %8822 = vmatprep.mubr.msk.f32.mxu0 %vm9493_vm1, %v9492_v24  ;;  %v3079_v18 = vcombine.high %v10273_v27, %v10273_v27  ;;  %v3204_v27 = vcombine.high %v10282_v48, %v10282_v48  ;;  %v5121_v48 = vrot.slane %v10407_v43, %v9631_v8 }
 0xe02   : > { %8818 = vmatprep.subr.mxu0 %v9492_v24  ;;  %8825 = vmatprep.subr.mxu1 %v9492_v24 }
 0xe03   : > { %8819 = vmatpush3.msra.mxu0 %v10218_v20  ;;  %v10600_v28 = vrot.slane %v3079_v18, %v9631_v8  ;;  %v10607_v34 = vrot.slane %v3204_v27, %v9631_v8  ;;  %v5122_v61 = vcombine.low %v5121_v48, %v5121_v48  ;;  %v10684_v48 = vld [vmem:[%s9608_s19 + $0xd0] sm:$0xff] }
 0xe04   : > { %8820 = vmatprep.subr.mxu0 %v9492_v24 }
 0xe05   : > { %8821 = vmatpush3.msra.mxu0 %v10228_v10  ;;  %v5164_v3 = vsel %vm2784_vm4, %v5163_v54, %v5122_v61  ;;  %v3095_v41 = vcombine.high %v10600_v28, %v10600_v28  ;;  %v10710_v61 = vld [vmem:[%s9608_s19 + $0x118] sm:$0xff]  ;;  %v10735_v54 = vld [vmem:[%s9608_s19 + $0xe0] sm:$0xff] }
 0xe06   : > { %v10629_v43 = vsel %vm2786_vm5, %v5164_v3, %v5132_v0  ;;  %v10725_v0 = vld [vmem:[%s9608_s19 + $0xe8] sm:$0xff]  ;;  %v10741_v3 = vld [vmem:[%s9608_s19 + $0x100] sm:$0xff] }
 0xeb6   : > { %v4705_v5 = vpop.f32.mrf.mxu0  ;;  %v4775_v13 = vpop.f32.mrf.mxu1 }
 0xeb7   : > { %v4849_v14 = vadd.f32 %v4705_v5, %v10594_v60  ;;  %v4856_v10 = vadd.f32 %v4775_v13, %v10600_v28 }
 0xeb8   : > { %v8780_v23 = vpop.f32.mrf.mxu0  ;;  %v8791_v57 = vpop.f32.mrf.mxu1 }
 0xeb9   : > { %v7755_v20 = vmul.f32 -1.442695, %v4849_v14  ;;  %v7756_v15 = vmul.f32 -1.442695, %v4856_v10 }
 0xebb   : > { %9324 = vpow2.f32 %v7755_v20  ;;  %v3220_v20 = vcombine.high %v10607_v34, %v10607_v34 }
 0xebc   : > { %9326 = vpow2.f32 %v7756_v15 }
 0xebe   : > { %v4845_v26 = vpop.f32.mrf.mxu0 }
 0xebf   : > { %v4846_v30 = vadd.f32 %v10293_v59, %v4845_v26 }
 0xec0   : > { %v8802_v63 = vpop.f32.mrf.mxu0 }
 0xec8   : > { %v9325_v45 = vpop.eup %9324 }
 0xec9   : > { %v4853_v46 = vadd.f32 1.0, %v9325_v45  ;;  %v9327_v44 = vpop.eup %9326 }
 0xeca   : > { %v4860_v47 = vadd.f32 1.0, %v9327_v44  ;;  %v5134_v44 = vcombine.low %v10554_v22, %v10554_v22 }
 0xecb   : > { %9328 = vrcp.f32 %v4853_v46 }
 0xecc   : > { %9330 = vrcp.f32 %v4860_v47  ;;  %v5141_v47 = vrot.slane %v5134_v44, %v9631_v8 }
 0xed8   : > { %v9329_v33 = vpop.eup %9328 }
 0xed9   : > { %v4863_v32 = vmul.f32 %v9329_v33, %v4846_v30  ;;  %v9331_v39 = vpop.eup %9330 }
 0xeda   : > { %v4866_v55 = vsub.f32 1.0, %v9331_v39  ;;  %v4868_v62 = vmul.f32 %v9331_v39, %v10554_v22  ;;  %v7773_v39 = vld [vmem:[%s10131_s24 + $0xb0] sm:$0xff] }
 0xedb   : > { %v4864_v36 = vadd.f32 %v4863_v32, %v10607_v34 }
 0xedd   : > { %9332 = vtanh.f32 %v4864_v36  ;;  %v5166_v36 = vsel %vm2782_vm3, %v10508_v50, %v5141_v47  ;;  %v10691_v50 = vld [vmem:[%s9608_s19 + $0xc8] sm:$0xff] }
 0xeea   : > { %v9333_v58 = vpop.eup %9332 }
 0xeeb   : > { %v4867_v53 = vmul.f32 %v9333_v58, %v4866_v55  ;;  %v7771_v55 = vld [vmem:[%s10131_s24 + $0xa0] sm:$0xff]  ;;  %v10705_v58 = vld [vmem:[%s9608_s19 + $0xf8] sm:$0xff] }
 0xeed   : > { %v10619_v1 = vadd.f32 %v4868_v62, %v4867_v53  ;;  %v10714_v53 = vld [vmem:[%s9608_s19 + $0xf0] sm:$0xff] }
 0xeee   : > { %v10721_v62 = vld [vmem:[%s9608_s19 + $0x110] sm:$0xff] }
 0xeef   : > { %8812 = vmatmul.mubr.msk.f32.vlgmr.msra.gmra.mxu1 %vm844_vm2, %v10619_v1  ;;  %8823 = vmatmul.mubr.msk.f32.vlgmr.msra.gmra.mxu0 %vm844_vm2, %v10619_v1 }
 0xef0   : > { %8826 = vmatpush3.msra.mxu1 %v10203_v17  ;;  %8844 = vmatprep.mubr.msk.f32.mxu0 %vm844_vm2, %v10629_v43  ;;  %v7766_v17 = vld [vmem:[%s10131_s24 + $0x78] sm:$0xff] }
 0xef1   : > { %8827 = vmatprep.subr.mxu1 %v9492_v24  ;;  %8833 = vmatprep.mubr.msk.f32.mxu1 %vm9493_vm1, %v9492_v24 }
 0xef2   : > { %8828 = vmatpush3.msra.mxu1 %v10214_v19  ;;  %v7765_v19 = vld [vmem:[%s10131_s24 + $0x70] sm:$0xff]  ;;  %8836 = vmatprep.subr.mxu0 %v7766_v17 }
 0xef3   : > { %8829 = vmatprep.subr.mxu1 %v9492_v24  ;;  %8837 = vmatpush3.msra.mxu0 %v7766_v17  ;;  %v7797_v17 = vld [vmem:[%s9741_s8 + $0x7] ss:$0 sm:$0xff] }
 0xef4   : > { %8830 = vmatpush3.msra.mxu1 %v10224_v25  ;;  %v7764_v25 = vld [vmem:[%s10131_s24 + $0x68] sm:$0xff]  ;;  %8838 = vmatprep.subr.mxu0 %v7765_v19 }
 0xef5   : > { %8831 = vmatprep.subr.mxu1 %v9492_v24  ;;  %8839 = vmatpush3.msra.mxu0 %v7765_v19 }
 0xef6   : > { %8832 = vmatpush3.msra.mxu1 %v10234_v56  ;;  %v7763_v56 = vld [vmem:[%s10131_s24 + $0x60] sm:$0xff]  ;;  %8840 = vmatprep.subr.mxu0 %v7764_v25 }
 0xef7   : > { %8834 = vmatmul.mubr.msk.f32.vlgmr.msra.gmra.mxu1 %vm844_vm2, %v10619_v1  ;;  %8847 = vmatprep.subr.mxu1 %v7770_v11 }
 0xef8   : > { %8855 = vmatprep.mubr.msk.f32.mxu1 %vm844_vm2, %v10629_v43  ;;  %8848 = vmatpush3.msra.mxu1 %v7770_v11  ;;  %v7796_v11 = vld [vmem:[%s9746_s12 + $0x6] ss:$0 sm:$0xff] }
 0xef9   : > { %8849 = vmatprep.subr.mxu1 %v7769_v49  ;;  %8841 = vmatpush3.msra.mxu0 %v7764_v25 }
 0xefa   : > { %8850 = vmatpush3.msra.mxu1 %v7769_v49  ;;  %8842 = vmatprep.subr.mxu0 %v7763_v56  ;;  %v7800_v49 = vld [vmem:[%s9746_s12 + $0x7] ss:$0 sm:$0xff] }
 0xefb   : > { %8851 = vmatprep.subr.mxu1 %v7768_v2  ;;  %8843 = vmatpush3.msra.mxu0 %v7763_v56 }
 0xefc   : > { %8852 = vmatpush3.msra.mxu1 %v7768_v2  ;;  %8858 = vmatprep.subr.mxu0 %v7774_v4 }
 0xefd   : > { %8853 = vmatprep.subr.mxu1 %v7767_v31 }
 0xefe   : > { %8854 = vmatpush3.msra.mxu1 %v7767_v31 }
 0xeff   : > { %8869 = vmatprep.subr.mxu1 %v9492_v24 }
 0xfaf   : > { %v4939_v9 = vpop.f32.mrf.mxu1  ;;  %v5009_v12 = vpop.f32.mrf.mxu0 }
 0xfb0   : > { %v5083_v35 = vadd.f32 %v4939_v9, %v2962_v7  ;;  %v5090_v42 = vadd.f32 %v5009_v12, %v3095_v41 }
 0xfb1   : > { %v8813_v21 = vpop.f32.mrf.mxu1  ;;  %v8824_v38 = vpop.f32.mrf.mxu0 }
 0xfb2   : > { %v7760_v40 = vmul.f32 -1.442695, %v5083_v35  ;;  %v7761_v5 = vmul.f32 -1.442695, %v5090_v42  ;;  %v7801_v21 = vld [vmem:[%s9741_s8 + $0x8] ss:$0 sm:$0xff] }
 0xfb4   : > { %9334 = vpow2.f32 %v7760_v40 }
 0xfb5   : > { %9336 = vpow2.f32 %v7761_v5 }
 0xfb7   : > { %v5079_v29 = vpop.f32.mrf.mxu1 }
 0xfb8   : > { %v5080_v23 = vadd.f32 %v10293_v59, %v5079_v29  ;;  %v5149_v59 = vrot.slane %v10619_v1, %v9631_v8 }
 0xfb9   : > { %v8835_v6 = vpop.f32.mrf.mxu1 }
 0xfba   : > { %v5150_v33 = vcombine.low %v5149_v59, %v5149_v59 }
 0xfbc   : > { %v5167_v22 = vsel %vm2784_vm4, %v5166_v36, %v5150_v33 }
 0xfc1   : > { %v9335_v13 = vpop.eup %9334 }
 0xfc2   : > { %v5087_v14 = vadd.f32 1.0, %v9335_v13  ;;  %v9337_v18 = vpop.eup %9336 }
 0xfc3   : > { %v5094_v60 = vadd.f32 1.0, %v9337_v18 }
 0xfc4   : > { %9338 = vrcp.f32 %v5087_v14 }
 0xfc5   : > { %9340 = vrcp.f32 %v5094_v60 }
 0xfd1   : > { %v9339_v57 = vpop.eup %9338 }
 0xfd2   : > { %v5097_v10 = vmul.f32 %v9339_v57, %v5080_v23  ;;  %v9341_v26 = vpop.eup %9340 }
 0xfd3   : > { %v5100_v63 = vsub.f32 1.0, %v9341_v26  ;;  %v5102_v46 = vmul.f32 %v9341_v26, %v10619_v1  ;;  %v10731_v1 = vld [vmem:[%s9608_s19 + $0x108] sm:$0xff] }
 0xfd4   : > { %v5098_v28 = vadd.f32 %v5097_v10, %v3220_v20 }
 0xfd6   : > { %9342 = vtanh.f32 %v5098_v28 }
 0xfe3   : > { %v9343_v15 = vpop.eup %9342 }
 0xfe4   : > { %v5101_v45 = vmul.f32 %v9343_v15, %v5100_v63 }
 0xfe6   : > { %v5103_v27 = vadd.f32 %v5102_v46, %v5101_v45  ;;  %v10800_v46 = vld [vmem:[%s9746_s12 + $0x8] ss:$0 sm:$0xff] }
 0xfe8   : > { %7762 = vst.msk [vmem:[%s10157_s16 + $0x2] sm:$0x3] %vm2723_vm6, %v5103_v27  ;;  %v5153_v30 = vcombine.low %v5103_v27, %v5103_v27 }
 0xfea   : > { %v5160_v34 = vrot.slane %v5153_v30, %v9631_v8 }
 0xfec   : > { %v5161_v32 = vcombine.low %v5160_v34, %v5160_v34 }
 0xfee   : > { %v5168_v37 = vsel %vm2786_vm5, %v5167_v22, %v5161_v32 }
 0xfef   : > { %8845 = vmatmul.mubr.msk.f32.vlgmr.msra.gmra.mxu0 %vm844_vm2, %v5168_v37  ;;  %8856 = vmatmul.mubr.msk.f32.vlgmr.msra.gmra.mxu1 %vm844_vm2, %v5168_v37 }
 0xff0   : > { %8859 = vmatpush3.msra.mxu0 %v7774_v4  ;;  %8870 = vmatpush3.msra.mxu1 %v10676_v51 }
 0xff1   : > { %8860 = vmatprep.subr.mxu0 %v7773_v39  ;;  %8866 = vmatprep.mubr.msk.f32.mxu0 %vm844_vm2, %v10629_v43  ;;  %v7793_v43 = vld [vmem:[%s9741_s8 + $0x6] ss:$0 sm:$0xff] }
 0xff2   : > { %8871 = vmatprep.subr.mxu1 %v9492_v24  ;;  %8861 = vmatpush3.msra.mxu0 %v7773_v39 }
 0xff3   : > { %8872 = vmatpush3.msra.mxu1 %v10684_v48  ;;  %8862 = vmatprep.subr.mxu0 %v7772_v52 }
 0xff4   : > { %8873 = vmatprep.subr.mxu1 %v9492_v24  ;;  %8863 = vmatpush3.msra.mxu0 %v7772_v52 }
 0xff5   : > { %8874 = vmatpush3.msra.mxu1 %v10691_v50  ;;  %8864 = vmatprep.subr.mxu0 %v7771_v55 }
 0xff6   : > { %8875 = vmatprep.subr.mxu1 %v9492_v24  ;;  %8865 = vmatpush3.msra.mxu0 %v7771_v55 }
 0xff7   : > { %8876 = vmatpush3.msra.mxu1 %v10697_v16  ;;  %8877 = vmatprep.mubr.msk.f32.mxu1 %vm9493_vm1, %v9492_v24 }
 0xff8   : > { %8867 = vmatmul.mubr.msk.f32.vlgmr.msra.gmra.mxu0 %vm844_vm2, %v5168_v37  ;;  %8878 = vmatmul.mubr.f32.vlgmr.msra.gmra.mxu1 %v9492_v24 }
 0xff9   : > { %8880 = vmatprep.subr.mxu0 %v9492_v24  ;;  %8888 = vmatprep.mubr.msk.f32.mxu0 %vm9493_vm1, %v9492_v24 }
 0xffa   : > { %8881 = vmatpush3.msra.mxu0 %v10705_v58  ;;  %8891 = vmatprep.subr.mxu1 %v9492_v24 }
 0xffb   : > { %8882 = vmatprep.subr.mxu0 %v9492_v24  ;;  %8892 = vmatpush3.msra.mxu1 %v10710_v61 }
 0xffc   : > { %8883 = vmatpush3.msra.mxu0 %v10714_v53  ;;  %8893 = vmatprep.subr.mxu1 %v9492_v24 }
 0xffd   : > { %8884 = vmatprep.subr.mxu0 %v9492_v24  ;;  %8894 = vmatpush3.msra.mxu1 %v10721_v62 }
 0xffe   : > { %8885 = vmatpush3.msra.mxu0 %v10725_v0  ;;  %8895 = vmatprep.subr.mxu1 %v9492_v24 }
 0xfff   : > { %8886 = vmatprep.subr.mxu0 %v9492_v24  ;;  %8896 = vmatpush3.msra.mxu1 %v10731_v1 }
0x1000   : > { %8887 = vmatpush3.msra.mxu0 %v10735_v54  ;;  %8897 = vmatprep.subr.mxu1 %v9492_v24 }
0x1001   : > { %8889 = vmatmul.mubr.f32.vlgmr.msra.gmra.mxu0 %v9492_v24  ;;  %8898 = vmatpush3.msra.mxu1 %v10741_v3 }
0x1002   : > { %8899 = vmatprep.mubr.msk.f32.mxu1 %vm9493_vm1, %v9492_v24  ;;  %8902 = vmatprep.subr.mxu0 %v9492_v24 }
0x1003   : > { %8900 = vmatmul.mubr.f32.vlgmr.msra.gmra.mxu1 %v9492_v24  ;;  %8903 = vmatpush3.msra.mxu0 %v10676_v51 }
0x1004   : > { %8913 = vmatprep.subr.mxu1 %v9492_v24  ;;  %8904 = vmatprep.subr.mxu0 %v9492_v24 }
0x1005   : > { %8914 = vmatpush3.msra.mxu1 %v10705_v58  ;;  %8905 = vmatpush3.msra.mxu0 %v10684_v48 }
0x1006   : > { %8915 = vmatprep.subr.mxu1 %v9492_v24  ;;  %8906 = vmatprep.subr.mxu0 %v9492_v24 }
0x1007   : > { %8916 = vmatpush3.msra.mxu1 %v10714_v53  ;;  %8907 = vmatpush3.msra.mxu0 %v10691_v50 }
0x1008   : > { %8917 = vmatprep.subr.mxu1 %v9492_v24  ;;  %8908 = vmatprep.subr.mxu0 %v9492_v24 }
0x1009   : > { %8918 = vmatpush3.msra.mxu1 %v10725_v0  ;;  %8909 = vmatpush3.msra.mxu0 %v10697_v16 }
0x100a   : > { %8919 = vmatprep.subr.mxu1 %v9492_v24  ;;  %8910 = vmatprep.mubr.msk.f32.mxu0 %vm9493_vm1, %v9492_v24 }
0x100b   : > { %8920 = vmatpush3.msra.mxu1 %v10735_v54  ;;  %8921 = vmatprep.mubr.msk.f32.mxu1 %vm9493_vm1, %v9492_v24 }
0x100c   : > { %8924 = vmatprep.subr.mxu0 %v9492_v24  ;;  %8935 = vmatprep.subr.mxu1 %v9492_v24 }
0x10af   : > { %v8846_v19 = vpop.f32.mrf.mxu0  ;;  %v8857_v25 = vpop.f32.mrf.mxu1 }
0x10b0   : > { %v5295_v2 = vadd.f32 %v8846_v19, %v7793_v43  ;;  %v5428_v56 = vadd.f32 %v8857_v25, %v7797_v17 }
0x10b1   : > { %v5289_v31 = vpop.f32.mrf.mxu0  ;;  %v5422_v35 = vpop.f32.mrf.mxu1 }
0x10b2   : > { %v10778_v4 = vadd.f32 %v7796_v11, %v5295_v2  ;;  %v10780_v7 = vadd.f32 %v7800_v49, %v5428_v56  ;;  %v5290_v9 = vadd.f32 %v7793_v43, %v5289_v31  ;;  %v5423_v40 = vadd.f32 %v7797_v17, %v5422_v35 }
0x10b4   : > { %v10782_v12 = vadd.f32 %v7796_v11, %v5290_v9  ;;  %v10792_v14 = vadd.f32 %v7800_v49, %v5423_v40 }
0x10b6   : > { %v10787_v38 = vrot.slane %v10782_v12, %v9631_v8  ;;  %v10796_v60 = vrot.slane %v10792_v14, %v9631_v8 }
0x10b8   : > { %v8868_v41 = vpop.f32.mrf.mxu0  ;;  %v5674_v42 = vpop.f32.mrf.mxu1  ;;  %v5323_v55 = vcombine.high %v10787_v38, %v10787_v38  ;;  %v5456_v2 = vcombine.high %v10796_v60, %v10796_v60 }
0x10b9   : > { %v10789_v29 = vadd.f32 %v8868_v41, %v7801_v21  ;;  %v5824_v6 = vadd.f32 %v5674_v42, %v10787_v38 }
0x10ba   : > { %v8879_v5 = vpop.f32.mrf.mxu1  ;;  %v5555_v18 = vpop.f32.mrf.mxu0 }
0x10bb   : > { %v7805_v13 = vmul.f32 -1.442695, %v5824_v6  ;;  %v10802_v44 = vadd.f32 %v7801_v21, %v5555_v18 }
0x10bd   : > { %9344 = vpow2.f32 %v7805_v13  ;;  %v10807_v30 = vrot.slane %v10802_v44, %v9631_v8 }
0x10bf   : > { %v5581_v5 = vcombine.high %v10807_v30, %v10807_v30 }
0x10c1   : > { %v5744_v23 = vpop.f32.mrf.mxu0 }
0x10c2   : > { %v5831_v57 = vadd.f32 %v5744_v23, %v10796_v60 }
0x10c3   : > { %v8890_v20 = vpop.f32.mrf.mxu0  ;;  %v5820_v10 = vpop.f32.mrf.mxu1 }
0x10c4   : > { %v7806_v28 = vmul.f32 -1.442695, %v5831_v57  ;;  %v5821_v27 = vadd.f32 %v10800_v46, %v5820_v10 }
0x10c5   : > { %v8901_v26 = vpop.f32.mrf.mxu1 }
0x10c6   : > { %9346 = vpow2.f32 %v7806_v28  ;;  %v5308_v26 = vcombine.high %v10782_v12, %v10782_v12 }
0x10ca   : > { %v9345_v63 = vpop.eup %9344 }
0x10cb   : > { %v5828_v15 = vadd.f32 1.0, %v9345_v63  ;;  %v10891_v63 = vrot.slane %v5308_v26, %v9631_v8 }
0x10cd   : > { %9348 = vrcp.f32 %v5828_v15 }
0x10d3   : > { %v9347_v45 = vpop.eup %9346 }
0x10d4   : > { %v5835_v59 = vadd.f32 1.0, %v9347_v45 }
0x10d6   : > { %9350 = vrcp.f32 %v5835_v59 }
0x10da   : > { %v9349_v47 = vpop.eup %9348 }
0x10db   : > { %v5838_v33 = vmul.f32 %v9349_v47, %v5821_v27  ;;  %v5441_v27 = vcombine.high %v10792_v14, %v10792_v14  ;;  %v5566_v14 = vcombine.high %v10802_v44, %v10802_v44  ;;  %v5324_v44 = vcombine.high %v10891_v63, %v10891_v63 }
0x10dd   : > { %v5839_v34 = vadd.f32 %v5838_v33, %v10807_v30 }
0x10df   : > { %9352 = vtanh.f32 %v5839_v34  ;;  %v10897_v34 = vrot.slane %v5441_v27, %v9631_v8 }
0x10e3   : > { %v9351_v32 = vpop.eup %9350 }
0x10e4   : > { %v5841_v36 = vsub.f32 1.0, %v9351_v32  ;;  %v5843_v39 = vmul.f32 0.0, %v9351_v32 }
0x10ec   : > { %v9353_v22 = vpop.eup %9352 }
0x10ed   : > { %v5842_v37 = vmul.f32 %v9353_v22, %v5841_v36 }
0x10ef   : > { %v5844_v52 = vadd.f32 %v5843_v39, %v5842_v37 }
0x10f1   : > { %8911 = vmatmul.mubr.msk.f32.vlgmr.msra.gmra.mxu0 %vm844_vm2, %v5844_v52  ;;  %8922 = vmatmul.mubr.msk.f32.vlgmr.msra.gmra.mxu1 %vm844_vm2, %v5844_v52 }
0x10f2   : > { %8925 = vmatpush3.msra.mxu0 %v10710_v61  ;;  %8932 = vmatprep.mubr.msk.f32.mxu0 %vm9493_vm1, %v9492_v24 }
0x10f3   : > { %8926 = vmatprep.subr.mxu0 %v9492_v24  ;;  %8936 = vmatpush3.msra.mxu1 %v10676_v51 }
0x10f4   : > { %8927 = vmatpush3.msra.mxu0 %v10721_v62  ;;  %8937 = vmatprep.subr.mxu1 %v9492_v24 }
0x10f5   : > { %8928 = vmatprep.subr.mxu0 %v9492_v24  ;;  %8938 = vmatpush3.msra.mxu1 %v10684_v48 }
0x10f6   : > { %8929 = vmatpush3.msra.mxu0 %v10731_v1  ;;  %8939 = vmatprep.subr.mxu1 %v9492_v24 }
0x10f7   : > { %8930 = vmatprep.subr.mxu0 %v9492_v24  ;;  %8940 = vmatpush3.msra.mxu1 %v10691_v50 }
0x10f8   : > { %8931 = vmatpush3.msra.mxu0 %v10741_v3  ;;  %8941 = vmatprep.subr.mxu1 %v9492_v24 }
0x10f9   : > { %8933 = vmatmul.mubr.msk.f32.vlgmr.msra.gmra.mxu0 %vm844_vm2, %v5844_v52  ;;  %8946 = vmatprep.subr.mxu0 %v9492_v24 }
0x10fa   : > { %8947 = vmatpush3.msra.mxu0 %v10705_v58  ;;  %8942 = vmatpush3.msra.mxu1 %v10697_v16 }
0x10fb   : > { %8948 = vmatprep.subr.mxu0 %v9492_v24  ;;  %8943 = vmatprep.mubr.msk.f32.mxu1 %vm9493_vm1, %v9492_v24 }
0x10fc   : > { %8949 = vmatpush3.msra.mxu0 %v10714_v53  ;;  %8954 = vmatprep.mubr.msk.f32.mxu0 %vm9493_vm1, %v9492_v24 }
0x10fd   : > { %8950 = vmatprep.subr.mxu0 %v9492_v24  ;;  %8957 = vmatprep.subr.mxu1 %v9492_v24 }
0x10fe   : > { %8951 = vmatpush3.msra.mxu0 %v10725_v0 }
0x10ff   : > { %8952 = vmatprep.subr.mxu0 %v9492_v24 }
0x1100   : > { %8953 = vmatpush3.msra.mxu0 %v10735_v54 }
0x1101   : > { %8968 = vmatprep.subr.mxu0 %v9492_v24 }
0x11b1   : > { %v5914_v43 = vpop.f32.mrf.mxu0  ;;  %v5984_v17 = vpop.f32.mrf.mxu1 }
0x11b2   : > { %v6058_v11 = vadd.f32 %v5914_v43, %v5323_v55  ;;  %v6065_v56 = vadd.f32 %v5984_v17, %v5456_v2 }
0x11b3   : > { %v8912_v19 = vpop.f32.mrf.mxu0  ;;  %v8923_v49 = vpop.f32.mrf.mxu1 }
0x11b4   : > { %v7810_v25 = vmul.f32 -1.442695, %v6058_v11  ;;  %v7811_v35 = vmul.f32 -1.442695, %v6065_v56  ;;  %v10904_v11 = vrot.slane %v5566_v14, %v9631_v8 }
0x11b6   : > { %9354 = vpow2.f32 %v7810_v25 }
0x11b7   : > { %9356 = vpow2.f32 %v7811_v35 }
0x11b9   : > { %v6054_v31 = vpop.f32.mrf.mxu0 }
0x11ba   : > { %v6055_v42 = vadd.f32 %v10800_v46, %v6054_v31 }
0x11bb   : > { %v8934_v9 = vpop.f32.mrf.mxu0 }
0x11c3   : > { %v9355_v21 = vpop.eup %9354 }
0x11c4   : > { %v6062_v40 = vadd.f32 1.0, %v9355_v21  ;;  %v9357_v41 = vpop.eup %9356 }
0x11c5   : > { %v6069_v38 = vadd.f32 1.0, %v9357_v41 }
0x11c6   : > { %9358 = vrcp.f32 %v6062_v40 }
0x11c7   : > { %9360 = vrcp.f32 %v6069_v38 }
0x11d3   : > { %v9359_v6 = vpop.eup %9358 }
0x11d4   : > { %v6072_v13 = vmul.f32 %v9359_v6, %v6055_v42  ;;  %v9361_v60 = vpop.eup %9360 }
0x11d5   : > { %v6075_v23 = vsub.f32 1.0, %v9361_v60  ;;  %v6077_v10 = vmul.f32 %v9361_v60, %v5844_v52 }
0x11d6   : > { %v6073_v18 = vadd.f32 %v6072_v13, %v5581_v5  ;;  %v5457_v5 = vcombine.high %v10897_v34, %v10897_v34 }
0x11d8   : > { %9362 = vtanh.f32 %v6073_v18 }
0x11e5   : > { %v9363_v57 = vpop.eup %9362 }
0x11e6   : > { %v6076_v20 = vmul.f32 %v9363_v57, %v6075_v23 }
0x11e8   : > { %v10850_v28 = vadd.f32 %v6077_v10, %v6076_v20 }
0x11ea   : > { %8944 = vmatmul.mubr.msk.f32.vlgmr.msra.gmra.mxu1 %vm844_vm2, %v10850_v28  ;;  %8955 = vmatmul.mubr.msk.f32.vlgmr.msra.gmra.mxu0 %vm844_vm2, %v10850_v28 }
0x11eb   : > { %8958 = vmatpush3.msra.mxu1 %v10710_v61  ;;  %8965 = vmatprep.mubr.msk.f32.mxu1 %vm9493_vm1, %v9492_v24 }
0x11ec   : > { %8959 = vmatprep.subr.mxu1 %v9492_v24  ;;  %8969 = vmatpush3.msra.mxu0 %v10676_v51 }
0x11ed   : > { %8960 = vmatpush3.msra.mxu1 %v10721_v62  ;;  %8970 = vmatprep.subr.mxu0 %v9492_v24 }
0x11ee   : > { %8961 = vmatprep.subr.mxu1 %v9492_v24  ;;  %8971 = vmatpush3.msra.mxu0 %v10684_v48 }
0x11ef   : > { %8962 = vmatpush3.msra.mxu1 %v10731_v1  ;;  %8972 = vmatprep.subr.mxu0 %v9492_v24 }
0x11f0   : > { %8963 = vmatprep.subr.mxu1 %v9492_v24  ;;  %8973 = vmatpush3.msra.mxu0 %v10691_v50 }
0x11f1   : > { %8964 = vmatpush3.msra.mxu1 %v10741_v3  ;;  %8974 = vmatprep.subr.mxu0 %v9492_v24 }
0x11f2   : > { %8966 = vmatmul.mubr.msk.f32.vlgmr.msra.gmra.mxu1 %vm844_vm2, %v10850_v28  ;;  %8979 = vmatprep.subr.mxu1 %v9492_v24 }
0x11f3   : > { %8980 = vmatpush3.msra.mxu1 %v10705_v58  ;;  %8975 = vmatpush3.msra.mxu0 %v10697_v16 }
0x11f4   : > { %8981 = vmatprep.subr.mxu1 %v9492_v24  ;;  %8976 = vmatprep.mubr.msk.f32.mxu0 %vm9493_vm1, %v9492_v24 }
0x11f5   : > { %8982 = vmatpush3.msra.mxu1 %v10714_v53  ;;  %8987 = vmatprep.mubr.msk.f32.mxu1 %vm9493_vm1, %v9492_v24 }
0x11f6   : > { %8983 = vmatprep.subr.mxu1 %v9492_v24  ;;  %8990 = vmatprep.subr.mxu0 %v9492_v24 }
0x11f7   : > { %8984 = vmatpush3.msra.mxu1 %v10725_v0 }
0x11f8   : > { %8985 = vmatprep.subr.mxu1 %v9492_v24 }
0x11f9   : > { %8986 = vmatpush3.msra.mxu1 %v10735_v54 }
0x11fa   : > { %9001 = vmatprep.subr.mxu1 %v9492_v24 }
0x12aa   : > { %v6148_v15 = vpop.f32.mrf.mxu1  ;;  %v6218_v45 = vpop.f32.mrf.mxu0 }
0x12ab   : > { %v6292_v59 = vadd.f32 %v6148_v15, %v10891_v63  ;;  %v6299_v32 = vadd.f32 %v6218_v45, %v10897_v34  ;;  %v5582_v15 = vcombine.high %v10904_v11, %v10904_v11 }
0x12ac   : > { %v8945_v47 = vpop.f32.mrf.mxu1  ;;  %v8956_v30 = vpop.f32.mrf.mxu0 }
0x12ad   : > { %v7815_v33 = vmul.f32 -1.442695, %v6292_v59  ;;  %v7816_v22 = vmul.f32 -1.442695, %v6299_v32 }
0x12af   : > { %9364 = vpow2.f32 %v7815_v33 }
0x12b0   : > { %9366 = vpow2.f32 %v7816_v22 }
0x12b2   : > { %v6288_v12 = vpop.f32.mrf.mxu1 }
0x12b3   : > { %v6289_v43 = vadd.f32 %v10800_v46, %v6288_v12  ;;  %v10983_v12 = vrot.slane %v10778_v4, %v9631_v8 }
0x12b4   : > { %v8967_v36 = vpop.f32.mrf.mxu1 }
0x12bc   : > { %v9365_v37 = vpop.eup %9364 }
0x12bd   : > { %v6296_v39 = vadd.f32 1.0, %v9365_v37  ;;  %v9367_v52 = vpop.eup %9366 }
0x12be   : > { %v6303_v55 = vadd.f32 1.0, %v9367_v52 }
0x12bf   : > { %9368 = vrcp.f32 %v6296_v39 }
0x12c0   : > { %9370 = vrcp.f32 %v6303_v55  ;;  %v10988_v55 = vrot.slane %v10780_v7, %v9631_v8 }
0x12cc   : > { %v9369_v17 = vpop.eup %9368 }
0x12cd   : > { %v6306_v19 = vmul.f32 %v9369_v17, %v6289_v43  ;;  %v9371_v25 = vpop.eup %9370 }
0x12ce   : > { %v6309_v2 = vsub.f32 1.0, %v9371_v25  ;;  %v6311_v9 = vmul.f32 %v9371_v25, %v10850_v28 }
0x12cf   : > { %v6307_v49 = vadd.f32 %v6306_v19, %v10904_v11 }
0x12d1   : > { %9372 = vtanh.f32 %v6307_v49 }
0x12de   : > { %v9373_v56 = vpop.eup %9372 }
0x12df   : > { %v6310_v31 = vmul.f32 %v9373_v56, %v6309_v2 }
0x12e1   : > { %v6312_v35 = vadd.f32 %v6311_v9, %v6310_v31 }
0x12e3   : > { %8977 = vmatmul.mubr.msk.f32.vlgmr.msra.gmra.mxu0 %vm844_vm2, %v6312_v35  ;;  %8988 = vmatmul.mubr.msk.f32.vlgmr.msra.gmra.mxu1 %vm844_vm2, %v6312_v35 }
0x12e4   : > { %8991 = vmatpush3.msra.mxu0 %v10710_v61  ;;  %8998 = vmatprep.mubr.msk.f32.mxu0 %vm9493_vm1, %v9492_v24 }
0x12e5   : > { %8992 = vmatprep.subr.mxu0 %v9492_v24  ;;  %9002 = vmatpush3.msra.mxu1 %v10676_v51 }
0x12e6   : > { %8993 = vmatpush3.msra.mxu0 %v10721_v62  ;;  %9003 = vmatprep.subr.mxu1 %v9492_v24 }
0x12e7   : > { %8994 = vmatprep.subr.mxu0 %v9492_v24  ;;  %9004 = vmatpush3.msra.mxu1 %v10684_v48 }
0x12e8   : > { %8995 = vmatpush3.msra.mxu0 %v10731_v1  ;;  %9005 = vmatprep.subr.mxu1 %v9492_v24 }
0x12e9   : > { %8996 = vmatprep.subr.mxu0 %v9492_v24  ;;  %9006 = vmatpush3.msra.mxu1 %v10691_v50 }
0x12ea   : > { %8997 = vmatpush3.msra.mxu0 %v10741_v3  ;;  %9007 = vmatprep.subr.mxu1 %v9492_v24 }
0x12eb   : > { %8999 = vmatmul.mubr.msk.f32.vlgmr.msra.gmra.mxu0 %vm844_vm2, %v6312_v35  ;;  %9012 = vmatprep.subr.mxu0 %v9492_v24 }
0x12ec   : > { %9013 = vmatpush3.msra.mxu0 %v10705_v58  ;;  %9008 = vmatpush3.msra.mxu1 %v10697_v16 }
0x12ed   : > { %9014 = vmatprep.subr.mxu0 %v9492_v24  ;;  %9009 = vmatprep.mubr.msk.f32.mxu1 %vm9493_vm1, %v9492_v24 }
0x12ee   : > { %9015 = vmatpush3.msra.mxu0 %v10714_v53  ;;  %9020 = vmatprep.mubr.msk.f32.mxu0 %vm9493_vm1, %v9492_v24 }
0x12ef   : > { %9016 = vmatprep.subr.mxu0 %v9492_v24  ;;  %9023 = vmatprep.subr.mxu1 %v9492_v24 }
0x12f0   : > { %9017 = vmatpush3.msra.mxu0 %v10725_v0 }
0x12f1   : > { %9018 = vmatprep.subr.mxu0 %v9492_v24 }
0x12f2   : > { %9019 = vmatpush3.msra.mxu0 %v10735_v54 }
0x12f3   : > { %9034 = vmatprep.subr.mxu0 %v9492_v24 }
0x13a3   : > { %v6382_v21 = vpop.f32.mrf.mxu0  ;;  %v6452_v40 = vpop.f32.mrf.mxu1 }
0x13a4   : > { %v6526_v41 = vadd.f32 %v6382_v21, %v5324_v44  ;;  %v6533_v13 = vadd.f32 %v6452_v40, %v5457_v5 }
0x13a5   : > { %v8978_v38 = vpop.f32.mrf.mxu0  ;;  %v8989_v42 = vpop.f32.mrf.mxu1 }
0x13a6   : > { %v7820_v6 = vmul.f32 -1.442695, %v6526_v41  ;;  %v7821_v23 = vmul.f32 -1.442695, %v6533_v13  ;;  %v5340_v13 = vcombine.high %v10983_v12, %v10983_v12 }
0x13a8   : > { %9374 = vpow2.f32 %v7820_v6 }
0x13a9   : > { %9376 = vpow2.f32 %v7821_v23 }
0x13ab   : > { %v6522_v18 = vpop.f32.mrf.mxu0 }
0x13ac   : > { %v6523_v26 = vadd.f32 %v10800_v46, %v6522_v18 }
0x13ad   : > { %v9000_v60 = vpop.f32.mrf.mxu0 }
0x13b5   : > { %v9375_v57 = vpop.eup %9374 }
0x13b6   : > { %v6530_v20 = vadd.f32 1.0, %v9375_v57  ;;  %v9377_v10 = vpop.eup %9376 }
0x13b7   : > { %v6537_v28 = vadd.f32 1.0, %v9377_v10 }
0x13b8   : > { %9378 = vrcp.f32 %v6530_v20 }
0x13b9   : > { %9380 = vrcp.f32 %v6537_v28  ;;  %v5473_v28 = vcombine.high %v10988_v55, %v10988_v55 }
0x13c5   : > { %v9379_v63 = vpop.eup %9378 }
0x13c6   : > { %v6540_v45 = vmul.f32 %v9379_v63, %v6523_v26  ;;  %v9381_v27 = vpop.eup %9380 }
0x13c7   : > { %v6543_v47 = vsub.f32 1.0, %v9381_v27  ;;  %v6545_v34 = vmul.f32 %v9381_v27, %v6312_v35  ;;  %v10994_v35 = vrot.slane %v10789_v29, %v9631_v8 }
0x13c8   : > { %v6541_v59 = vadd.f32 %v6540_v45, %v5582_v15 }
0x13ca   : > { %9382 = vtanh.f32 %v6541_v59 }
0x13d7   : > { %v9383_v30 = vpop.eup %9382 }
0x13d8   : > { %v6544_v33 = vmul.f32 %v9383_v30, %v6543_v47 }
0x13da   : > { %v6546_v32 = vadd.f32 %v6545_v34, %v6544_v33 }
0x13dc   : > { %9010 = vmatmul.mubr.msk.f32.vlgmr.msra.gmra.mxu1 %vm844_vm2, %v6546_v32  ;;  %9021 = vmatmul.mubr.msk.f32.vlgmr.msra.gmra.mxu0 %vm844_vm2, %v6546_v32 }
0x13dd   : > { %9024 = vmatpush3.msra.mxu1 %v10710_v61  ;;  %9031 = vmatprep.mubr.msk.f32.mxu1 %vm9493_vm1, %v9492_v24 }
0x13de   : > { %9025 = vmatprep.subr.mxu1 %v9492_v24  ;;  %9035 = vmatpush3.msra.mxu0 %v10676_v51 }
0x13df   : > { %9026 = vmatpush3.msra.mxu1 %v10721_v62  ;;  %9036 = vmatprep.subr.mxu0 %v9492_v24 }
0x13e0   : > { %9027 = vmatprep.subr.mxu1 %v9492_v24  ;;  %9037 = vmatpush3.msra.mxu0 %v10684_v48 }
0x13e1   : > { %9028 = vmatpush3.msra.mxu1 %v10731_v1  ;;  %9038 = vmatprep.subr.mxu0 %v9492_v24 }
0x13e2   : > { %9029 = vmatprep.subr.mxu1 %v9492_v24  ;;  %9039 = vmatpush3.msra.mxu0 %v10691_v50 }
0x13e3   : > { %9030 = vmatpush3.msra.mxu1 %v10741_v3  ;;  %9040 = vmatprep.subr.mxu0 %v9492_v24 }
0x13e4   : > { %9032 = vmatmul.mubr.msk.f32.vlgmr.msra.gmra.mxu1 %vm844_vm2, %v6546_v32  ;;  %9045 = vmatprep.subr.mxu1 %v9492_v24 }
0x13e5   : > { %9046 = vmatpush3.msra.mxu1 %v10705_v58  ;;  %9041 = vmatpush3.msra.mxu0 %v10697_v16 }
0x13e6   : > { %9047 = vmatprep.subr.mxu1 %v9492_v24  ;;  %9042 = vmatprep.mubr.msk.f32.mxu0 %vm9493_vm1, %v9492_v24 }
0x13e7   : > { %9048 = vmatpush3.msra.mxu1 %v10714_v53  ;;  %9053 = vmatprep.mubr.msk.f32.mxu1 %vm9493_vm1, %v9492_v24 }
0x13e8   : > { %9049 = vmatprep.subr.mxu1 %v9492_v24  ;;  %9056 = vmatprep.subr.mxu0 %v9492_v24 }
0x13e9   : > { %9050 = vmatpush3.msra.mxu1 %v10725_v0 }
0x13ea   : > { %9051 = vmatprep.subr.mxu1 %v9492_v24 }
0x13eb   : > { %9052 = vmatpush3.msra.mxu1 %v10735_v54 }
0x13ec   : > { %9067 = vmatprep.subr.mxu1 %v9492_v24 }
0x149c   : > { %v6616_v36 = vpop.f32.mrf.mxu1  ;;  %v6686_v22 = vpop.f32.mrf.mxu0 }
0x149d   : > { %v6760_v37 = vadd.f32 %v6616_v36, %v10983_v12  ;;  %v6767_v43 = vadd.f32 %v6686_v22, %v10988_v55 }
0x149e   : > { %v9011_v39 = vpop.f32.mrf.mxu1  ;;  %v9022_v52 = vpop.f32.mrf.mxu0 }
0x149f   : > { %v7825_v14 = vmul.f32 -1.442695, %v6760_v37  ;;  %v7826_v19 = vmul.f32 -1.442695, %v6767_v43 }
0x14a1   : > { %9384 = vpow2.f32 %v7825_v14 }
0x14a2   : > { %9386 = vpow2.f32 %v7826_v19 }
0x14a4   : > { %v6756_v17 = vpop.f32.mrf.mxu1 }
0x14a5   : > { %v6757_v31 = vadd.f32 %v10800_v46, %v6756_v17 }
0x14a6   : > { %v9033_v11 = vpop.f32.mrf.mxu1 }
0x14ae   : > { %v9385_v49 = vpop.eup %9384 }
0x14af   : > { %v6764_v25 = vadd.f32 1.0, %v9385_v49  ;;  %v9387_v2 = vpop.eup %9386 }
0x14b0   : > { %v6771_v56 = vadd.f32 1.0, %v9387_v2 }
0x14b1   : > { %9388 = vrcp.f32 %v6764_v25 }
0x14b2   : > { %9390 = vrcp.f32 %v6771_v56 }
0x14be   : > { %v9389_v9 = vpop.eup %9388 }
0x14bf   : > { %v6774_v44 = vmul.f32 %v9389_v9, %v6757_v31  ;;  %v9391_v40 = vpop.eup %9390  ;;  %v5583_v31 = vcombine.high %v10789_v29, %v10789_v29 }
0x14c0   : > { %v6777_v41 = vsub.f32 1.0, %v9391_v40  ;;  %v6779_v6 = vmul.f32 %v9391_v40, %v6546_v32  ;;  %v5598_v32 = vcombine.high %v10994_v35, %v10994_v35 }
0x14c1   : > { %v6775_v21 = vadd.f32 %v6774_v44, %v10994_v35  ;;  %v5597_v44 = vrot.slane %v5583_v31, %v9631_v8 }
0x14c3   : > { %9392 = vtanh.f32 %v6775_v21 }
0x14d0   : > { %v9393_v38 = vpop.eup %9392 }
0x14d1   : > { %v6778_v42 = vmul.f32 %v9393_v38, %v6777_v41 }
0x14d3   : > { %v6780_v5 = vadd.f32 %v6779_v6, %v6778_v42 }
0x14d5   : > { %9043 = vmatmul.mubr.msk.f32.vlgmr.msra.gmra.mxu0 %vm844_vm2, %v6780_v5  ;;  %9054 = vmatmul.mubr.msk.f32.vlgmr.msra.gmra.mxu1 %vm844_vm2, %v6780_v5 }
0x14d6   : > { %9057 = vmatpush3.msra.mxu0 %v10710_v61  ;;  %9064 = vmatprep.mubr.msk.f32.mxu0 %vm9493_vm1, %v9492_v24 }
0x14d7   : > { %9058 = vmatprep.subr.mxu0 %v9492_v24  ;;  %9068 = vmatpush3.msra.mxu1 %v10676_v51 }
0x14d8   : > { %9059 = vmatpush3.msra.mxu0 %v10721_v62  ;;  %9069 = vmatprep.subr.mxu1 %v9492_v24 }
0x14d9   : > { %9060 = vmatprep.subr.mxu0 %v9492_v24  ;;  %9070 = vmatpush3.msra.mxu1 %v10684_v48 }
0x14da   : > { %9061 = vmatpush3.msra.mxu0 %v10731_v1  ;;  %9071 = vmatprep.subr.mxu1 %v9492_v24 }
0x14db   : > { %9062 = vmatprep.subr.mxu0 %v9492_v24  ;;  %9072 = vmatpush3.msra.mxu1 %v10691_v50 }
0x14dc   : > { %9063 = vmatpush3.msra.mxu0 %v10741_v3  ;;  %9073 = vmatprep.subr.mxu1 %v9492_v24 }
0x14dd   : > { %9065 = vmatmul.mubr.msk.f32.vlgmr.msra.gmra.mxu0 %vm844_vm2, %v6780_v5  ;;  %9078 = vmatprep.subr.mxu0 %v9492_v24 }
0x14de   : > { %9079 = vmatpush3.msra.mxu0 %v10705_v58  ;;  %9074 = vmatpush3.msra.mxu1 %v10697_v16 }
0x14df   : > { %9080 = vmatprep.subr.mxu0 %v9492_v24  ;;  %9075 = vmatprep.mubr.msk.f32.mxu1 %vm9493_vm1, %v9492_v24 }
0x14e0   : > { %9081 = vmatpush3.msra.mxu0 %v10714_v53  ;;  %9086 = vmatprep.mubr.msk.f32.mxu0 %vm9493_vm1, %v9492_v24 }
0x14e1   : > { %9082 = vmatprep.subr.mxu0 %v9492_v24  ;;  %9089 = vmatprep.subr.mxu1 %v9492_v24 }
0x14e2   : > { %9083 = vmatpush3.msra.mxu0 %v10725_v0 }
0x14e3   : > { %9084 = vmatprep.subr.mxu0 %v9492_v24 }
0x14e4   : > { %9085 = vmatpush3.msra.mxu0 %v10735_v54 }
0x14e5   : > { %9100 = vmatprep.subr.mxu0 %v9492_v24 }
0x1595   : > { %v6850_v18 = vpop.f32.mrf.mxu0  ;;  %v6920_v60 = vpop.f32.mrf.mxu1 }
0x1596   : > { %v6994_v23 = vadd.f32 %v6850_v18, %v5340_v13  ;;  %v7001_v26 = vadd.f32 %v6920_v60, %v5473_v28 }
0x1597   : > { %v9044_v57 = vpop.f32.mrf.mxu0  ;;  %v9055_v20 = vpop.f32.mrf.mxu1 }
0x1598   : > { %v7830_v10 = vmul.f32 -1.442695, %v6994_v23  ;;  %v7831_v45 = vmul.f32 -1.442695, %v7001_v26 }
0x159a   : > { %9394 = vpow2.f32 %v7830_v10 }
0x159b   : > { %9396 = vpow2.f32 %v7831_v45 }
0x159d   : > { %v6990_v63 = vpop.f32.mrf.mxu0 }
0x159e   : > { %v6991_v33 = vadd.f32 %v10800_v46, %v6990_v63 }
0x159f   : > { %v9066_v15 = vpop.f32.mrf.mxu0 }
0x15a7   : > { %v9395_v59 = vpop.eup %9394 }
0x15a8   : > { %v6998_v27 = vadd.f32 1.0, %v9395_v59  ;;  %v9397_v47 = vpop.eup %9396  ;;  %v5599_v59 = vcombine.high %v5597_v44, %v5597_v44 }
0x15a9   : > { %v7005_v30 = vadd.f32 1.0, %v9397_v47 }
0x15aa   : > { %9398 = vrcp.f32 %v6998_v27 }
0x15ab   : > { %9400 = vrcp.f32 %v7005_v30 }
0x15b7   : > { %v9399_v34 = vpop.eup %9398 }
0x15b8   : > { %v7008_v12 = vmul.f32 %v9399_v34, %v6991_v33  ;;  %v9401_v22 = vpop.eup %9400 }
0x15b9   : > { %v7011_v37 = vsub.f32 1.0, %v9401_v22  ;;  %v7013_v14 = vmul.f32 %v9401_v22, %v6780_v5 }
0x15ba   : > { %v7009_v36 = vadd.f32 %v7008_v12, %v5598_v32 }
0x15bc   : > { %9402 = vtanh.f32 %v7009_v36 }
0x15c9   : > { %v9403_v39 = vpop.eup %9402 }
0x15ca   : > { %v7012_v52 = vmul.f32 %v9403_v39, %v7011_v37 }
0x15cc   : > { %v11037_v55 = vadd.f32 %v7013_v14, %v7012_v52 }
0x15ce   : > { %9076 = vmatmul.mubr.msk.f32.vlgmr.msra.gmra.mxu1 %vm844_vm2, %v11037_v55  ;;  %9087 = vmatmul.mubr.msk.f32.vlgmr.msra.gmra.mxu0 %vm844_vm2, %v11037_v55 }
0x15cf   : > { %9090 = vmatpush3.msra.mxu1 %v10710_v61  ;;  %9097 = vmatprep.mubr.msk.f32.mxu1 %vm9493_vm1, %v9492_v24 }
0x15d0   : > { %9091 = vmatprep.subr.mxu1 %v9492_v24  ;;  %9101 = vmatpush3.msra.mxu0 %v10676_v51  ;;  %v5325_v51 = vcombine.high %v10778_v4, %v10778_v4 }
0x15d1   : > { %9092 = vmatpush3.msra.mxu1 %v10721_v62  ;;  %9102 = vmatprep.subr.mxu0 %v9492_v24 }
0x15d2   : > { %9093 = vmatprep.subr.mxu1 %v9492_v24  ;;  %9103 = vmatpush3.msra.mxu0 %v10684_v48  ;;  %v5339_v48 = vrot.slane %v5325_v51, %v9631_v8 }
0x15d3   : > { %9094 = vmatpush3.msra.mxu1 %v10731_v1  ;;  %9104 = vmatprep.subr.mxu0 %v9492_v24 }
0x15d4   : > { %9095 = vmatprep.subr.mxu1 %v9492_v24  ;;  %9105 = vmatpush3.msra.mxu0 %v10691_v50 }
0x15d5   : > { %9096 = vmatpush3.msra.mxu1 %v10741_v3  ;;  %9106 = vmatprep.subr.mxu0 %v9492_v24 }
0x15d6   : > { %9098 = vmatmul.mubr.msk.f32.vlgmr.msra.gmra.mxu1 %vm844_vm2, %v11037_v55  ;;  %9111 = vmatprep.subr.mxu1 %v9492_v24 }
0x15d7   : > { %9112 = vmatpush3.msra.mxu1 %v10705_v58  ;;  %9107 = vmatpush3.msra.mxu0 %v10697_v16 }
0x15d8   : > { %9113 = vmatprep.subr.mxu1 %v9492_v24  ;;  %9108 = vmatprep.mubr.msk.f32.mxu0 %vm9493_vm1, %v9492_v24 }
0x15d9   : > { %9114 = vmatpush3.msra.mxu1 %v10714_v53  ;;  %9119 = vmatprep.mubr.msk.f32.mxu1 %vm9493_vm1, %v9492_v24  ;;  %v5458_v53 = vcombine.high %v10780_v7, %v10780_v7 }
0x15da   : > { %9115 = vmatprep.subr.mxu1 %v9492_v24  ;;  %9122 = vmatprep.subr.mxu0 %v9492_v24 }
0x15db   : > { %9116 = vmatpush3.msra.mxu1 %v10725_v0  ;;  %v5472_v0 = vrot.slane %v5458_v53, %v9631_v8  ;;  %v5341_v8 = vcombine.high %v5339_v48, %v5339_v48 }
0x15dc   : > { %9117 = vmatprep.subr.mxu1 %v9492_v24 }
0x15dd   : > { %9118 = vmatpush3.msra.mxu1 %v10735_v54  ;;  %v5474_v20 = vcombine.high %v5472_v0, %v5472_v0 }
0x168e   : > { %v7084_v50 = vpop.f32.mrf.mxu1  ;;  %v7154_v16 = vpop.f32.mrf.mxu0 }
0x168f   : > { %v7228_v58 = vadd.f32 %v7084_v50, %v5339_v48  ;;  %v7235_v19 = vadd.f32 %v7154_v16, %v5472_v0 }
0x1690   : > { %v9077_v43 = vpop.f32.mrf.mxu1  ;;  %v9088_v17 = vpop.f32.mrf.mxu0 }
0x1691   : > { %v7835_v11 = vmul.f32 -1.442695, %v7228_v58  ;;  %v7836_v25 = vmul.f32 -1.442695, %v7235_v19 }
0x1693   : > { %9404 = vpow2.f32 %v7835_v11 }
0x1694   : > { %9406 = vpow2.f32 %v7836_v25 }
0x1696   : > { %v7224_v49 = vpop.f32.mrf.mxu1 }
0x1697   : > { %v7225_v7 = vadd.f32 %v10800_v46, %v7224_v49 }
0x1698   : > { %v9099_v54 = vpop.f32.mrf.mxu1 }
0x16a0   : > { %v9405_v4 = vpop.eup %9404 }
0x16a1   : > { %v7232_v2 = vadd.f32 1.0, %v9405_v4  ;;  %v9407_v56 = vpop.eup %9406 }
0x16a2   : > { %v7239_v9 = vadd.f32 1.0, %v9407_v56 }
0x16a3   : > { %9408 = vrcp.f32 %v7232_v2 }
0x16a4   : > { %9410 = vrcp.f32 %v7239_v9 }
0x16b0   : > { %v9409_v35 = vpop.eup %9408 }
0x16b1   : > { %v7242_v21 = vmul.f32 %v9409_v35, %v7225_v7  ;;  %v9411_v41 = vpop.eup %9410 }
0x16b2   : > { %v7245_v38 = vsub.f32 1.0, %v9411_v41  ;;  %v7247_v5 = vmul.f32 %v9411_v41, %v11037_v55 }
0x16b3   : > { %v7243_v40 = vadd.f32 %v7242_v21, %v5597_v44 }
0x16b5   : > { %9412 = vtanh.f32 %v7243_v40 }
0x16c2   : > { %v9413_v42 = vpop.eup %9412 }
0x16c3   : > { %v7246_v6 = vmul.f32 %v9413_v42, %v7245_v38 }
0x16c5   : > { %v7248_v13 = vadd.f32 %v7247_v5, %v7246_v6 }
0x16c7   : > { %9109 = vmatmul.mubr.msk.f32.vlgmr.msra.gmra.mxu0 %vm844_vm2, %v7248_v13  ;;  %9120 = vmatmul.mubr.msk.f32.vlgmr.msra.gmra.mxu1 %vm844_vm2, %v7248_v13 }
0x16c8   : > { %9123 = vmatpush3.msra.mxu0 %v10710_v61  ;;  %9130 = vmatprep.mubr.msk.f32.mxu0 %vm9493_vm1, %v9492_v24 }
0x16c9   : > { %9124 = vmatprep.subr.mxu0 %v9492_v24 }
0x16ca   : > { %9125 = vmatpush3.msra.mxu0 %v10721_v62 }
0x16cb   : > { %9126 = vmatprep.subr.mxu0 %v9492_v24 }
0x16cc   : > { %9127 = vmatpush3.msra.mxu0 %v10731_v1 }
0x16cd   : > { %9128 = vmatprep.subr.mxu0 %v9492_v24 }
0x16ce   : > { %9129 = vmatpush3.msra.mxu0 %v10741_v3 }
0x16cf   : > { %9131 = vmatmul.mubr.msk.f32.vlgmr.msra.gmra.mxu0 %vm844_vm2, %v7248_v13 }
0x1787   : > { %v7318_v29 = vpop.f32.mrf.mxu0  ;;  %v7388_v61 = vpop.f32.mrf.mxu1 }
0x1788   : > { %v7462_v18 = vadd.f32 %v7318_v29, %v5341_v8  ;;  %v7469_v62 = vadd.f32 %v7388_v61, %v5474_v20 }
0x1789   : > { %v9110_v60 = vpop.f32.mrf.mxu0  ;;  %v9121_v23 = vpop.f32.mrf.mxu1 }
0x178a   : > { %v7840_v57 = vmul.f32 -1.442695, %v7462_v18  ;;  %v7841_v26 = vmul.f32 -1.442695, %v7469_v62 }
0x178c   : > { %9414 = vpow2.f32 %v7840_v57 }
0x178d   : > { %9416 = vpow2.f32 %v7841_v26 }
0x178f   : > { %v7458_v10 = vpop.f32.mrf.mxu0 }
0x1790   : > { %v7459_v15 = vadd.f32 %v10800_v46, %v7458_v10 }
0x1791   : > { %v9132_v28 = vpop.f32.mrf.mxu0 }
0x1799   : > { %v9415_v1 = vpop.eup %9414 }
0x179a   : > { %v7466_v24 = vadd.f32 1.0, %v9415_v1  ;;  %v9417_v3 = vpop.eup %9416 }
0x179b   : > { %v7473_v63 = vadd.f32 1.0, %v9417_v3 }
0x179c   : > { %9418 = vrcp.f32 %v7466_v24 }
0x179d   : > { %9420 = vrcp.f32 %v7473_v63 }
0x17a9   : > { %v9419_v45 = vpop.eup %9418 }
0x17aa   : > { %v7476_v27 = vmul.f32 %v9419_v45, %v7459_v15  ;;  %v9421_v30 = vpop.eup %9420 }
0x17ab   : > { %v7479_v33 = vsub.f32 1.0, %v9421_v30  ;;  %v7481_v32 = vmul.f32 %v9421_v30, %v7248_v13 }
0x17ac   : > { %v7477_v47 = vadd.f32 %v7476_v27, %v5599_v59 }
0x17ae   : > { %9422 = vtanh.f32 %v7477_v47 }
0x17bb   : > { %v9423_v34 = vpop.eup %9422 }
0x17bc   : > { %v7480_v12 = vmul.f32 %v9423_v34, %v7479_v33 }
0x17be   : > { %v7482_v36 = vadd.f32 %v7481_v32, %v7480_v12 }
0x17c0   : > { %7842 = vst.msk [vmem:[%s10157_s16 + $0x4] sm:$0x3] %vm2723_vm6, %v7482_v36 }
0x17c1 PF: > { %p16_p8 = scmp.ge.s32.totalorder %s9551_s26, 5   ;;  %s11125_s21 = smov %s9478_s22 }
0x17c2   : > { %s11126_s22 = smov %s9482_s23  ;;  %s11127_s23 = smov %s9561_s29 }
0x17c3   : > { %s11128_s24 = smov %s9551_s26  ;;  %18 = sbr.rel (!%p16_p8) target bundleno = 3 (0x3), region = 132 }
0x17c8   :  { %7506 = vsyncpa [#allocation3], 1 }
0x17c9   :  { %7508 = vsyncpa [#allocation3 + $0x1], 1 }

</bundles_post_ra>
